<compile_context>
chip_gen: v5e
topology: v5e:2x2
jax: 0.10.0
libtpu: 0.0.40
codegen_flags: <defaults>
</compile_context>

<pallas_src>
import numpy as np
import jax
import jax.numpy as jnp
from jax.experimental import pallas as pl
from jax.experimental.pallas import tpu as pltpu


def _dft_mats(n):
    """Orthonormal forward DFT matrix (real, imag) of size n, float32."""
    k = np.arange(n)
    ang = -2.0 * np.pi * np.outer(k, k) / n
    s = 1.0 / np.sqrt(n)
    return (np.cos(ang) * s).astype(np.float32), (np.sin(ang) * s).astype(np.float32)


def _packed_dft_mats(ny, nx):
    fyr, fyi = _dft_mats(ny)
    fxr, fxi = _dft_mats(nx)
    # Row-packed (left-multiply) form:  [Tr;Ti] = Fy2 @ [Sr;Si]
    fy2 = np.block([[fyr, -fyi], [fyi, fyr]]).astype(np.float32)     # (2Ny, 2Ny)
    # Column-packed (right-multiply) form:  [Yr|Yi] = [Tr|Ti] @ Fx2
    fx2 = np.block([[fxr, fxi], [-fxi, fxr]]).astype(np.float32)     # (2Nx, 2Nx)
    return fy2, fx2


def _pick_bz(nz, c, ny, nx, max_unroll=32, max_block_elems=1 << 18):
    """Largest divisor of Nz s.t. unroll count and per-step block size stay bounded."""
    best = 1
    for bz in range(1, nz + 1):
        if nz % bz:
            continue
        if bz * c > max_unroll:
            continue
        if bz * c * ny * nx > max_block_elems:
            continue
        best = bz
    return best


def _sense_forw_kernel(imr_ref, imi_ref, mpr_ref, mpi_ref, mskp_ref,
                       fy2_ref, fx2_ref, out_ref):
    BZ, C, Ny, Nx = mpr_ref.shape

    imr = imr_ref[...]                        # (BZ, Ny, Nx)
    imi = imi_ref[...]
    mpr = mpr_ref[...]                        # (BZ, C, Ny, Nx)
    mpi = mpi_ref[...]

    # maps_forw: s = img * maps (complex), broadcast image over the coil dim.
    sr = imr[:, None, :, :] * mpr - imi[:, None, :, :] * mpi        # (BZ, C, Ny, Nx)
    si = imr[:, None, :, :] * mpi + imi[:, None, :, :] * mpr

    # Row-pack [Sr;Si] once for the whole (BZ*C) batch -> (BZ*C, 2Ny, Nx).
    s2 = jnp.concatenate([sr, si], axis=2).reshape(BZ * C, 2 * Ny, Nx)

    fy2 = fy2_ref[...]                        # (2Ny, 2Ny)
    fx2 = fx2_ref[...]                        # (2Nx, 2Nx)
    prec = jax.lax.Precision.HIGHEST          # Mosaic dot: DEFAULT or HIGHEST only

    # Stage 1 (FFT along y): one packed GEMM per coil-slice, then column re-pack.
    parts = []
    for b in range(BZ * C):
        t2 = jnp.dot(fy2, s2[b], precision=prec,
                     preferred_element_type=jnp.float32)            # (2Ny, Nx) [Tr;Ti]
        parts.append(jnp.concatenate([t2[:Ny, :], t2[Ny:, :]], axis=-1))  # (Ny, 2Nx)
    t_cp = jnp.concatenate(parts, axis=0)                            # (BZ*C*Ny, 2Nx)

    # Stage 2 (FFT along x): a SINGLE column-packed GEMM for all bz*C coil-slices.
    y_cp = jnp.dot(t_cp, fx2, precision=prec,
                   preferred_element_type=jnp.float32)               # (BZ*C*Ny, 2Nx)
    y = y_cp.reshape(BZ, C, Ny, 2 * Nx)

    # mask_forw_3D: mask is pre-duplicated to [m | m] along the packed lane axis.
    out_ref[...] = y * mskp_ref[...][:, None, :, :]


def sense_model_3d_forward(x, maps, mask):
    """
    x    : (1, 2, Nz, Ny, Nx) float32
    maps : (Nz, C, Ny, Nx, 2) float32
    mask : (Nz, 1, Ny, Nx)    float32
    returns (Nz, C, Ny, Nx, 2) float32
    """
    img = jnp.transpose(jnp.squeeze(x, 0), (1, 2, 3, 0))   # (Nz, Ny, Nx, 2)
    Nz, Ny, Nx, _ = img.shape
    C = maps.shape[1]

    # Planar real/imag layouts (done once by XLA outside the kernel).
    imr = img[..., 0]
    imi = img[..., 1]
    mpr = maps[..., 0]                                      # (Nz, C, Ny, Nx)
    mpi = maps[..., 1]
    msk = mask[:, 0]                                        # (Nz, Ny, Nx)
    mskp = jnp.concatenate([msk, msk], axis=-1)             # (Nz, Ny, 2Nx)

    fy2_np, fx2_np = _packed_dft_mats(Ny, Nx)
    fy2 = jnp.asarray(fy2_np)
    fx2 = jnp.asarray(fx2_np)

    bz = _pick_bz(Nz, C, Ny, Nx)
    grid = (Nz // bz,)

    img_spec = pl.BlockSpec((bz, Ny, Nx), lambda z: (z, 0, 0))
    map_spec = pl.BlockSpec((bz, C, Ny, Nx), lambda z: (z, 0, 0, 0))
    msk_spec = pl.BlockSpec((bz, Ny, 2 * Nx), lambda z: (z, 0, 0))
    fy_spec = pl.BlockSpec((2 * Ny, 2 * Ny), lambda z: (0, 0))
    fx_spec = pl.BlockSpec((2 * Nx, 2 * Nx), lambda z: (0, 0))
    out_spec = pl.BlockSpec((bz, C, Ny, 2 * Nx), lambda z: (z, 0, 0, 0))

    # Advisory cost estimate so XLA schedules the surrounding transposes sensibly.
    flops = Nz * (C * 2 * (2 * Ny) * (2 * Ny) * Nx          # stage 1 GEMMs
                  + 2 * (C * Ny) * (2 * Nx) * (2 * Nx)      # stage 2 GEMM
                  + 8 * C * Ny * Nx)                        # elementwise complex mul + mask
    bytes_accessed = 4 * (2 * Nz * Ny * Nx                  # img r/i
                          + 2 * Nz * C * Ny * Nx            # maps r/i
                          + Nz * Ny * 2 * Nx                # packed mask
                          + (2 * Ny) ** 2 + (2 * Nx) ** 2   # DFT matrices
                          + Nz * C * Ny * 2 * Nx)           # packed output

    out_packed = pl.pallas_call(
        _sense_forw_kernel,
        out_shape=jax.ShapeDtypeStruct((Nz, C, Ny, 2 * Nx), jnp.float32),
        grid_spec=pltpu.PrefetchScalarGridSpec(
            num_scalar_prefetch=0,
            grid=grid,
            in_specs=[img_spec, img_spec, map_spec, map_spec, msk_spec,
                      fy_spec, fx_spec],
            out_specs=out_spec,
        ),
        compiler_params=pltpu.CompilerParams(
            dimension_semantics=("parallel",),
            vmem_limit_bytes=48 * 1024 * 1024),
        cost_estimate=pl.CostEstimate(
            flops=flops, transcendentals=0, bytes_accessed=bytes_accessed),
    )(imr, imi, mpr, mpi, mskp, fy2, fx2)

    # Un-pack the [real | imag] lanes into the PyTorch (..., 2) layout once, outside
    # the kernel (keeps all in-kernel stores lane-dense / planar).
    return jnp.stack([out_packed[..., :Nx], out_packed[..., Nx:]], axis=-1)


def _reference(x, maps, mask):
    """Pure-JAX reference using jnp.fft, mirroring the PyTorch code."""
    img = jnp.transpose(jnp.squeeze(x, 0), (1, 2, 3, 0))     # (Nz, Ny, Nx, 2)
    img_c = img[..., 0] + 1j * img[..., 1]
    maps_c = maps[..., 0] + 1j * maps[..., 1]
    s = img_c[:, None, ...] * maps_c                          # (Nz, C, Ny, Nx)
    y = jnp.fft.fft2(s, axes=(-2, -1), norm="ortho")
    y = y * mask.astype(jnp.complex64)                        # (Nz,1,Ny,Nx) broadcasts over C
    return jnp.stack([jnp.real(y), jnp.imag(y)], axis=-1).astype(jnp.float32)


if __name__ == "__main__":
    Nz, C, Ny, Nx = 4, 4, 16, 16

    key = jax.random.PRNGKey(0)
    kx, km, kk = jax.random.split(key, 3)

    x = jax.random.normal(kx, (1, 2, Nz, Ny, Nx), dtype=jnp.float32)
    maps = jax.random.normal(km, (Nz, C, Ny, Nx, 2), dtype=jnp.float32) * 0.5
    mask = (jax.random.uniform(kk, (Nz, 1, Ny, Nx)) > 0.4).astype(jnp.float32)

    out = jax.block_until_ready(sense_model_3d_forward(x, maps, mask))
    ref = jax.block_until_ready(_reference(x, maps, mask))

    assert out.shape == (Nz, C, Ny, Nx, 2), out.shape
    np.testing.assert_allclose(np.asarray(out), np.asarray(ref), rtol=1e-3, atol=1e-3)

    print("KERNEL_OK")
</pallas_src>

<mosaic_0001>
module attributes {stable_mosaic.version = 11 : i64} {
  func.func @_sense_forw_kernel(%arg0: i32, %arg1: memref<4x16x16xf32, #tpu.memory_space<vmem>>, %arg2: memref<4x16x16xf32, #tpu.memory_space<vmem>>, %arg3: memref<4x4x16x16xf32, #tpu.memory_space<vmem>>, %arg4: memref<4x4x16x16xf32, #tpu.memory_space<vmem>>, %arg5: memref<4x16x32xf32, #tpu.memory_space<vmem>>, %arg6: memref<32x32xf32, #tpu.memory_space<vmem>>, %arg7: memref<32x32xf32, #tpu.memory_space<vmem>>, %arg8: memref<4x4x16x32xf32, #tpu.memory_space<vmem>>) attributes {dimension_semantics = [#tpu.dimension_semantics<parallel>], iteration_bounds = array<i64: 1>, scalar_prefetch = 0 : i64, scratch_operands = 0 : i64, tpu.core_type = #tpu.core_type<tc>, window_params = [{transform_indices = @transform_0, window_bounds = array<i64: 4, 16, 16>}, {transform_indices = @transform_1, window_bounds = array<i64: 4, 16, 16>}, {transform_indices = @transform_2, window_bounds = array<i64: 4, 4, 16, 16>}, {transform_indices = @transform_3, window_bounds = array<i64: 4, 4, 16, 16>}, {transform_indices = @transform_4, window_bounds = array<i64: 4, 16, 32>}, {pipeline_mode = #tpu.pipeline_mode<synchronous>, transform_indices = @transform_5, window_bounds = array<i64: 32, 32>}, {pipeline_mode = #tpu.pipeline_mode<synchronous>, transform_indices = @transform_6, window_bounds = array<i64: 32, 32>}, {transform_indices = @transform_7, window_bounds = array<i64: 4, 4, 16, 32>}]} {
    %c0 = arith.constant 0 : index
    %c0_0 = arith.constant 0 : index
    %c0_1 = arith.constant 0 : index
    %0 = vector.load %arg1[%c0, %c0_0, %c0_1] : memref<4x16x16xf32, #tpu.memory_space<vmem>>, vector<4x16x16xf32>
    %c0_2 = arith.constant 0 : index
    %c0_3 = arith.constant 0 : index
    %c0_4 = arith.constant 0 : index
    %1 = vector.load %arg2[%c0_2, %c0_3, %c0_4] : memref<4x16x16xf32, #tpu.memory_space<vmem>>, vector<4x16x16xf32>
    %c0_5 = arith.constant 0 : index
    %c0_6 = arith.constant 0 : index
    %c0_7 = arith.constant 0 : index
    %c0_8 = arith.constant 0 : index
    %2 = vector.load %arg3[%c0_5, %c0_6, %c0_7, %c0_8] : memref<4x4x16x16xf32, #tpu.memory_space<vmem>>, vector<4x4x16x16xf32>
    %c0_9 = arith.constant 0 : index
    %c0_10 = arith.constant 0 : index
    %c0_11 = arith.constant 0 : index
    %c0_12 = arith.constant 0 : index
    %3 = vector.load %arg4[%c0_9, %c0_10, %c0_11, %c0_12] : memref<4x4x16x16xf32, #tpu.memory_space<vmem>>, vector<4x4x16x16xf32>
    %4 = vector.shape_cast %0 : vector<4x16x16xf32> to vector<4x1x16x16xf32>
    %5 = vector.broadcast %4 : vector<4x1x16x16xf32> to vector<4x4x16x16xf32>
    %6 = arith.mulf %5, %2 : vector<4x4x16x16xf32>
    %7 = vector.shape_cast %1 : vector<4x16x16xf32> to vector<4x1x16x16xf32>
    %8 = vector.broadcast %7 : vector<4x1x16x16xf32> to vector<4x4x16x16xf32>
    %9 = arith.mulf %8, %3 : vector<4x4x16x16xf32>
    %10 = arith.subf %6, %9 : vector<4x4x16x16xf32>
    %11 = vector.shape_cast %0 : vector<4x16x16xf32> to vector<4x1x16x16xf32>
    %12 = vector.broadcast %11 : vector<4x1x16x16xf32> to vector<4x4x16x16xf32>
    %13 = arith.mulf %12, %3 : vector<4x4x16x16xf32>
    %14 = vector.shape_cast %1 : vector<4x16x16xf32> to vector<4x1x16x16xf32>
    %15 = vector.broadcast %14 : vector<4x1x16x16xf32> to vector<4x4x16x16xf32>
    %16 = arith.mulf %15, %2 : vector<4x4x16x16xf32>
    %17 = arith.addf %13, %16 : vector<4x4x16x16xf32>
    %18 = tpu.concatenate %10, %17 in 2 : vector<4x4x16x16xf32>, vector<4x4x16x16xf32> -> vector<4x4x32x16xf32>
    %19 = vector.shape_cast %18 : vector<4x4x32x16xf32> to vector<16x32x16xf32>
    %c0_13 = arith.constant 0 : index
    %c0_14 = arith.constant 0 : index
    %20 = vector.load %arg6[%c0_13, %c0_14] : memref<32x32xf32, #tpu.memory_space<vmem>>, vector<32x32xf32>
    %c0_15 = arith.constant 0 : index
    %c0_16 = arith.constant 0 : index
    %21 = vector.load %arg7[%c0_15, %c0_16] : memref<32x32xf32, #tpu.memory_space<vmem>>, vector<32x32xf32>
    %22 = vector.extract_strided_slice %19 {offsets = [0, 0, 0], sizes = [1, 32, 16], strides = [1, 1, 1]} : vector<16x32x16xf32> to vector<1x32x16xf32>
    %23 = vector.shape_cast %22 : vector<1x32x16xf32> to vector<32x16xf32>
    %cst = arith.constant dense<0.000000e+00> : vector<32x16xf32>
    %24 = tpu.matmul %20, %23, %cst {dimension_numbers = #tpu.dot_dimension_numbers<[1], [0], [0], [1], [0, 0, 1, 1], [], []>, precision = #tpu.contract_precision<fp32>} : vector<32x32xf32>, vector<32x16xf32>, vector<32x16xf32> -> vector<32x16xf32>
    %25 = vector.extract_strided_slice %24 {offsets = [0, 0], sizes = [16, 16], strides = [1, 1]} : vector<32x16xf32> to vector<16x16xf32>
    %26 = vector.extract_strided_slice %24 {offsets = [16, 0], sizes = [16, 16], strides = [1, 1]} : vector<32x16xf32> to vector<16x16xf32>
    %27 = tpu.concatenate %25, %26 in 1 : vector<16x16xf32>, vector<16x16xf32> -> vector<16x32xf32>
    %28 = vector.extract_strided_slice %19 {offsets = [1, 0, 0], sizes = [1, 32, 16], strides = [1, 1, 1]} : vector<16x32x16xf32> to vector<1x32x16xf32>
    %29 = vector.shape_cast %28 : vector<1x32x16xf32> to vector<32x16xf32>
    %cst_17 = arith.constant dense<0.000000e+00> : vector<32x16xf32>
    %30 = tpu.matmul %20, %29, %cst_17 {dimension_numbers = #tpu.dot_dimension_numbers<[1], [0], [0], [1], [0, 0, 1, 1], [], []>, precision = #tpu.contract_precision<fp32>} : vector<32x32xf32>, vector<32x16xf32>, vector<32x16xf32> -> vector<32x16xf32>
    %31 = vector.extract_strided_slice %30 {offsets = [0, 0], sizes = [16, 16], strides = [1, 1]} : vector<32x16xf32> to vector<16x16xf32>
    %32 = vector.extract_strided_slice %30 {offsets = [16, 0], sizes = [16, 16], strides = [1, 1]} : vector<32x16xf32> to vector<16x16xf32>
    %33 = tpu.concatenate %31, %32 in 1 : vector<16x16xf32>, vector<16x16xf32> -> vector<16x32xf32>
    %34 = vector.extract_strided_slice %19 {offsets = [2, 0, 0], sizes = [1, 32, 16], strides = [1, 1, 1]} : vector<16x32x16xf32> to vector<1x32x16xf32>
    %35 = vector.shape_cast %34 : vector<1x32x16xf32> to vector<32x16xf32>
    %cst_18 = arith.constant dense<0.000000e+00> : vector<32x16xf32>
    %36 = tpu.matmul %20, %35, %cst_18 {dimension_numbers = #tpu.dot_dimension_numbers<[1], [0], [0], [1], [0, 0, 1, 1], [], []>, precision = #tpu.contract_precision<fp32>} : vector<32x32xf32>, vector<32x16xf32>, vector<32x16xf32> -> vector<32x16xf32>
    %37 = vector.extract_strided_slice %36 {offsets = [0, 0], sizes = [16, 16], strides = [1, 1]} : vector<32x16xf32> to vector<16x16xf32>
    %38 = vector.extract_strided_slice %36 {offsets = [16, 0], sizes = [16, 16], strides = [1, 1]} : vector<32x16xf32> to vector<16x16xf32>
    %39 = tpu.concatenate %37, %38 in 1 : vector<16x16xf32>, vector<16x16xf32> -> vector<16x32xf32>
    %40 = vector.extract_strided_slice %19 {offsets = [3, 0, 0], sizes = [1, 32, 16], strides = [1, 1, 1]} : vector<16x32x16xf32> to vector<1x32x16xf32>
    %41 = vector.shape_cast %40 : vector<1x32x16xf32> to vector<32x16xf32>
    %cst_19 = arith.constant dense<0.000000e+00> : vector<32x16xf32>
    %42 = tpu.matmul %20, %41, %cst_19 {dimension_numbers = #tpu.dot_dimension_numbers<[1], [0], [0], [1], [0, 0, 1, 1], [], []>, precision = #tpu.contract_precision<fp32>} : vector<32x32xf32>, vector<32x16xf32>, vector<32x16xf32> -> vector<32x16xf32>
    %43 = vector.extract_strided_slice %42 {offsets = [0, 0], sizes = [16, 16], strides = [1, 1]} : vector<32x16xf32> to vector<16x16xf32>
    %44 = vector.extract_strided_slice %42 {offsets = [16, 0], sizes = [16, 16], strides = [1, 1]} : vector<32x16xf32> to vector<16x16xf32>
    %45 = tpu.concatenate %43, %44 in 1 : vector<16x16xf32>, vector<16x16xf32> -> vector<16x32xf32>
    %46 = vector.extract_strided_slice %19 {offsets = [4, 0, 0], sizes = [1, 32, 16], strides = [1, 1, 1]} : vector<16x32x16xf32> to vector<1x32x16xf32>
    %47 = vector.shape_cast %46 : vector<1x32x16xf32> to vector<32x16xf32>
    %cst_20 = arith.constant dense<0.000000e+00> : vector<32x16xf32>
    %48 = tpu.matmul %20, %47, %cst_20 {dimension_numbers = #tpu.dot_dimension_numbers<[1], [0], [0], [1], [0, 0, 1, 1], [], []>, precision = #tpu.contract_precision<fp32>} : vector<32x32xf32>, vector<32x16xf32>, vector<32x16xf32> -> vector<32x16xf32>
    %49 = vector.extract_strided_slice %48 {offsets = [0, 0], sizes = [16, 16], strides = [1, 1]} : vector<32x16xf32> to vector<16x16xf32>
    %50 = vector.extract_strided_slice %48 {offsets = [16, 0], sizes = [16, 16], strides = [1, 1]} : vector<32x16xf32> to vector<16x16xf32>
    %51 = tpu.concatenate %49, %50 in 1 : vector<16x16xf32>, vector<16x16xf32> -> vector<16x32xf32>
    %52 = vector.extract_strided_slice %19 {offsets = [5, 0, 0], sizes = [1, 32, 16], strides = [1, 1, 1]} : vector<16x32x16xf32> to vector<1x32x16xf32>
    %53 = vector.shape_cast %52 : vector<1x32x16xf32> to vector<32x16xf32>
    %cst_21 = arith.constant dense<0.000000e+00> : vector<32x16xf32>
    %54 = tpu.matmul %20, %53, %cst_21 {dimension_numbers = #tpu.dot_dimension_numbers<[1], [0], [0], [1], [0, 0, 1, 1], [], []>, precision = #tpu.contract_precision<fp32>} : vector<32x32xf32>, vector<32x16xf32>, vector<32x16xf32> -> vector<32x16xf32>
    %55 = vector.extract_strided_slice %54 {offsets = [0, 0], sizes = [16, 16], strides = [1, 1]} : vector<32x16xf32> to vector<16x16xf32>
    %56 = vector.extract_strided_slice %54 {offsets = [16, 0], sizes = [16, 16], strides = [1, 1]} : vector<32x16xf32> to vector<16x16xf32>
    %57 = tpu.concatenate %55, %56 in 1 : vector<16x16xf32>, vector<16x16xf32> -> vector<16x32xf32>
    %58 = vector.extract_strided_slice %19 {offsets = [6, 0, 0], sizes = [1, 32, 16], strides = [1, 1, 1]} : vector<16x32x16xf32> to vector<1x32x16xf32>
    %59 = vector.shape_cast %58 : vector<1x32x16xf32> to vector<32x16xf32>
    %cst_22 = arith.constant dense<0.000000e+00> : vector<32x16xf32>
    %60 = tpu.matmul %20, %59, %cst_22 {dimension_numbers = #tpu.dot_dimension_numbers<[1], [0], [0], [1], [0, 0, 1, 1], [], []>, precision = #tpu.contract_precision<fp32>} : vector<32x32xf32>, vector<32x16xf32>, vector<32x16xf32> -> vector<32x16xf32>
    %61 = vector.extract_strided_slice %60 {offsets = [0, 0], sizes = [16, 16], strides = [1, 1]} : vector<32x16xf32> to vector<16x16xf32>
    %62 = vector.extract_strided_slice %60 {offsets = [16, 0], sizes = [16, 16], strides = [1, 1]} : vector<32x16xf32> to vector<16x16xf32>
    %63 = tpu.concatenate %61, %62 in 1 : vector<16x16xf32>, vector<16x16xf32> -> vector<16x32xf32>
    %64 = vector.extract_strided_slice %19 {offsets = [7, 0, 0], sizes = [1, 32, 16], strides = [1, 1, 1]} : vector<16x32x16xf32> to vector<1x32x16xf32>
    %65 = vector.shape_cast %64 : vector<1x32x16xf32> to vector<32x16xf32>
    %cst_23 = arith.constant dense<0.000000e+00> : vector<32x16xf32>
    %66 = tpu.matmul %20, %65, %cst_23 {dimension_numbers = #tpu.dot_dimension_numbers<[1], [0], [0], [1], [0, 0, 1, 1], [], []>, precision = #tpu.contract_precision<fp32>} : vector<32x32xf32>, vector<32x16xf32>, vector<32x16xf32> -> vector<32x16xf32>
    %67 = vector.extract_strided_slice %66 {offsets = [0, 0], sizes = [16, 16], strides = [1, 1]} : vector<32x16xf32> to vector<16x16xf32>
    %68 = vector.extract_strided_slice %66 {offsets = [16, 0], sizes = [16, 16], strides = [1, 1]} : vector<32x16xf32> to vector<16x16xf32>
    %69 = tpu.concatenate %67, %68 in 1 : vector<16x16xf32>, vector<16x16xf32> -> vector<16x32xf32>
    %70 = vector.extract_strided_slice %19 {offsets = [8, 0, 0], sizes = [1, 32, 16], strides = [1, 1, 1]} : vector<16x32x16xf32> to vector<1x32x16xf32>
    %71 = vector.shape_cast %70 : vector<1x32x16xf32> to vector<32x16xf32>
    %cst_24 = arith.constant dense<0.000000e+00> : vector<32x16xf32>
    %72 = tpu.matmul %20, %71, %cst_24 {dimension_numbers = #tpu.dot_dimension_numbers<[1], [0], [0], [1], [0, 0, 1, 1], [], []>, precision = #tpu.contract_precision<fp32>} : vector<32x32xf32>, vector<32x16xf32>, vector<32x16xf32> -> vector<32x16xf32>
    %73 = vector.extract_strided_slice %72 {offsets = [0, 0], sizes = [16, 16], strides = [1, 1]} : vector<32x16xf32> to vector<16x16xf32>
    %74 = vector.extract_strided_slice %72 {offsets = [16, 0], sizes = [16, 16], strides = [1, 1]} : vector<32x16xf32> to vector<16x16xf32>
    %75 = tpu.concatenate %73, %74 in 1 : vector<16x16xf32>, vector<16x16xf32> -> vector<16x32xf32>
    %76 = vector.extract_strided_slice %19 {offsets = [9, 0, 0], sizes = [1, 32, 16], strides = [1, 1, 1]} : vector<16x32x16xf32> to vector<1x32x16xf32>
    %77 = vector.shape_cast %76 : vector<1x32x16xf32> to vector<32x16xf32>
    %cst_25 = arith.constant dense<0.000000e+00> : vector<32x16xf32>
    %78 = tpu.matmul %20, %77, %cst_25 {dimension_numbers = #tpu.dot_dimension_numbers<[1], [0], [0], [1], [0, 0, 1, 1], [], []>, precision = #tpu.contract_precision<fp32>} : vector<32x32xf32>, vector<32x16xf32>, vector<32x16xf32> -> vector<32x16xf32>
    %79 = vector.extract_strided_slice %78 {offsets = [0, 0], sizes = [16, 16], strides = [1, 1]} : vector<32x16xf32> to vector<16x16xf32>
    %80 = vector.extract_strided_slice %78 {offsets = [16, 0], sizes = [16, 16], strides = [1, 1]} : vector<32x16xf32> to vector<16x16xf32>
    %81 = tpu.concatenate %79, %80 in 1 : vector<16x16xf32>, vector<16x16xf32> -> vector<16x32xf32>
    %82 = vector.extract_strided_slice %19 {offsets = [10, 0, 0], sizes = [1, 32, 16], strides = [1, 1, 1]} : vector<16x32x16xf32> to vector<1x32x16xf32>
    %83 = vector.shape_cast %82 : vector<1x32x16xf32> to vector<32x16xf32>
    %cst_26 = arith.constant dense<0.000000e+00> : vector<32x16xf32>
    %84 = tpu.matmul %20, %83, %cst_26 {dimension_numbers = #tpu.dot_dimension_numbers<[1], [0], [0], [1], [0, 0, 1, 1], [], []>, precision = #tpu.contract_precision<fp32>} : vector<32x32xf32>, vector<32x16xf32>, vector<32x16xf32> -> vector<32x16xf32>
    %85 = vector.extract_strided_slice %84 {offsets = [0, 0], sizes = [16, 16], strides = [1, 1]} : vector<32x16xf32> to vector<16x16xf32>
    %86 = vector.extract_strided_slice %84 {offsets = [16, 0], sizes = [16, 16], strides = [1, 1]} : vector<32x16xf32> to vector<16x16xf32>
    %87 = tpu.concatenate %85, %86 in 1 : vector<16x16xf32>, vector<16x16xf32> -> vector<16x32xf32>
    %88 = vector.extract_strided_slice %19 {offsets = [11, 0, 0], sizes = [1, 32, 16], strides = [1, 1, 1]} : vector<16x32x16xf32> to vector<1x32x16xf32>
    %89 = vector.shape_cast %88 : vector<1x32x16xf32> to vector<32x16xf32>
    %cst_27 = arith.constant dense<0.000000e+00> : vector<32x16xf32>
    %90 = tpu.matmul %20, %89, %cst_27 {dimension_numbers = #tpu.dot_dimension_numbers<[1], [0], [0], [1], [0, 0, 1, 1], [], []>, precision = #tpu.contract_precision<fp32>} : vector<32x32xf32>, vector<32x16xf32>, vector<32x16xf32> -> vector<32x16xf32>
    %91 = vector.extract_strided_slice %90 {offsets = [0, 0], sizes = [16, 16], strides = [1, 1]} : vector<32x16xf32> to vector<16x16xf32>
    %92 = vector.extract_strided_slice %90 {offsets = [16, 0], sizes = [16, 16], strides = [1, 1]} : vector<32x16xf32> to vector<16x16xf32>
    %93 = tpu.concatenate %91, %92 in 1 : vector<16x16xf32>, vector<16x16xf32> -> vector<16x32xf32>
    %94 = vector.extract_strided_slice %19 {offsets = [12, 0, 0], sizes = [1, 32, 16], strides = [1, 1, 1]} : vector<16x32x16xf32> to vector<1x32x16xf32>
    %95 = vector.shape_cast %94 : vector<1x32x16xf32> to vector<32x16xf32>
    %cst_28 = arith.constant dense<0.000000e+00> : vector<32x16xf32>
    %96 = tpu.matmul %20, %95, %cst_28 {dimension_numbers = #tpu.dot_dimension_numbers<[1], [0], [0], [1], [0, 0, 1, 1], [], []>, precision = #tpu.contract_precision<fp32>} : vector<32x32xf32>, vector<32x16xf32>, vector<32x16xf32> -> vector<32x16xf32>
    %97 = vector.extract_strided_slice %96 {offsets = [0, 0], sizes = [16, 16], strides = [1, 1]} : vector<32x16xf32> to vector<16x16xf32>
    %98 = vector.extract_strided_slice %96 {offsets = [16, 0], sizes = [16, 16], strides = [1, 1]} : vector<32x16xf32> to vector<16x16xf32>
    %99 = tpu.concatenate %97, %98 in 1 : vector<16x16xf32>, vector<16x16xf32> -> vector<16x32xf32>
    %100 = vector.extract_strided_slice %19 {offsets = [13, 0, 0], sizes = [1, 32, 16], strides = [1, 1, 1]} : vector<16x32x16xf32> to vector<1x32x16xf32>
    %101 = vector.shape_cast %100 : vector<1x32x16xf32> to vector<32x16xf32>
    %cst_29 = arith.constant dense<0.000000e+00> : vector<32x16xf32>
    %102 = tpu.matmul %20, %101, %cst_29 {dimension_numbers = #tpu.dot_dimension_numbers<[1], [0], [0], [1], [0, 0, 1, 1], [], []>, precision = #tpu.contract_precision<fp32>} : vector<32x32xf32>, vector<32x16xf32>, vector<32x16xf32> -> vector<32x16xf32>
    %103 = vector.extract_strided_slice %102 {offsets = [0, 0], sizes = [16, 16], strides = [1, 1]} : vector<32x16xf32> to vector<16x16xf32>
    %104 = vector.extract_strided_slice %102 {offsets = [16, 0], sizes = [16, 16], strides = [1, 1]} : vector<32x16xf32> to vector<16x16xf32>
    %105 = tpu.concatenate %103, %104 in 1 : vector<16x16xf32>, vector<16x16xf32> -> vector<16x32xf32>
    %106 = vector.extract_strided_slice %19 {offsets = [14, 0, 0], sizes = [1, 32, 16], strides = [1, 1, 1]} : vector<16x32x16xf32> to vector<1x32x16xf32>
    %107 = vector.shape_cast %106 : vector<1x32x16xf32> to vector<32x16xf32>
    %cst_30 = arith.constant dense<0.000000e+00> : vector<32x16xf32>
    %108 = tpu.matmul %20, %107, %cst_30 {dimension_numbers = #tpu.dot_dimension_numbers<[1], [0], [0], [1], [0, 0, 1, 1], [], []>, precision = #tpu.contract_precision<fp32>} : vector<32x32xf32>, vector<32x16xf32>, vector<32x16xf32> -> vector<32x16xf32>
    %109 = vector.extract_strided_slice %108 {offsets = [0, 0], sizes = [16, 16], strides = [1, 1]} : vector<32x16xf32> to vector<16x16xf32>
    %110 = vector.extract_strided_slice %108 {offsets = [16, 0], sizes = [16, 16], strides = [1, 1]} : vector<32x16xf32> to vector<16x16xf32>
    %111 = tpu.concatenate %109, %110 in 1 : vector<16x16xf32>, vector<16x16xf32> -> vector<16x32xf32>
    %112 = vector.extract_strided_slice %19 {offsets = [15, 0, 0], sizes = [1, 32, 16], strides = [1, 1, 1]} : vector<16x32x16xf32> to vector<1x32x16xf32>
    %113 = vector.shape_cast %112 : vector<1x32x16xf32> to vector<32x16xf32>
    %cst_31 = arith.constant dense<0.000000e+00> : vector<32x16xf32>
    %114 = tpu.matmul %20, %113, %cst_31 {dimension_numbers = #tpu.dot_dimension_numbers<[1], [0], [0], [1], [0, 0, 1, 1], [], []>, precision = #tpu.contract_precision<fp32>} : vector<32x32xf32>, vector<32x16xf32>, vector<32x16xf32> -> vector<32x16xf32>
    %115 = vector.extract_strided_slice %114 {offsets = [0, 0], sizes = [16, 16], strides = [1, 1]} : vector<32x16xf32> to vector<16x16xf32>
    %116 = vector.extract_strided_slice %114 {offsets = [16, 0], sizes = [16, 16], strides = [1, 1]} : vector<32x16xf32> to vector<16x16xf32>
    %117 = tpu.concatenate %115, %116 in 1 : vector<16x16xf32>, vector<16x16xf32> -> vector<16x32xf32>
    %118 = tpu.concatenate %27, %33, %39, %45, %51, %57, %63, %69, %75, %81, %87, %93, %99, %105, %111, %117 in 0 : vector<16x32xf32>, vector<16x32xf32>, vector<16x32xf32>, vector<16x32xf32>, vector<16x32xf32>, vector<16x32xf32>, vector<16x32xf32>, vector<16x32xf32>, vector<16x32xf32>, vector<16x32xf32>, vector<16x32xf32>, vector<16x32xf32>, vector<16x32xf32>, vector<16x32xf32>, vector<16x32xf32>, vector<16x32xf32> -> vector<256x32xf32>
    %cst_32 = arith.constant dense<0.000000e+00> : vector<256x32xf32>
    %119 = tpu.matmul %118, %21, %cst_32 {dimension_numbers = #tpu.dot_dimension_numbers<[1], [0], [0], [1], [0, 0, 1, 1], [], []>, precision = #tpu.contract_precision<fp32>} : vector<256x32xf32>, vector<32x32xf32>, vector<256x32xf32> -> vector<256x32xf32>
    %120 = vector.shape_cast %119 : vector<256x32xf32> to vector<4x4x16x32xf32>
    %c0_33 = arith.constant 0 : index
    %c0_34 = arith.constant 0 : index
    %c0_35 = arith.constant 0 : index
    %121 = vector.load %arg5[%c0_33, %c0_34, %c0_35] : memref<4x16x32xf32, #tpu.memory_space<vmem>>, vector<4x16x32xf32>
    %122 = vector.shape_cast %121 : vector<4x16x32xf32> to vector<4x1x16x32xf32>
    %123 = vector.broadcast %122 : vector<4x1x16x32xf32> to vector<4x4x16x32xf32>
    %124 = arith.mulf %120, %123 : vector<4x4x16x32xf32>
    %c0_36 = arith.constant 0 : index
    %c0_37 = arith.constant 0 : index
    %c0_38 = arith.constant 0 : index
    %c0_39 = arith.constant 0 : index
    %125 = vector.load %arg8[%c0_36, %c0_37, %c0_38, %c0_39] : memref<4x4x16x32xf32, #tpu.memory_space<vmem>>, vector<4x4x16x32xf32>
    tpu.vector_store %arg8[%c0_36, %c0_37, %c0_38, %c0_39], %124 {strides = array<i32>} : memref<4x4x16x32xf32, #tpu.memory_space<vmem>>, vector<4x4x16x32xf32>,
    return
  }
  func.func @transform_0(%arg0: i32) -> (i32, i32, i32) {
    %c0_i32 = arith.constant 0 : i32
    %c0_i32_0 = arith.constant 0 : i32
    %c0_i32_1 = arith.constant 0 : i32
    return %arg0, %c0_i32, %c0_i32_0 : i32, i32, i32
  }
  func.func @transform_1(%arg0: i32) -> (i32, i32, i32) {
    %c0_i32 = arith.constant 0 : i32
    %c0_i32_0 = arith.constant 0 : i32
    %c0_i32_1 = arith.constant 0 : i32
    return %arg0, %c0_i32, %c0_i32_0 : i32, i32, i32
  }
  func.func @transform_2(%arg0: i32) -> (i32, i32, i32, i32) {
    %c0_i32 = arith.constant 0 : i32
    %c0_i32_0 = arith.constant 0 : i32
    %c0_i32_1 = arith.constant 0 : i32
    %c0_i32_2 = arith.constant 0 : i32
    return %arg0, %c0_i32, %c0_i32_0, %c0_i32_1 : i32, i32, i32, i32
  }
  func.func @transform_3(%arg0: i32) -> (i32, i32, i32, i32) {
    %c0_i32 = arith.constant 0 : i32
    %c0_i32_0 = arith.constant 0 : i32
    %c0_i32_1 = arith.constant 0 : i32
    %c0_i32_2 = arith.constant 0 : i32
    return %arg0, %c0_i32, %c0_i32_0, %c0_i32_1 : i32, i32, i32, i32
  }
  func.func @transform_4(%arg0: i32) -> (i32, i32, i32) {
    %c0_i32 = arith.constant 0 : i32
    %c0_i32_0 = arith.constant 0 : i32
    %c0_i32_1 = arith.constant 0 : i32
    return %arg0, %c0_i32, %c0_i32_0 : i32, i32, i32
  }
  func.func @transform_5(%arg0: i32) -> (i32, i32) {
    %c0_i32 = arith.constant 0 : i32
    %c0_i32_0 = arith.constant 0 : i32
    %c0_i32_1 = arith.constant 0 : i32
    return %c0_i32, %c0_i32_0 : i32, i32
  }
  func.func @transform_6(%arg0: i32) -> (i32, i32) {
    %c0_i32 = arith.constant 0 : i32
    %c0_i32_0 = arith.constant 0 : i32
    %c0_i32_1 = arith.constant 0 : i32
    return %c0_i32, %c0_i32_0 : i32, i32
  }
  func.func @transform_7(%arg0: i32) -> (i32, i32, i32, i32) {
    %c0_i32 = arith.constant 0 : i32
    %c0_i32_0 = arith.constant 0 : i32
    %c0_i32_1 = arith.constant 0 : i32
    %c0_i32_2 = arith.constant 0 : i32
    return %arg0, %c0_i32, %c0_i32_0, %c0_i32_1 : i32, i32, i32, i32
  }
}

</mosaic_0001>

<bundles_post_ra>
// kernel: tpu_custom_call.1
= control target key start
LH: loop header
LB: loop body
LE: loop exit
PB: predicated region body
PF: predicated region fallthrough
CT: control target
= control target key end

     0   :  { %12 = vsyncpa [#allocation3], 0  ;;  %s9103_s0 = inlined_call_operand.hbm [shape: f32[4,16,16], index: 0, kind: input, shape index: {}]   ;;  %s9104_s1 = inlined_call_operand.hbm [shape: f32[4,16,16], index: 1, kind: input, shape index: {}]   ;;  %s9105_s2 = inlined_call_operand.hbm [shape: f32[4,4,16,16], index: 2, kind: input, shape index: {}]   ;;  %s9106_s3 = inlined_call_operand.hbm [shape: f32[4,4,16,16], index: 3, kind: input, shape index: {}]   ;;  %s9107_s4 = inlined_call_operand.hbm [shape: f32[4,16,32], index: 4, kind: input, shape index: {}]   ;;  %s9108_s5 = inlined_call_operand.hbm [shape: f32[32,32], index: 5, kind: input, shape index: {}]   ;;  %s9109_s6 = inlined_call_operand.hbm [shape: f32[32,32], index: 6, kind: input, shape index: {}]   ;;  %s9110_s7 = inlined_call_operand.hbm [shape: f32[4,4,16,32], index: 7, kind: output, shape index: {}]  }
   0x1   :  { %13 = vsyncpa [#allocation6], 0 }
   0x2   :  { %14 = vsyncpa [#allocation9], 0 }
   0x3   :  { %15 = vsyncpa [#allocation12], 0 }
   0x4   :  { %16 = vsyncpa [#allocation4], 0  ;;  %s34_s26 = sshll.u32 %s9104_s1, 4  ;;  %s6595_s27 = smov [#allocation5]   ;;  %s35_s26 = int_to_ptr.hbm [resolvable:$true] %s34_s26 }
   0x5   :  { %s36_s28 = sshll.u32 %s6595_s27, 4  ;;  %s60_s8 = sshll.u32 %s9106_s3, 4  ;;  %s37_s28 = int_to_ptr.vmem [resolvable:$true] %s36_s28  ;;  %s61_s8 = int_to_ptr.hbm [resolvable:$true] %s60_s8 }
   0x6   :  { %s6596_s9 = smov 128   ;;  %s6597_s10 = smov 8  }
   0x7   :  { %42 = dma.hbm_to_vmem [thread:$0]  %s35_s26, 1024, %s37_s28, [#allocation6], %s6596_s9, %s6596_s9, %s6597_s10  }
   0x8   :  { %s6598_s11 = smov [#allocation8]   ;;  %s86_s1 = sshll.u32 %s9108_s5, 4  ;;  %s87_s1 = int_to_ptr.hbm [resolvable:$true] %s86_s1 }
   0x9   :  { %s62_s12 = sshll.u32 %s6598_s11, 4  ;;  %s21_s16 = sshll.u32 %s9103_s0, 4  ;;  %s63_s12 = int_to_ptr.vmem [resolvable:$true] %s62_s12  ;;  %s22_s16 = int_to_ptr.hbm [resolvable:$true] %s21_s16 }
   0xa   :  { %68 = dma.hbm_to_vmem [thread:$0]  %s61_s8, 4096, %s63_s12, [#allocation9], %s6596_s9, %s6596_s9, %s6597_s10  }
   0xb   :  { %s6599_s17 = smov [#allocation11]   ;;  %s6600_s19 = smov [#allocation2]  }
   0xc   :  { %s88_s18 = sshll.u32 %s6599_s17, 4  ;;  %s23_s5 = sshll.u32 %s6600_s19, 4  ;;  %s89_s18 = int_to_ptr.vmem [resolvable:$true] %s88_s18  ;;  %s24_s5 = int_to_ptr.vmem [resolvable:$true] %s23_s5 }
   0xd   :  { %94 = dma.hbm_to_vmem [thread:$0]  %s87_s1, 512, %s89_s18, [#allocation12], %s6596_s9, %s6596_s9, %s6597_s10  }
   0xe   :  { %s47_s22 = sshll.u32 %s9105_s2, 4  ;;  %s73_s24 = sshll.u32 %s9107_s4, 4  ;;  %s48_s22 = int_to_ptr.hbm [resolvable:$true] %s47_s22  ;;  %s74_s24 = int_to_ptr.hbm [resolvable:$true] %s73_s24 }
   0xf   :  { %29 = dma.hbm_to_vmem [thread:$0]  %s22_s16, 1024, %s24_s5, [#allocation3], %s6596_s9, %s6596_s9, %s6597_s10  }
  0x10   :  { %s6601_s25 = smov [#allocation7]   ;;  %s6602_s27 = smov [#allocation10]  }
  0x11   :  { %s49_s26 = sshll.u32 %s6601_s25, 4  ;;  %s75_s2 = sshll.u32 %s6602_s27, 4  ;;  %s50_s26 = int_to_ptr.vmem [resolvable:$true] %s49_s26  ;;  %s76_s2 = int_to_ptr.vmem [resolvable:$true] %s75_s2 }
  0x12   :  { %55 = dma.hbm_to_vmem [thread:$0]  %s48_s22, 4096, %s50_s26, [#allocation6], %s6596_s9, %s6596_s9, %s6597_s10  }
  0x13   :  { %s99_s30 = sshll.u32 %s9109_s6, 4  ;;  %s6603_s4 = smov [#allocation13]   ;;  %s100_s30 = int_to_ptr.hbm [resolvable:$true] %s99_s30 }
  0x14   :  { %81 = dma.hbm_to_vmem [thread:$0]  %s74_s24, 1024, %s76_s2, [#allocation9], %s6596_s9, %s6596_s9, %s6597_s10  }
  0x15   :  { %s101_s8 = sshll.u32 %s6603_s4, 4  ;;  %s102_s8 = int_to_ptr.vmem [resolvable:$true] %s101_s8 }
  0x16   :  { %107 = dma.hbm_to_vmem [thread:$0]  %s100_s30, 512, %s102_s8, [#allocation12], %s6596_s9, %s6596_s9, %s6597_s10  }
  0x17   :  { %6585 = dma.done.wait [#allocation3], 1024  }
  0x18   :  { %6586 = vsyncadd [#allocation3], 4294966272 }
  0x19   :  { %6587 = dma.done.wait [#allocation6], 5120  }
  0x1a   :  { %6588 = vsyncadd [#allocation6], 4294962176 }
  0x1b   :  { %6589 = dma.done.wait [#allocation9], 5120  }
  0x1c   :  { %6590 = vsyncadd [#allocation9], 4294962176 }
  0x1d   :  { %6591 = dma.done.wait [#allocation12], 1024  }
  0x1e   :  { %6592 = vsyncadd [#allocation12], 4294966272  ;;  %v6688_v0 = vld [vmem:[#allocation2 + $0x8] sm:$0xff]  ;;  %v6693_v5 = vld [vmem:[#allocation2] sm:$0xff]  ;;  %vm416_vm0 = vcmask 261120   ;;  %s6604_s6 = smov 16  }
  0x1f   :  { %v6690_v1 = vld [vmem:[#allocation5 + $0x8] sm:$0xff]  ;;  %v6695_v6 = vld [vmem:[#allocation5] sm:$0xff]  ;;  %v6704_v17 = vld [vmem:[#allocation7 + $0x18] sm:$0xff]  ;;  %vm715_vm1 = vcmask 130048   ;;  %s6605_s11 = smov [#allocation14]   ;;  %s6358_s1 = sshll.u32 %s9110_s7, 4  ;;  %s6359_s1 = int_to_ptr.hbm [resolvable:$true] %s6358_s1 }
  0x20   :  { %v153_v2 = vld [vmem:[#allocation7 + $0x8] sm:$0xff]  ;;  %v152_v9 = vld [vmem:[#allocation7] sm:$0xff]  ;;  %v6706_v18 = vld [vmem:[#allocation8 + $0x18] sm:$0xff]  ;;  %v347_v28 = vmul.f32 %v6704_v17, %v6690_v1  ;;  %s6356_s12 = sshll.u32 %s6605_s11, 4  ;;  %s6357_s12 = int_to_ptr.vmem [resolvable:$true] %s6356_s12 }
  0x21   :  { %v185_v3 = vld [vmem:[#allocation8 + $0x8] sm:$0xff]  ;;  %v345_v4 = vmul.f32 %v153_v2, %v6690_v1  ;;  %v217_v7 = vmul.f32 %v153_v2, %v6688_v0  ;;  %v184_v10 = vld [vmem:[#allocation8] sm:$0xff]  ;;  %v344_v14 = vmul.f32 %v152_v9, %v6695_v6  ;;  %v216_v15 = vmul.f32 %v152_v9, %v6693_v5  ;;  %v6711_v24 = vld [vmem:[#allocation8 + $0x10] sm:$0xff] }
  0x22   :  { %v313_v8 = vmul.f32 %v185_v3, %v6688_v0  ;;  %v249_v11 = vmul.f32 %v185_v3, %v6690_v1  ;;  %v408_v12 = vld [vmem:[#allocation11] sm:$0xff]  ;;  %v312_v13 = vmul.f32 %v184_v10, %v6693_v5  ;;  %v248_v16 = vmul.f32 %v184_v10, %v6695_v6  ;;  %v409_v19 = vld [vmem:[#allocation11 + $0x8] sm:$0xff]  ;;  %v6717_v29 = vld [vmem:[#allocation7 + $0x10] sm:$0xff] }
  0x23   :  { %v418_v22 = vsel %vm416_vm0, %v408_v12, 0  ;;  %v315_v23 = vmul.f32 %v6706_v18, %v6688_v0  ;;  %v421_v32 = vsel %vm416_vm0, %v409_v19, 0  ;;  %v314_v33 = vmul.f32 %v6711_v24, %v6693_v5  ;;  %v410_v58 = vld [vmem:[#allocation11 + $0x10] sm:$0xff]  ;;  %v411_v3 = vld [vmem:[#allocation11 + $0x18] sm:$0xff] }
  0x24   :  { %v377_v20 = vadd.f32 %v345_v4, %v313_v8  ;;  %v281_v21 = vsub.f32 %v217_v7, %v249_v11  ;;  %v376_v25 = vadd.f32 %v344_v14, %v312_v13  ;;  %v280_v26 = vsub.f32 %v216_v15, %v248_v16 }
  0x25   :  { %v6713_v27 = vand.u32 4294901760, %v418_v22  ;;  %v379_v37 = vadd.f32 %v347_v28, %v315_v23  ;;  %v6739_v40 = vand.u32 4294901760, %v421_v32  ;;  %v346_v41 = vmul.f32 %v6717_v29, %v6695_v6 }
  0x26   :  { %v6719_v30 = vand.u32 4294901760, %v377_v20  ;;  %v6721_v31 = vand.u32 4294901760, %v281_v21  ;;  %v6726_v34 = vand.u32 4294901760, %v376_v25  ;;  %v6728_v35 = vand.u32 4294901760, %v280_v26 }
  0x27   :  { %v6731_v36 = vsub.f32 %v418_v22, %v6713_v27  ;;  %v6750_v45 = vand.u32 4294901760, %v379_v37  ;;  %v6755_v48 = vsub.f32 %v421_v32, %v6739_v40  ;;  %v378_v49 = vadd.f32 %v346_v41, %v314_v33 }
  0x28   :  { %442 = vmatpush.msra.mxu0 %v6719_v30  ;;  %593 = vmatpush.msra.mxu3 %v6719_v30  ;;  %v495_v38 = vsub.f32 %v377_v20, %v6719_v30  ;;  %v6737_v39 = vsub.f32 %v281_v21, %v6721_v31  ;;  %v501_v42 = vsub.f32 %v376_v25, %v6726_v34  ;;  %v424_v9 = vsel %vm416_vm0, %v410_v58, 0  ;;  %v188_v58 = vld [vmem:[#allocation8 + $0x20] sm:$0xff] }
  0x29   :  { %v6745_v43 = vand.u32 4294901760, %v6731_v36  ;;  %v6748_v44 = vsub.f32 %v280_v26, %v6728_v35  ;;  %v6761_v52 = vsub.f32 %v379_v37, %v6750_v45  ;;  %v6769_v56 = vand.u32 4294901760, %v6755_v48 }
  0x2a   :  { %444 = vmatpush.msra.mxu0 %v6726_v34  ;;  %549 = vmatpush.msra.mxu2 %v495_v38  ;;  %v496_v46 = vand.u32 4294901760, %v495_v38  ;;  %v508_v47 = vand.u32 4294901760, %v6737_v39  ;;  %v502_v51 = vand.u32 4294901760, %v501_v42  ;;  %v6771_v57 = vand.u32 4294901760, %v378_v49 }
  0x2b   :  { %595 = vmatpush.msra.mxu3 %v6726_v34  ;;  %v452_v50 = vsub.f32 %v6731_v36, %v6745_v43  ;;  %v514_v53 = vand.u32 4294901760, %v6748_v44  ;;  %v785_v61 = vand.u32 4294901760, %v6761_v52  ;;  %v460_v8 = vsub.f32 %v6755_v48, %v6769_v56 }
  0x2c   :  { %446 = vmatpush.msra.mxu0 %v6721_v31  ;;  %552 = vmatpush.msra.mxu2 %v501_v42  ;;  %v497_v54 = vsub.f32 %v495_v38, %v496_v46  ;;  %v509_v55 = vsub.f32 %v6737_v39, %v508_v47  ;;  %v503_v60 = vsub.f32 %v501_v42, %v502_v51  ;;  %v6795_v12 = vand.u32 4294901760, %v424_v9 }
  0x2d   :  { %597 = vmatpush.msra.mxu3 %v6721_v31  ;;  %v6774_v59 = vand.u32 4294901760, %v452_v50  ;;  %v515_v63 = vsub.f32 %v6748_v44, %v514_v53  ;;  %v6783_v2 = vsub.f32 %v378_v49, %v6771_v57  ;;  %v786_v7 = vsub.f32 %v6761_v52, %v785_v61 }
  0x2e   :  { %448 = vmatpush.msra.mxu0 %v6728_v35  ;;  %555 = vmatpush.msra.mxu2 %v6737_v39  ;;  %v498_v62 = vand.u32 4294901760, %v497_v54  ;;  %v504_v4 = vand.u32 4294901760, %v503_v60  ;;  %v510_v10 = vand.u32 4294901760, %v509_v55  ;;  %v219_v13 = vmul.f32 %v6704_v17, %v6688_v0 }
  0x2f   :  { %599 = vmatpush.msra.mxu3 %v6728_v35  ;;  %454 = vmatmul.f32.vlgmr.msra.gmra.mxu0 %v6774_v59  ;;  %v791_v11 = vand.u32 4294901760, %v6783_v2  ;;  %v787_v14 = vand.u32 4294901760, %v786_v7  ;;  %v251_v15 = vmul.f32 %v6706_v18, %v6690_v1  ;;  %v427_v16 = vsel %vm416_vm0, %v411_v3, 0 }
  0x30   :  { %603 = vmatmul.f32.vlgmr.msra.gmra.mxu3 %v6745_v43  ;;  %499 = vmatpush.msra.mxu1 %v498_v62  ;;  %v218_v19 = vmul.f32 %v6717_v29, %v6693_v5  ;;  %v516_v20 = vand.u32 4294901760, %v515_v63  ;;  %v6808_v17 = vsub.f32 %v424_v9, %v6795_v12  ;;  %v250_v22 = vmul.f32 %v6711_v24, %v6695_v6 }
  0x31   :  { %558 = vmatpush.msra.mxu2 %v6748_v44  ;;  %640 = vmatpush.msrb.mxu0 %v496_v46  ;;  %v792_v21 = vsub.f32 %v6783_v2, %v791_v11  ;;  %v6813_v18 = vand.u32 4294901760, %v460_v8  ;;  %v283_v23 = vsub.f32 %v219_v13, %v251_v15  ;;  %v6815_v25 = vand.u32 4294901760, %v427_v16 }
  0x32   :  { %561 = vmatmul.f32.vlgmr.msra.gmra.mxu2 %v6731_v36  ;;  %505 = vmatpush.msra.mxu1 %v504_v4  ;;  %v6818_v28 = vand.u32 4294901760, %v6808_v17  ;;  %v282_v29 = vsub.f32 %v218_v19, %v250_v22 }
  0x33   :  { %731 = vmatpush.msrb.mxu2 %v6750_v45  ;;  %788 = vmatpush.msrb.mxu3 %v787_v14  ;;  %v793_v26 = vand.u32 4294901760, %v792_v21  ;;  %v734_v32 = vand.u32 4294901760, %v283_v23  ;;  %v6826_v38 = vsub.f32 %v427_v16, %v6815_v25 }
  0x34   :  { %511 = vmatpush.msra.mxu1 %v510_v10  ;;  %644 = vmatpush.msrb.mxu0 %v502_v51  ;;  %v736_v24 = vand.u32 4294901760, %v282_v29  ;;  %v468_v33 = vsub.f32 %v6808_v17, %v6818_v28 }
  0x35   :  { %733 = vmatpush.msrb.mxu2 %v6771_v57  ;;  %794 = vmatpush.msrb.mxu3 %v793_v26  ;;  %v796_v37 = vsub.f32 %v283_v23, %v734_v32  ;;  %v6837_v51 = vand.u32 4294901760, %v6826_v38 }
  0x36   :  { %517 = vmatpush.msra.mxu1 %v516_v20  ;;  %v802_v41 = vsub.f32 %v282_v29, %v736_v24  ;;  %648 = vmatpush.msrb.mxu0 %v508_v47  ;;  %v6834_v49 = vand.u32 4294901760, %v468_v33  ;;  %v252_v20 = vmul.f32 %v188_v58, %v6695_v6  ;;  %v159_v33 = vld [vmem:[#allocation7 + $0x38] sm:$0xff] }
  0x37   :  { %462 = vmatmul.f32.gmra.mxu0 %v6813_v18  ;;  %519 = vmatmul.f32.vlgmr.msra.gmra.mxu1 %v6713_v27  ;;  %v797_v42 = vand.u32 4294901760, %v796_v37 }
  0x38   :  { %609 = vmatmul.f32.gmra.mxu3 %v6769_v56  ;;  %683 = vmatpush.msrb.mxu1 %v6719_v30  ;;  %v803_v46 = vand.u32 4294901760, %v802_v41 }
  0x39   :  { %735 = vmatpush.msrb.mxu2 %v734_v32  ;;  %v798_v50 = vsub.f32 %v796_v37, %v797_v42  ;;  %652 = vmatpush.msrb.mxu0 %v514_v53 }
  0x3a   :  { %566 = vmatmul.f32.gmra.mxu2 %v6755_v48  ;;  %685 = vmatpush.msrb.mxu1 %v6726_v34  ;;  %v804_v30 = vsub.f32 %v802_v41, %v803_v46  ;;  %v476_v34 = vsub.f32 %v6826_v38, %v6837_v51 }
  0x3b   :  { %737 = vmatpush.msrb.mxu2 %v736_v24  ;;  %v799_v39 = vand.u32 4294901760, %v798_v50  ;;  %838 = vmatpush.msra.mxu0 %v6761_v52 }
  0x3c   :  { %687 = vmatpush.msrb.mxu1 %v6721_v31  ;;  %v805_v44 = vand.u32 4294901760, %v804_v30  ;;  %v6855_v31 = vand.u32 4294901760, %v476_v34 }
  0x3d   :  { %929 = vmatpush.msra.mxu2 %v785_v61  ;;  %800 = vmatpush.msrb.mxu3 %v799_v39  ;;  %v316_v61 = vmul.f32 %v188_v58, %v6693_v5  ;;  %v223_v58 = vmul.f32 %v159_v33, %v6688_v0 }
  0x3e   :  { %689 = vmatpush.msrb.mxu1 %v6728_v35  ;;  %841 = vmatpush.msra.mxu0 %v6783_v2  ;;  %v157_v35 = vld [vmem:[#allocation7 + $0x28] sm:$0xff] }
  0x3f   :  { %933 = vmatpush.msra.mxu2 %v791_v11  ;;  %470 = vmatmul.f32.gmra.mxu0 %v6834_v49  ;;  %v349_v52 = vmul.f32 %v157_v35, %v6690_v1  ;;  %v221_v8 = vmul.f32 %v157_v35, %v6688_v0  ;;  %v190_v35 = vld [vmem:[#allocation8 + $0x30] sm:$0xff] }
  0x40   :  { %523 = vmatmul.f32.gmra.mxu1 %v6739_v40  ;;  %615 = vmatmul.f32.gmra.mxu3 %v6818_v28 }
  0x41   :  { %882 = vmatpush.msra.mxu1 %v6750_v45  ;;  %806 = vmatpush.msrb.mxu3 %v805_v44  ;;  %v158_v44 = vld [vmem:[#allocation7 + $0x30] sm:$0xff] }
  0x42   :  { %571 = vmatmul.f32.gmra.mxu2 %v6808_v17  ;;  %844 = vmatpush.msra.mxu0 %v796_v37  ;;  %v191_v37 = vld [vmem:[#allocation8 + $0x38] sm:$0xff] }
  0x43   :  { %884 = vmatpush.msra.mxu1 %v6771_v57  ;;  %937 = vmatpush.msra.mxu2 %v797_v42  ;;  %v319_v42 = vmul.f32 %v191_v37, %v6688_v0 }
  0x44   :  { %972 = vmatpush.msra.mxu3 %v6750_v45  ;;  %847 = vmatpush.msra.mxu0 %v802_v41  ;;  %v189_v45 = vld [vmem:[#allocation8 + $0x28] sm:$0xff] }
  0x45   :  { %886 = vmatpush.msra.mxu1 %v734_v32  ;;  %941 = vmatpush.msra.mxu2 %v803_v46  ;;  %v317_v47 = vmul.f32 %v189_v45, %v6688_v0  ;;  %v253_v9 = vmul.f32 %v189_v45, %v6690_v1  ;;  %v351_v46 = vmul.f32 %v159_v33, %v6690_v1 }
  0x46   :  { %974 = vmatpush.msra.mxu3 %v6771_v57  ;;  %v156_v57 = vld [vmem:[#allocation7 + $0x20] sm:$0xff] }
  0x47   :  { %478 = vmatmul.f32.gmra.mxu0 %v6855_v31  ;;  %888 = vmatpush.msra.mxu1 %v736_v24  ;;  %v381_v53 = vadd.f32 %v349_v52, %v317_v47  ;;  %v348_v62 = vmul.f32 %v156_v57, %v6695_v6  ;;  %v285_v11 = vsub.f32 %v221_v8, %v253_v9 }
  0x48   :  { %527 = vmatmul.f32.gmra.mxu1 %v6795_v12  ;;  %621 = vmatmul.f32.gmra.mxu3 %v6837_v51  ;;  %v220_v19 = vmul.f32 %v156_v57, %v6693_v5  ;;  %v383_v30 = vadd.f32 %v351_v46, %v319_v42  ;;  %v318_v47 = vmul.f32 %v190_v35, %v6693_v5 }
  0x49   :  { %976 = vmatpush.msra.mxu3 %v734_v32  ;;  %v6871_v54 = vand.u32 4294901760, %v381_v53  ;;  %v380_v2 = vadd.f32 %v348_v62, %v316_v61  ;;  %v1022_v14 = vand.u32 4294901760, %v285_v11  ;;  %v350_v52 = vmul.f32 %v158_v44, %v6695_v6 }
  0x4a   :  { %576 = vmatmul.f32.gmra.mxu2 %v6826_v38  ;;  %v284_v22 = vsub.f32 %v220_v19, %v252_v20  ;;  %v6905_v39 = vand.u32 4294901760, %v383_v30  ;;  %v6949_v20 = vld [vmem:[#allocation2 + $0x18] sm:$0xff] }
  0x4b   :  { %978 = vmatpush.msra.mxu3 %v736_v24  ;;  %v1072_v55 = vsub.f32 %v381_v53, %v6871_v54  ;;  %v6882_v4 = vand.u32 4294901760, %v380_v2  ;;  %v1084_v16 = vsub.f32 %v285_v11, %v1022_v14 }
  0x4c   :  { %v1024_v26 = vand.u32 4294901760, %v284_v22  ;;  %v1360_v34 = vsub.f32 %v383_v30, %v6905_v39 }
  0x4d   :  { %v1073_v60 = vand.u32 4294901760, %v1072_v55  ;;  %v1078_v7 = vsub.f32 %v380_v2, %v6882_v4  ;;  %v1085_v21 = vand.u32 4294901760, %v1084_v16  ;;  %v254_v2 = vmul.f32 %v190_v35, %v6695_v6  ;;  %v160_v35 = vld [vmem:[#allocation7 + $0x40] sm:$0xff] }
  0x4e   :  { %v1090_v32 = vsub.f32 %v284_v22, %v1024_v26  ;;  %v1361_v45 = vand.u32 4294901760, %v1360_v34  ;;  %v161_v22 = vld [vmem:[#allocation7 + $0x48] sm:$0xff] }
  0x4f   :  { %654 = vmatmul.f32.vlgmr.msrb.gmra.mxu0 %v6713_v27  ;;  %v1074_v63 = vsub.f32 %v1072_v55, %v1073_v60  ;;  %v1079_v10 = vand.u32 4294901760, %v1078_v7  ;;  %v1086_v23 = vsub.f32 %v1084_v16, %v1085_v21 }
  0x50   :  { %531 = vmatmul.f32.gmra.mxu1 %v6815_v25  ;;  %808 = vmatmul.f32.vlgmr.msrb.gmra.mxu3 %v6713_v27  ;;  %v1091_v24 = vand.u32 4294901760, %v1090_v32  ;;  %v1362_v53 = vsub.f32 %v1360_v34, %v1361_v45 }
  0x51   :  { %1019 = vmatpush.msrb.mxu0 %v6871_v54  ;;  %1170 = vmatpush.msrb.mxu3 %v6871_v54  ;;  %v1075_v3 = vand.u32 4294901760, %v1074_v63  ;;  %v1080_v13 = vsub.f32 %v1078_v7, %v1079_v10  ;;  %v1087_v29 = vand.u32 4294901760, %v1086_v23  ;;  %v222_v63 = vmul.f32 %v158_v44, %v6693_v5  ;;  %v6970_v44 = vld [vmem:[#allocation5 + $0x10] sm:$0xff] }
  0x52   :  { %743 = vmatmul.f32.vlgmr.msrb.gmra.mxu2 %v6774_v59  ;;  %v1092_v41 = vsub.f32 %v1090_v32, %v1091_v24 }
  0x53   :  { %1126 = vmatpush.msrb.mxu2 %v1072_v55  ;;  %1021 = vmatpush.msrb.mxu0 %v6882_v4  ;;  %v1081_v15 = vand.u32 4294901760, %v1080_v13  ;;  %v382_v55 = vadd.f32 %v350_v52, %v318_v47  ;;  %v192_v52 = vld [vmem:[#allocation8 + $0x40] sm:$0xff] }
  0x54   :  { %1172 = vmatpush.msrb.mxu3 %v6882_v4  ;;  %v1093_v50 = vand.u32 4294901760, %v1092_v41 }
  0x55   :  { %1129 = vmatpush.msrb.mxu2 %v1078_v7  ;;  %1023 = vmatpush.msrb.mxu0 %v1022_v14  ;;  %v1308_v57 = vand.u32 4294901760, %v382_v55  ;;  %v286_v7 = vsub.f32 %v222_v63, %v254_v2 }
  0x56   :  { %1174 = vmatpush.msrb.mxu3 %v1022_v14 }
  0x57   :  { %658 = vmatmul.f32.gmra.mxu0 %v6739_v40  ;;  %1132 = vmatpush.msrb.mxu2 %v1084_v16  ;;  %v1366_v61 = vsub.f32 %v382_v55, %v1308_v57 }
  0x58   :  { %691 = vmatmul.f32.vlgmr.msrb.gmra.mxu1 %v6713_v27  ;;  %812 = vmatmul.f32.gmra.mxu3 %v6739_v40 }
  0x59   :  { %1076 = vmatpush.msrb.mxu1 %v1075_v3  ;;  %1135 = vmatpush.msrb.mxu2 %v1090_v32  ;;  %v1367_v3 = vand.u32 4294901760, %v1366_v61 }
  0x5a   :  { %751 = vmatmul.f32.gmra.mxu2 %v6813_v18  ;;  %1025 = vmatpush.msrb.mxu0 %v1024_v26 }
  0x5b   :  { %1082 = vmatpush.msrb.mxu1 %v1081_v15  ;;  %1176 = vmatpush.msrb.mxu3 %v1024_v26  ;;  %v1368_v8 = vsub.f32 %v1366_v61, %v1367_v3 }
  0x5d   :  { %1088 = vmatpush.msrb.mxu1 %v1087_v29  ;;  %v1369_v9 = vand.u32 4294901760, %v1368_v8  ;;  %v193_v29 = vld [vmem:[#allocation8 + $0x48] sm:$0xff]  ;;  %v225_v8 = vmul.f32 %v161_v22, %v6949_v20 }
  0x5f   :  { %662 = vmatmul.f32.gmra.mxu0 %v6795_v12  ;;  %1094 = vmatpush.msrb.mxu1 %v1093_v50 }
  0x60   :  { %695 = vmatmul.f32.gmra.mxu1 %v6739_v40  ;;  %816 = vmatmul.f32.gmra.mxu3 %v6795_v12 }
  0x62   :  { %759 = vmatmul.f32.gmra.mxu2 %v6834_v49 }
  0x67   :  { %666 = vmatmul.f32.gmra.mxu0 %v6815_v25 }
  0x68   :  { %699 = vmatmul.f32.gmra.mxu1 %v6795_v12  ;;  %820 = vmatmul.f32.gmra.mxu3 %v6815_v25 }
  0x6a   :  { %767 = vmatmul.f32.gmra.mxu2 %v6855_v31 }
  0x6f   :  { %850 = vmatmul.f32.vlgmr.msra.gmra.mxu0 %v6731_v36 }
  0x70   :  { %703 = vmatmul.f32.gmra.mxu1 %v6815_v25  ;;  %980 = vmatmul.f32.vlgmr.msra.gmra.mxu3 %v6713_v27 }
  0x71   :  { %1217 = vmatpush.msra.mxu0 %v1073_v60  ;;  %v255_v60 = vmul.f32 %v191_v37, %v6690_v1  ;;  %v1312_v1 = vand.u32 4294901760, %v286_v7  ;;  %v321_v37 = vmul.f32 %v193_v29, %v6949_v20 }
  0x72   :  { %943 = vmatmul.f32.vlgmr.msra.gmra.mxu2 %v6713_v27 }
  0x73   :  { %1221 = vmatpush.msra.mxu0 %v1079_v10  ;;  %1307 = vmatpush.msra.mxu2 %v6905_v39  ;;  %v287_v62 = vsub.f32 %v223_v58, %v255_v60  ;;  %v1378_v5 = vsub.f32 %v286_v7, %v1312_v1 }
  0x75   :  { %1225 = vmatpush.msra.mxu0 %v1085_v21  ;;  %1309 = vmatpush.msra.mxu2 %v1308_v57  ;;  %v1379_v6 = vand.u32 4294901760, %v1378_v5  ;;  %v6951_v21 = vld [vmem:[#allocation5 + $0x18] sm:$0xff] }
  0x76   :  { %v353_v32 = vmul.f32 %v161_v22, %v6951_v21 }
  0x77   :  { %855 = vmatmul.f32.gmra.mxu0 %v6755_v48 }
  0x78   :  { %892 = vmatmul.f32.vlgmr.msra.gmra.mxu1 %v6745_v43  ;;  %984 = vmatmul.f32.gmra.mxu3 %v6739_v40  ;;  %v385_v42 = vadd.f32 %v353_v32, %v321_v37 }
  0x79   :  { %1260 = vmatpush.msra.mxu1 %v6871_v54  ;;  %1229 = vmatpush.msra.mxu0 %v1091_v24  ;;  %v1363_v54 = vand.u32 4294901760, %v1362_v53  ;;  %v352_v53 = vmul.f32 %v160_v35, %v6970_v44 }
  0x7a   :  { %947 = vmatmul.f32.gmra.mxu2 %v6739_v40  ;;  %v6960_v50 = vand.u32 4294901760, %v385_v42 }
  0x7b   :  { %1262 = vmatpush.msra.mxu1 %v6882_v4  ;;  %1364 = vmatpush.msra.mxu3 %v1363_v54  ;;  %v1310_v4 = vand.u32 4294901760, %v287_v62 }
  0x7d   :  { %1264 = vmatpush.msra.mxu1 %v1022_v14  ;;  %1311 = vmatpush.msra.mxu2 %v1310_v4  ;;  %v1372_v0 = vsub.f32 %v287_v62, %v1310_v4  ;;  %v1380_v14 = vsub.f32 %v1378_v5, %v1379_v6 }
  0x7e   :  { %1370 = vmatpush.msra.mxu3 %v1369_v9 }
  0x7f   :  { %860 = vmatmul.f32.gmra.mxu0 %v6808_v17  ;;  %1266 = vmatpush.msra.mxu1 %v1024_v26  ;;  %v1373_v10 = vand.u32 4294901760, %v1372_v0  ;;  %v1381_v15 = vand.u32 4294901760, %v1380_v14 }
  0x80   :  { %898 = vmatmul.f32.gmra.mxu1 %v6769_v56  ;;  %988 = vmatmul.f32.gmra.mxu3 %v6795_v12 }
  0x81   :  { %1313 = vmatpush.msra.mxu2 %v1312_v1  ;;  %v1374_v11 = vsub.f32 %v1372_v0, %v1373_v10 }
  0x82   :  { %951 = vmatmul.f32.gmra.mxu2 %v6795_v12 }
  0x83   :  { %v1375_v13 = vand.u32 4294901760, %v1374_v11 }
  0x85   :  { %1376 = vmatpush.msra.mxu3 %v1375_v13 }
  0x87   :  { %865 = vmatmul.f32.gmra.mxu0 %v6826_v38  ;;  %1382 = vmatpush.msra.mxu3 %v1381_v15 }
  0x88   :  { %904 = vmatmul.f32.gmra.mxu1 %v6818_v28  ;;  %992 = vmatmul.f32.gmra.mxu3 %v6815_v25 }
  0x8a   :  { %955 = vmatmul.f32.gmra.mxu2 %v6815_v25 }
  0x8f   :  { %1031 = vmatmul.f32.vlgmr.msrb.gmra.mxu0 %v6774_v59 }
  0x90   :  { %910 = vmatmul.f32.gmra.mxu1 %v6837_v51  ;;  %1180 = vmatmul.f32.vlgmr.msrb.gmra.mxu3 %v6745_v43 }
  0x91   :  { %1414 = vmatpush.msrb.mxu0 %v1360_v34  ;;  %1548 = vmatpush.msrb.mxu3 %v6905_v39  ;;  %v6968_v34 = vld [vmem:[#allocation2 + $0x10] sm:$0xff] }
  0x92   :  { %1138 = vmatmul.f32.vlgmr.msrb.gmra.mxu2 %v6731_v36  ;;  %v320_v58 = vmul.f32 %v192_v52, %v6968_v34 }
  0x93   :  { %1505 = vmatpush.msrb.mxu2 %v1361_v45  ;;  %1417 = vmatpush.msrb.mxu0 %v1366_v61 }
  0x94   :  { %1550 = vmatpush.msrb.mxu3 %v1308_v57  ;;  %v384_v62 = vadd.f32 %v352_v53, %v320_v58 }
  0x95   :  { %1509 = vmatpush.msrb.mxu2 %v1367_v3  ;;  %1420 = vmatpush.msrb.mxu0 %v1372_v0  ;;  %v257_v0 = vmul.f32 %v193_v29, %v6951_v21 }
  0x96   :  { %1552 = vmatpush.msrb.mxu3 %v1310_v4  ;;  %v6984_v3 = vand.u32 4294901760, %v384_v62 }
  0x97   :  { %1039 = vmatmul.f32.gmra.mxu0 %v6813_v18  ;;  %1513 = vmatpush.msrb.mxu2 %v1373_v10  ;;  %v289_v11 = vsub.f32 %v225_v8, %v257_v0 }
  0x98   :  { %1096 = vmatmul.f32.vlgmr.msrb.gmra.mxu1 %v6713_v27  ;;  %1186 = vmatmul.f32.gmra.mxu3 %v6769_v56  ;;  %v1654_v7 = vsub.f32 %v384_v62, %v6984_v3 }
  0x99   :  { %1458 = vmatpush.msrb.mxu1 %v6905_v39  ;;  %1423 = vmatpush.msrb.mxu0 %v1378_v5  ;;  %v6964_v39 = vsub.f32 %v385_v42, %v6960_v50  ;;  %v7000_v13 = vand.u32 4294901760, %v289_v11 }
  0x9a   :  { %1143 = vmatmul.f32.gmra.mxu2 %v6755_v48  ;;  %1554 = vmatpush.msrb.mxu3 %v1312_v1  ;;  %v1655_v5 = vand.u32 4294901760, %v1654_v7 }
  0x9b   :  { %1460 = vmatpush.msrb.mxu1 %v1308_v57  ;;  %1517 = vmatpush.msrb.mxu2 %v1379_v6  ;;  %v1649_v57 = vand.u32 4294901760, %v6964_v39  ;;  %v1660_v15 = vsub.f32 %v289_v11, %v7000_v13  ;;  %v194_v11 = vld [vmem:[#allocation8 + $0x50] sm:$0xff] }
  0x9c   :  { %v1656_v6 = vsub.f32 %v1654_v7, %v1655_v5 }
  0x9d   :  { %1462 = vmatpush.msrb.mxu1 %v1310_v4  ;;  %v1650_v61 = vsub.f32 %v6964_v39, %v1649_v57 }
  0x9e   :  { %v1657_v14 = vand.u32 4294901760, %v1656_v6 }
  0x9f   :  { %1464 = vmatpush.msrb.mxu1 %v1312_v1  ;;  %1047 = vmatmul.f32.gmra.mxu0 %v6834_v49  ;;  %v1651_v2 = vand.u32 4294901760, %v1650_v61 }
  0xa0   :  { %1100 = vmatmul.f32.gmra.mxu1 %v6739_v40  ;;  %1192 = vmatmul.f32.gmra.mxu3 %v6818_v28 }
  0xa2   :  { %1148 = vmatmul.f32.gmra.mxu2 %v6808_v17 }
  0xa7   :  { %1055 = vmatmul.f32.gmra.mxu0 %v6855_v31 }
  0xa8   :  { %1104 = vmatmul.f32.gmra.mxu1 %v6795_v12  ;;  %1198 = vmatmul.f32.gmra.mxu3 %v6837_v51 }
  0xaa   :  { %1153 = vmatmul.f32.gmra.mxu2 %v6826_v38 }
  0xac   :  { %v455_v16 = vpop.f32.mrf.mxu0 }
  0xaf   :  { %1231 = vmatmul.f32.vlgmr.msra.gmra.mxu0 %v6713_v27 }
  0xb0   :  { %1108 = vmatmul.f32.gmra.mxu1 %v6815_v25  ;;  %1384 = vmatmul.f32.vlgmr.msra.gmra.mxu3 %v6713_v27 }
  0xb1   :  { %1595 = vmatpush.msra.mxu0 %v6960_v50  ;;  %1746 = vmatpush.msra.mxu3 %v6960_v50 }
  0xb2   :  { %1319 = vmatmul.f32.vlgmr.msra.gmra.mxu2 %v6774_v59 }
  0xb3   :  { %v604_v19 = vpop.f32.mrf.mxu3  ;;  %1702 = vmatpush.msra.mxu2 %v6964_v39  ;;  %1597 = vmatpush.msra.mxu0 %v6984_v3 }
  0xb4   :  { %v463_v23 = vpop.f32.mrf.mxu0  ;;  %v520_v26 = vpop.f32.mrf.mxu1  ;;  %1748 = vmatpush.msra.mxu3 %v6984_v3 }
  0xb5   :  { %v521_v24 = vadd.f32 %v520_v26, %v455_v16  ;;  %v562_v33 = vpop.f32.mrf.mxu2  ;;  %1705 = vmatpush.msra.mxu2 %v1654_v7  ;;  %1599 = vmatpush.msra.mxu0 %v7000_v13  ;;  %v224_v16 = vmul.f32 %v160_v35, %v6968_v34  ;;  %v163_v35 = vld [vmem:[#allocation7 + $0x58] sm:$0xff] }
  0xb6   :  { %1750 = vmatpush.msra.mxu3 %v7000_v13  ;;  %v355_v58 = vmul.f32 %v163_v35, %v6951_v21 }
  0xb7   :  { %v563_v41 = vadd.f32 %v562_v33, %v521_v24  ;;  %1235 = vmatmul.f32.gmra.mxu0 %v6739_v40  ;;  %1708 = vmatpush.msra.mxu2 %v1660_v15 }
  0xb8   :  { %1268 = vmatmul.f32.vlgmr.msra.gmra.mxu1 %v6713_v27  ;;  %1388 = vmatmul.f32.gmra.mxu3 %v6739_v40 }
  0xb9   :  { %v6958_v46 = vadd.f32 %v604_v19, %v563_v41  ;;  %1652 = vmatpush.msra.mxu1 %v1651_v2  ;;  %v256_v19 = vmul.f32 %v192_v52, %v6970_v44 }
  0xba   :  { %1327 = vmatmul.f32.gmra.mxu2 %v6813_v18 }
  0xbb   :  { %v610_v30 = vpop.f32.mrf.mxu3  ;;  %1658 = vmatpush.msra.mxu1 %v1657_v14  ;;  %v288_v32 = vsub.f32 %v224_v16, %v256_v19  ;;  %v322_v14 = vmul.f32 %v194_v11, %v6968_v34 }
  0xbc   :  { %v6972_v45 = vpop.f32.mrf.mxu0 }
  0xbd   :  { %v524_v47 = vpop.f32.mrf.mxu1  ;;  %v567_v54 = vpop.f32.mrf.mxu2  ;;  %v1600_v37 = vand.u32 4294901760, %v288_v32 }
  0xbe   :  { %v525_v55 = vadd.f32 %v524_v47, %v463_v23  ;;  %v1661_v23 = vand.u32 4294901760, %v1660_v15  ;;  %v195_v47 = vld [vmem:[#allocation8 + $0x58] sm:$0xff] }
  0xbf   :  { %1239 = vmatmul.f32.gmra.mxu0 %v6795_v12  ;;  %v1666_v42 = vsub.f32 %v288_v32, %v1600_v37  ;;  %1752 = vmatpush.msra.mxu3 %v1600_v37  ;;  %v259_v32 = vmul.f32 %v195_v47, %v6951_v21 }
  0xc0   :  { %v568_v60 = vadd.f32 %v567_v54, %v525_v55  ;;  %1272 = vmatmul.f32.gmra.mxu1 %v6739_v40  ;;  %1392 = vmatmul.f32.gmra.mxu3 %v6795_v12  ;;  %v1662_v33 = vsub.f32 %v1660_v15, %v1661_v23  ;;  %v323_v54 = vmul.f32 %v195_v47, %v6949_v20 }
  0xc1   :  { %1601 = vmatpush.msra.mxu0 %v1600_v37  ;;  %1711 = vmatpush.msra.mxu2 %v1666_v42 }
  0xc2   :  { %v6982_v63 = vadd.f32 %v610_v30, %v568_v60  ;;  %1335 = vmatmul.f32.gmra.mxu2 %v6834_v49  ;;  %v1663_v41 = vand.u32 4294901760, %v1662_v33  ;;  %v1667_v30 = vand.u32 4294901760, %v1666_v42  ;;  %v387_v2 = vadd.f32 %v355_v58, %v323_v54 }
  0xc3   :  { %v6987_v4 = vpop.f32.mrf.mxu3 }
  0xc4   :  { %9200 = vst [vmem:[#allocation20_spill] sm:$0xff] %v6982_v63  ;;  %v6993_v1 = vpop.f32.mrf.mxu0  ;;  %1664 = vmatpush.msra.mxu1 %v1663_v41  ;;  %v1668_v55 = vsub.f32 %v1666_v42, %v1667_v30  ;;  %v7033_v7 = vand.u32 4294901760, %v387_v2 }
  0xc5   :  { %v528_v9 = vpop.f32.mrf.mxu1  ;;  %v6996_v10 = vpop.f32.mrf.mxu2 }
  0xc6   :  { %v1669_v62 = vand.u32 4294901760, %v1668_v55  ;;  %v7038_v8 = vsub.f32 %v387_v2, %v7033_v7  ;;  %v258_v55 = vmul.f32 %v194_v11, %v6970_v44 }
  0xc7   :  { %1243 = vmatmul.f32.gmra.mxu0 %v6815_v25 }
  0xc8   :  { %1276 = vmatmul.f32.gmra.mxu1 %v6795_v12  ;;  %1396 = vmatmul.f32.gmra.mxu3 %v6815_v25 }
  0xc9   :  { %1670 = vmatpush.msra.mxu1 %v1669_v62 }
  0xca   :  { %1343 = vmatmul.f32.gmra.mxu2 %v6855_v31 }
  0xcb   :  { %v7009_v22 = vpop.f32.mrf.mxu3 }
  0xcc   :  { %v7013_v29 = vpop.f32.mrf.mxu0 }
  0xcd   :  { %v7011_v26 = vpop.f32.mrf.mxu1  ;;  %v7015_v24 = vpop.f32.mrf.mxu2 }
  0xce   :  { %v533_v42 = vadd.f32 %v7011_v26, %v6993_v1 }
  0xcf   :  { %1426 = vmatmul.f32.vlgmr.msrb.gmra.mxu0 %v6731_v36 }
  0xd0   :  { %1280 = vmatmul.f32.gmra.mxu1 %v6815_v25  ;;  %1556 = vmatmul.f32.vlgmr.msrb.gmra.mxu3 %v6713_v27  ;;  %v578_v26 = vadd.f32 %v7015_v24, %v533_v42 }
  0xd1   :  { %1793 = vmatpush.msrb.mxu0 %v1649_v57  ;;  %v529_v57 = vadd.f32 %v528_v9, %v6972_v45 }
  0xd2   :  { %1519 = vmatmul.f32.vlgmr.msrb.gmra.mxu2 %v6713_v27 }
  0xd3   :  { %v809_v39 = vpop.f32.mrf.mxu3  ;;  %1797 = vmatpush.msrb.mxu0 %v1655_v5  ;;  %1883 = vmatpush.msrb.mxu2 %v7033_v7  ;;  %v162_v5 = vld [vmem:[#allocation7 + $0x50] sm:$0xff]  ;;  %v573_v45 = vadd.f32 %v6996_v10, %v529_v57  ;;  %v227_v10 = vmul.f32 %v163_v35, %v6949_v20 }
  0xd4   :  { %v7021_v52 = vpop.f32.mrf.mxu0  ;;  %v354_v15 = vmul.f32 %v162_v5, %v6970_v44 }
  0xd5   :  { %9201 = vst [vmem:[#allocation21_spill] sm:$0xff] %v7021_v52  ;;  %v7023_v53 = vpop.f32.mrf.mxu1  ;;  %v744_v60 = vpop.f32.mrf.mxu2  ;;  %1801 = vmatpush.msrb.mxu0 %v1661_v23  ;;  %v617_v33 = vadd.f32 %v6987_v4, %v573_v45 }
  0xd6   :  { %v7027_v61 = vadd.f32 %v809_v39, %v744_v60  ;;  %v386_v23 = vadd.f32 %v354_v15, %v322_v14  ;;  %v226_v39 = vmul.f32 %v162_v5, %v6968_v34  ;;  %v623_v14 = vadd.f32 %v7009_v22, %v578_v26 }
  0xd7   :  { %1431 = vmatmul.f32.gmra.mxu0 %v6755_v48 }
  0xd8   :  { %1468 = vmatmul.f32.vlgmr.msrb.gmra.mxu1 %v6745_v43  ;;  %1560 = vmatmul.f32.gmra.mxu3 %v6739_v40  ;;  %v7060_v41 = vand.u32 4294901760, %v386_v23 }
  0xd9   :  { %1836 = vmatpush.msrb.mxu1 %v6960_v50  ;;  %1805 = vmatpush.msrb.mxu0 %v1667_v30  ;;  %v1937_v50 = vand.u32 4294901760, %v7038_v8  ;;  %v291_v30 = vsub.f32 %v227_v10, %v259_v32 }
  0xda   :  { %1523 = vmatmul.f32.gmra.mxu2 %v6739_v40  ;;  %v1942_v35 = vsub.f32 %v386_v23, %v7060_v41 }
  0xdb   :  { %v813_v0 = vpop.f32.mrf.mxu3  ;;  %1838 = vmatpush.msrb.mxu1 %v6984_v3  ;;  %v1938_v3 = vsub.f32 %v7038_v8, %v1937_v50  ;;  %1885 = vmatpush.msrb.mxu2 %v7060_v41  ;;  %v7069_v54 = vand.u32 4294901760, %v291_v30 }
  0xdc   :  { %v663_v9 = vpop.f32.mrf.mxu0  ;;  %v1943_v1 = vand.u32 4294901760, %v1942_v35 }
  0xdd   :  { %v7043_v6 = vpop.f32.mrf.mxu1  ;;  %v752_v16 = vpop.f32.mrf.mxu2  ;;  %1840 = vmatpush.msrb.mxu1 %v7000_v13  ;;  %v1939_v13 = vand.u32 4294901760, %v1938_v3  ;;  %v664_v4 = vadd.f32 %v663_v9, %v617_v33  ;;  %1887 = vmatpush.msrb.mxu2 %v7069_v54  ;;  %v1948_v57 = vsub.f32 %v291_v30, %v7069_v54 }
  0xde   :  { %9202 = vst [vmem:[#allocation22_spill] sm:$0xff] %v7043_v6  ;;  %v7049_v19 = vadd.f32 %v813_v0, %v752_v16  ;;  %v1944_v11 = vsub.f32 %v1942_v35, %v1943_v1 }
  0xdf   :  { %1436 = vmatmul.f32.gmra.mxu0 %v6808_v17  ;;  %1842 = vmatpush.msrb.mxu1 %v1600_v37  ;;  %v290_v37 = vsub.f32 %v226_v39, %v258_v55  ;;  %v1949_v45 = vand.u32 4294901760, %v1948_v57 }
  0xe0   :  { %1474 = vmatmul.f32.gmra.mxu1 %v6769_v56  ;;  %1564 = vmatmul.f32.gmra.mxu3 %v6795_v12  ;;  %v1945_v24 = vand.u32 4294901760, %v1944_v11 }
  0xe1   :  { %1940 = vmatpush.msrb.mxu3 %v1939_v13  ;;  %v7074_v0 = vand.u32 4294901760, %v290_v37  ;;  %v1950_v15 = vsub.f32 %v1948_v57, %v1949_v45 }
  0xe2   :  { %1527 = vmatmul.f32.gmra.mxu2 %v6795_v12 }
  0xe3   :  { %v817_v47 = vpop.f32.mrf.mxu3  ;;  %v1954_v9 = vsub.f32 %v290_v37, %v7074_v0  ;;  %1889 = vmatpush.msrb.mxu2 %v7074_v0  ;;  %1946 = vmatpush.msrb.mxu3 %v1945_v24  ;;  %v1951_v10 = vand.u32 4294901760, %v1950_v15 }
  0xe4   :  { %v667_v58 = vpop.f32.mrf.mxu0 }
  0xe5   :  { %v700_v60 = vpop.f32.mrf.mxu1  ;;  %v760_v62 = vpop.f32.mrf.mxu2  ;;  %v1955_v16 = vand.u32 4294901760, %v1954_v9  ;;  %v668_v3 = vadd.f32 %v667_v58, %v623_v14  ;;  %1952 = vmatpush.msrb.mxu3 %v1951_v10 }
  0xe6   :  { %v701_v2 = vadd.f32 %v700_v60, %v664_v4  ;;  %v7076_v5 = vadd.f32 %v817_v47, %v760_v62 }
  0xe7   :  { %1441 = vmatmul.f32.gmra.mxu0 %v6826_v38  ;;  %v1956_v32 = vsub.f32 %v1954_v9, %v1955_v16 }
  0xe8   :  { %1480 = vmatmul.f32.gmra.mxu1 %v6818_v28  ;;  %1568 = vmatmul.f32.gmra.mxu3 %v6815_v25 }
  0xe9   :  { %709 = vrot.lane.b32.xlu1 %v701_v2, %s6604_s6  ;;  %v1957_v39 = vand.u32 4294901760, %v1956_v32 }
  0xea   :  { %1531 = vmatmul.f32.gmra.mxu2 %v6815_v25 }
  0xeb   :  { %v821_v23 = vpop.f32.mrf.mxu3  ;;  %1958 = vmatpush.msrb.mxu3 %v1957_v39 }
  0xec   :  { %v851_v13 = vpop.f32.mrf.mxu0 }
  0xed   :  { %v704_v33 = vpop.f32.mrf.mxu1  ;;  %v768_v42 = vpop.f32.mrf.mxu2  ;;  %v852_v22 = vadd.f32 %v851_v13, %v7027_v61  ;;  %v165_v13 = vld [vmem:[#allocation7 + $0x68] sm:$0xff] }
  0xee   :  { %v705_v30 = vadd.f32 %v704_v33, %v668_v3  ;;  %v822_v55 = vadd.f32 %v821_v23, %v768_v42  ;;  %v197_v42 = vld [vmem:[#allocation8 + $0x68] sm:$0xff] }
  0xef   :  { %1607 = vmatmul.f32.vlgmr.msra.gmra.mxu0 %v6774_v59 }
  0xf0   :  { %1486 = vmatmul.f32.gmra.mxu1 %v6837_v51  ;;  %1756 = vmatmul.f32.vlgmr.msra.gmra.mxu3 %v6745_v43 }
  0xf1   :  { %711 = vrot.lane.b32.xlu2 %v705_v30, %s6604_s6  ;;  %1990 = vmatpush.msra.mxu0 %v7038_v8 }
  0xf2   :  { %1714 = vmatmul.f32.vlgmr.msra.gmra.mxu2 %v6731_v36  ;;  %2124 = vmatpush.msra.mxu3 %v7033_v7 }
  0xf3   :  { %v981_v4 = vpop.f32.mrf.mxu3  ;;  %2081 = vmatpush.msra.mxu2 %v1937_v50  ;;  %1993 = vmatpush.msra.mxu0 %v1942_v35 }
  0xf4   :  { %v856_v47 = vpop.f32.mrf.mxu0  ;;  %2126 = vmatpush.msra.mxu3 %v7060_v41 }
  0xf5   :  { %v893_v37 = vpop.f32.mrf.mxu1  ;;  %v944_v60 = vpop.f32.mrf.mxu2  ;;  %2085 = vmatpush.msra.mxu2 %v1943_v1  ;;  %1996 = vmatpush.msra.mxu0 %v1948_v57  ;;  %v857_v8 = vadd.f32 %v856_v47, %v7049_v19 }
  0xf6   :  { %v894_v58 = vadd.f32 %v893_v37, %v852_v22  ;;  %2128 = vmatpush.msra.mxu3 %v7069_v54  ;;  %v357_v22 = vmul.f32 %v165_v13, %v6951_v21 }
  0xf7   :  { %1615 = vmatmul.f32.gmra.mxu0 %v6813_v18  ;;  %2089 = vmatpush.msra.mxu2 %v1949_v45 }
  0xf8   :  { %v945_v26 = vadd.f32 %v944_v60, %v894_v58  ;;  %1672 = vmatmul.f32.vlgmr.msra.gmra.mxu1 %v6713_v27  ;;  %1762 = vmatmul.f32.gmra.mxu3 %v6769_v56 }
  0xf9   :  { %2034 = vmatpush.msra.mxu1 %v7033_v7  ;;  %1999 = vmatpush.msra.mxu0 %v1954_v9 }
  0xfa   :  { %v7102_v61 = vadd.f32 %v981_v4, %v945_v26  ;;  %1719 = vmatmul.f32.gmra.mxu2 %v6755_v48  ;;  %2130 = vmatpush.msra.mxu3 %v7074_v0 }
  0xfb   :  { %2036 = vmatpush.msra.mxu1 %v7060_v41  ;;  %v985_v50 = vpop.f32.mrf.mxu3  ;;  %2093 = vmatpush.msra.mxu2 %v1955_v16 }
  0xfc   :  { %9203 = vst [vmem:[#allocation23_spill] sm:$0xff] %v7102_v61  ;;  %v861_v35 = vpop.f32.mrf.mxu0 }
  0xfd   :  { %v899_v1 = vpop.f32.mrf.mxu1  ;;  %2038 = vmatpush.msra.mxu1 %v7069_v54  ;;  %v948_v7 = vpop.f32.mrf.mxu2  ;;  %v862_v41 = vadd.f32 %v861_v35, %v7076_v5  ;;  %v164_v35 = vld [vmem:[#allocation7 + $0x60] sm:$0xff] }
  0xfe   :  { %v900_v62 = vadd.f32 %v899_v1, %v857_v8  ;;  %v196_v1 = vld [vmem:[#allocation8 + $0x60] sm:$0xff] }
  0xff   :  { %2040 = vmatpush.msra.mxu1 %v7074_v0  ;;  %1623 = vmatmul.f32.gmra.mxu0 %v6834_v49 }
 0x100   :  { %v949_v2 = vadd.f32 %v948_v7, %v900_v62  ;;  %1676 = vmatmul.f32.gmra.mxu1 %v6739_v40  ;;  %1768 = vmatmul.f32.gmra.mxu3 %v6818_v28 }
 0x102   :  { %v7113_v19 = vadd.f32 %v985_v50, %v949_v2  ;;  %1724 = vmatmul.f32.gmra.mxu2 %v6808_v17 }
 0x103   :  { %v989_v57 = vpop.f32.mrf.mxu3 }
 0x104   :  { %9204 = vst [vmem:[#allocation24_spill] sm:$0xff] %v7113_v19  ;;  %v866_v11 = vpop.f32.mrf.mxu0 }
 0x105   :  { %v905_v54 = vpop.f32.mrf.mxu1  ;;  %v952_v9 = vpop.f32.mrf.mxu2  ;;  %v867_v14 = vadd.f32 %v866_v11, %v822_v55  ;;  %v325_v55 = vmul.f32 %v197_v42, %v6949_v20 }
 0x106   :  { %v906_v45 = vadd.f32 %v905_v54, %v862_v41  ;;  %v324_v41 = vmul.f32 %v196_v1, %v6968_v34 }
 0x107   :  { %1631 = vmatmul.f32.gmra.mxu0 %v6855_v31  ;;  %v389_v37 = vadd.f32 %v357_v22, %v325_v55 }
 0x108   :  { %v953_v24 = vadd.f32 %v952_v9, %v906_v45  ;;  %1680 = vmatmul.f32.gmra.mxu1 %v6795_v12  ;;  %1774 = vmatmul.f32.gmra.mxu3 %v6837_v51 }
 0x109   :  { %v7134_v60 = vand.u32 4294901760, %v389_v37 }
 0x10a   :  { %v7120_v0 = vadd.f32 %v989_v57, %v953_v24  ;;  %1729 = vmatmul.f32.gmra.mxu2 %v6826_v38  ;;  %v356_v57 = vmul.f32 %v164_v35, %v6970_v44 }
 0x10b   :  { %v993_v15 = vpop.f32.mrf.mxu3  ;;  %v7140_v8 = vsub.f32 %v389_v37, %v7134_v60 }
 0x10c   :  { %v1032_v5 = vpop.f32.mrf.mxu0  ;;  %v388_v9 = vadd.f32 %v356_v57, %v324_v41 }
 0x10d   :  { %v911_v16 = vpop.f32.mrf.mxu1  ;;  %v956_v23 = vpop.f32.mrf.mxu2  ;;  %v2225_v2 = vand.u32 4294901760, %v7140_v8 }
 0x10e   :  { %v912_v3 = vadd.f32 %v911_v16, %v867_v14 }
 0x10f   :  { %1807 = vmatmul.f32.vlgmr.msrb.gmra.mxu0 %v6713_v27  ;;  %v2226_v45 = vsub.f32 %v7140_v8, %v2225_v2 }
 0x110   :  { %v957_v10 = vadd.f32 %v956_v23, %v912_v3  ;;  %1684 = vmatmul.f32.gmra.mxu1 %v6815_v25  ;;  %1960 = vmatmul.f32.vlgmr.msrb.gmra.mxu3 %v6713_v27  ;;  %v229_v23 = vmul.f32 %v165_v13, %v6949_v20 }
 0x111   :  { %2171 = vmatpush.msrb.mxu0 %v7134_v60  ;;  %2322 = vmatpush.msrb.mxu3 %v7134_v60  ;;  %v2227_v14 = vand.u32 4294901760, %v2226_v45 }
 0x112   :  { %v7126_v32 = vadd.f32 %v993_v15, %v957_v10  ;;  %1895 = vmatmul.f32.vlgmr.msrb.gmra.mxu2 %v6774_v59  ;;  %v7154_v15 = vand.u32 4294901760, %v388_v9  ;;  %v261_v10 = vmul.f32 %v197_v42, %v6951_v21 }
 0x113   :  { %v1181_v33 = vpop.f32.mrf.mxu3  ;;  %2278 = vmatpush.msrb.mxu2 %v7140_v8 }
 0x114   :  { %v1040_v30 = vpop.f32.mrf.mxu0  ;;  %2173 = vmatpush.msrb.mxu0 %v7154_v15  ;;  %2324 = vmatpush.msrb.mxu3 %v7154_v15 }
 0x115   :  { %v1097_v39 = vpop.f32.mrf.mxu1  ;;  %v1139_v47 = vpop.f32.mrf.mxu2 }
 0x116   :  { %v1098_v4 = vadd.f32 %v1097_v39, %v1032_v5  ;;  %v2230_v5 = vsub.f32 %v388_v9, %v7154_v15 }
 0x117   :  { %1811 = vmatmul.f32.gmra.mxu0 %v6739_v40 }
 0x118   :  { %v1140_v58 = vadd.f32 %v1139_v47, %v1098_v4  ;;  %1844 = vmatmul.f32.vlgmr.msrb.gmra.mxu1 %v6713_v27  ;;  %1964 = vmatmul.f32.gmra.mxu3 %v6739_v40  ;;  %v2231_v39 = vand.u32 4294901760, %v2230_v5  ;;  %v293_v4 = vsub.f32 %v229_v23, %v261_v10 }
 0x119   :  { %2228 = vmatpush.msrb.mxu1 %v2227_v14  ;;  %2281 = vmatpush.msrb.mxu2 %v2230_v5 }
 0x11a   :  { %v7136_v26 = vadd.f32 %v1181_v33, %v1140_v58  ;;  %1903 = vmatmul.f32.gmra.mxu2 %v6813_v18  ;;  %v2232_v47 = vsub.f32 %v2230_v5, %v2231_v39  ;;  %v7166_v58 = vand.u32 4294901760, %v293_v4 }
 0x11b   :  { %v1187_v50 = vpop.f32.mrf.mxu3 }
 0x11c   :  { %9205 = vst [vmem:[#allocation25_spill] sm:$0xff] %v7136_v26  ;;  %v1048_v62 = vpop.f32.mrf.mxu0  ;;  %v2233_v13 = vand.u32 4294901760, %v2232_v47  ;;  %v2236_v42 = vsub.f32 %v293_v4, %v7166_v58  ;;  %2175 = vmatpush.msrb.mxu0 %v7166_v58  ;;  %2326 = vmatpush.msrb.mxu3 %v7166_v58 }
 0x11d   :  { %v1101_v7 = vpop.f32.mrf.mxu1  ;;  %v1144_v54 = vpop.f32.mrf.mxu2 }
 0x11e   :  { %v1102_v11 = vadd.f32 %v1101_v7, %v1040_v30  ;;  %2234 = vmatpush.msrb.mxu1 %v2233_v13  ;;  %v260_v7 = vmul.f32 %v196_v1, %v6970_v44  ;;  %2284 = vmatpush.msrb.mxu2 %v2236_v42  ;;  %v2237_v57 = vand.u32 4294901760, %v2236_v42 }
 0x11f   :  { %1815 = vmatmul.f32.gmra.mxu0 %v6795_v12 }
 0x120   :  { %v1145_v24 = vadd.f32 %v1144_v54, %v1102_v11  ;;  %1848 = vmatmul.f32.gmra.mxu1 %v6739_v40  ;;  %1968 = vmatmul.f32.gmra.mxu3 %v6795_v12  ;;  %v2238_v14 = vsub.f32 %v2236_v42, %v2237_v57 }
 0x122   :  { %v7156_v16 = vadd.f32 %v1187_v50, %v1145_v24  ;;  %1911 = vmatmul.f32.gmra.mxu2 %v6834_v49 }
 0x123   :  { %v1193_v3 = vpop.f32.mrf.mxu3 }
 0x124   :  { %9206 = vst [vmem:[#allocation26_spill] sm:$0xff] %v7156_v16  ;;  %v1056_v33 = vpop.f32.mrf.mxu0 }
 0x125   :  { %v1105_v30 = vpop.f32.mrf.mxu1  ;;  %v1149_v22 = vpop.f32.mrf.mxu2 }
 0x126   :  { %v1106_v55 = vadd.f32 %v1105_v30, %v1048_v62  ;;  %v228_v62 = vmul.f32 %v164_v35, %v6968_v34  ;;  %v2239_v35 = vand.u32 4294901760, %v2238_v14  ;;  %v167_v30 = vld [vmem:[#allocation7 + $0x78] sm:$0xff] }
 0x127   :  { %1819 = vmatmul.f32.gmra.mxu0 %v6815_v25  ;;  %v359_v13 = vmul.f32 %v167_v30, %v6951_v21 }
 0x128   :  { %v1150_v37 = vadd.f32 %v1149_v22, %v1106_v55  ;;  %1852 = vmatmul.f32.gmra.mxu1 %v6795_v12  ;;  %1972 = vmatmul.f32.gmra.mxu3 %v6815_v25  ;;  %v292_v45 = vsub.f32 %v228_v62, %v260_v7  ;;  %v199_v55 = vld [vmem:[#allocation8 + $0x78] sm:$0xff] }
 0x129   :  { %2240 = vmatpush.msrb.mxu1 %v2239_v35 }
 0x12a   :  { %v7169_v50 = vadd.f32 %v1193_v3, %v1150_v37  ;;  %1919 = vmatmul.f32.gmra.mxu2 %v6855_v31  ;;  %v2176_v5 = vand.u32 4294901760, %v292_v45  ;;  %v327_v37 = vmul.f32 %v199_v55, %v6949_v20 }
 0x12b   :  { %v1199_v41 = vpop.f32.mrf.mxu3 }
 0x12c   :  { %v7177_v54 = vpop.f32.mrf.mxu0  ;;  %v2242_v1 = vsub.f32 %v292_v45, %v2176_v5  ;;  %2177 = vmatpush.msrb.mxu0 %v2176_v5  ;;  %2328 = vmatpush.msrb.mxu3 %v2176_v5  ;;  %v391_v8 = vadd.f32 %v359_v13, %v327_v37 }
 0x12d   :  { %v1109_v11 = vpop.f32.mrf.mxu1  ;;  %9207 = vst [vmem:[#allocation27_spill] sm:$0xff] %v7177_v54  ;;  %v1154_v24 = vpop.f32.mrf.mxu2 }
 0x12e   :  { %v1110_v9 = vadd.f32 %v1109_v11, %v1056_v33  ;;  %v2243_v10 = vand.u32 4294901760, %v2242_v1  ;;  %2287 = vmatpush.msrb.mxu2 %v2242_v1 }
 0x12f   :  { %2002 = vmatmul.f32.vlgmr.msra.gmra.mxu0 %v6731_v36 }
 0x130   :  { %v1155_v3 = vadd.f32 %v1154_v24, %v1110_v9  ;;  %1856 = vmatmul.f32.gmra.mxu1 %v6815_v25  ;;  %2132 = vmatmul.f32.vlgmr.msra.gmra.mxu3 %v6713_v27  ;;  %v2244_v47 = vsub.f32 %v2242_v1, %v2243_v10  ;;  %v166_v9 = vld [vmem:[#allocation7 + $0x70] sm:$0xff] }
 0x131   :  { %2369 = vmatpush.msra.mxu0 %v2225_v2  ;;  %v7198_v2 = vand.u32 4294901760, %v391_v8  ;;  %v198_v24 = vld [vmem:[#allocation8 + $0x70] sm:$0xff]  ;;  %v230_v13 = vmul.f32 %v166_v9, %v6968_v34 }
 0x132   :  { %v7182_v23 = vadd.f32 %v1199_v41, %v1155_v3  ;;  %2095 = vmatmul.f32.vlgmr.msra.gmra.mxu2 %v6713_v27  ;;  %v2245_v7 = vand.u32 4294901760, %v2244_v47  ;;  %v326_v14 = vmul.f32 %v198_v24, %v6968_v34  ;;  %v358_v3 = vmul.f32 %v166_v9, %v6970_v44 }
 0x133   :  { %v1385_v33 = vpop.f32.mrf.mxu3  ;;  %2373 = vmatpush.msra.mxu0 %v2231_v39  ;;  %v7203_v39 = vsub.f32 %v391_v8, %v7198_v2  ;;  %2459 = vmatpush.msra.mxu2 %v7198_v2 }
 0x134   :  { %v7187_v22 = vpop.f32.mrf.mxu0  ;;  %2246 = vmatpush.msrb.mxu1 %v2245_v7  ;;  %v390_v1 = vadd.f32 %v358_v3, %v326_v14 }
 0x135   :  { %9208 = vst [vmem:[#allocation28_spill] sm:$0xff] %v7187_v22  ;;  %v7189_v4 = vpop.f32.mrf.mxu1  ;;  %v1320_v42 = vpop.f32.mrf.mxu2  ;;  %2377 = vmatpush.msra.mxu0 %v2237_v57  ;;  %v2513_v45 = vand.u32 4294901760, %v7203_v39 }
 0x136   :  { %9209 = vst [vmem:[#allocation29_spill] sm:$0xff] %v7189_v4  ;;  %v7193_v62 = vadd.f32 %v1385_v33, %v1320_v42  ;;  %v263_v33 = vmul.f32 %v199_v55, %v6951_v21  ;;  %v262_v42 = vmul.f32 %v198_v24, %v6970_v44 }
 0x137   :  { %2007 = vmatmul.f32.gmra.mxu0 %v6755_v48 }
 0x138   :  { %2044 = vmatmul.f32.vlgmr.msra.gmra.mxu1 %v6745_v43  ;;  %2136 = vmatmul.f32.gmra.mxu3 %v6739_v40 }
 0x139   :  { %2412 = vmatpush.msra.mxu1 %v7134_v60  ;;  %2381 = vmatpush.msra.mxu0 %v2243_v10  ;;  %v231_v10 = vmul.f32 %v167_v30, %v6949_v20  ;;  %v294_v30 = vsub.f32 %v230_v13, %v262_v42 }
 0x13a   :  { %2099 = vmatmul.f32.gmra.mxu2 %v6739_v40 }
 0x13b   :  { %v1389_v41 = vpop.f32.mrf.mxu3  ;;  %2414 = vmatpush.msra.mxu1 %v7154_v15  ;;  %v2514_v15 = vsub.f32 %v7203_v39, %v2513_v45  ;;  %v295_v37 = vsub.f32 %v231_v10, %v263_v33  ;;  %v2464_v9 = vand.u32 4294901760, %v294_v30 }
 0x13c   :  { %v7207_v57 = vpop.f32.mrf.mxu0 }
 0x13d   :  { %v7209_v11 = vpop.f32.mrf.mxu1  ;;  %v1328_v60 = vpop.f32.mrf.mxu2  ;;  %2416 = vmatpush.msra.mxu1 %v7166_v58  ;;  %v2515_v47 = vand.u32 4294901760, %v2514_v15  ;;  %v7225_v58 = vand.u32 4294901760, %v390_v1  ;;  %v7232_v21 = vand.u32 4294901760, %v295_v37  ;;  %v2530_v14 = vsub.f32 %v294_v30, %v2464_v9 }
 0x13e   :  { %9210 = vst [vmem:[#allocation30_spill] sm:$0xff] %v7209_v11  ;;  %v7215_v35 = vadd.f32 %v1389_v41, %v1328_v60 }
 0x13f   :  { %2012 = vmatmul.f32.gmra.mxu0 %v6808_v17  ;;  %2418 = vmatpush.msra.mxu1 %v2176_v5  ;;  %v2518_v20 = vsub.f32 %v390_v1, %v7225_v58  ;;  %v2524_v34 = vsub.f32 %v295_v37, %v7232_v21  ;;  %v2531_v1 = vand.u32 4294901760, %v2530_v14 }
 0x140   :  { %2050 = vmatmul.f32.gmra.mxu1 %v6769_v56  ;;  %2140 = vmatmul.f32.gmra.mxu3 %v6795_v12 }
 0x141   :  { %2516 = vmatpush.msra.mxu3 %v2515_v47  ;;  %2461 = vmatpush.msra.mxu2 %v7225_v58  ;;  %v2519_v41 = vand.u32 4294901760, %v2518_v20  ;;  %v2525_v60 = vand.u32 4294901760, %v2524_v34  ;;  %v2532_v13 = vsub.f32 %v2530_v14, %v2531_v1 }
 0x142   :  { %2103 = vmatmul.f32.gmra.mxu2 %v6795_v12 }
 0x143   :  { %v1393_v7 = vpop.f32.mrf.mxu3  ;;  %2463 = vmatpush.msra.mxu2 %v7232_v21  ;;  %v2520_v24 = vsub.f32 %v2518_v20, %v2519_v41  ;;  %v2526_v15 = vsub.f32 %v2524_v34, %v2525_v60 }
 0x144   :  { %v7234_v55 = vpop.f32.mrf.mxu0 }
 0x145   :  { %v7236_v5 = vpop.f32.mrf.mxu1  ;;  %v1336_v8 = vpop.f32.mrf.mxu2  ;;  %2465 = vmatpush.msra.mxu2 %v2464_v9  ;;  %v2521_v3 = vand.u32 4294901760, %v2520_v24  ;;  %v2527_v33 = vand.u32 4294901760, %v2526_v15 }
 0x146   :  { %v7240_v44 = vadd.f32 %v1393_v7, %v1336_v8  ;;  %v2533_v8 = vand.u32 4294901760, %v2532_v13 }
 0x147   :  { %2017 = vmatmul.f32.gmra.mxu0 %v6826_v38  ;;  %2522 = vmatpush.msra.mxu3 %v2521_v3 }
 0x148   :  { %2056 = vmatmul.f32.gmra.mxu1 %v6818_v28  ;;  %2144 = vmatmul.f32.gmra.mxu3 %v6815_v25 }
 0x149   :  { %2528 = vmatpush.msra.mxu3 %v2527_v33 }
 0x14a   :  { %2107 = vmatmul.f32.gmra.mxu2 %v6815_v25 }
 0x14b   :  { %v1397_v10 = vpop.f32.mrf.mxu3  ;;  %2534 = vmatpush.msra.mxu3 %v2533_v8 }
 0x14c   :  { %v1427_v37 = vpop.f32.mrf.mxu0 }
 0x14d   :  { %v7246_v47 = vpop.f32.mrf.mxu1  ;;  %v1344_v42 = vpop.f32.mrf.mxu2  ;;  %v1428_v30 = vadd.f32 %v1427_v37, %v7193_v62 }
 0x14e   :  { %v1398_v7 = vadd.f32 %v1397_v10, %v1344_v42 }
 0x14f   :  { %2183 = vmatmul.f32.vlgmr.msrb.gmra.mxu0 %v6774_v59 }
 0x150   :  { %2062 = vmatmul.f32.gmra.mxu1 %v6837_v51  ;;  %2332 = vmatmul.f32.vlgmr.msrb.gmra.mxu3 %v6745_v43 }
 0x151   :  { %2566 = vmatpush.msrb.mxu0 %v7203_v39  ;;  %2700 = vmatpush.msrb.mxu3 %v7198_v2 }
 0x152   :  { %2290 = vmatmul.f32.vlgmr.msrb.gmra.mxu2 %v6731_v36 }
 0x153   :  { %v1557_v24 = vpop.f32.mrf.mxu3  ;;  %2657 = vmatpush.msrb.mxu2 %v2513_v45  ;;  %2569 = vmatpush.msrb.mxu0 %v2518_v20 }
 0x154   :  { %v1432_v3 = vpop.f32.mrf.mxu0  ;;  %2702 = vmatpush.msrb.mxu3 %v7225_v58 }
 0x155   :  { %v1469_v15 = vpop.f32.mrf.mxu1  ;;  %v1520_v33 = vpop.f32.mrf.mxu2  ;;  %2661 = vmatpush.msrb.mxu2 %v2519_v41  ;;  %2572 = vmatpush.msrb.mxu0 %v2524_v34  ;;  %v1433_v39 = vadd.f32 %v1432_v3, %v7215_v35 }
 0x156   :  { %v1470_v10 = vadd.f32 %v1469_v15, %v1428_v30  ;;  %2704 = vmatpush.msrb.mxu3 %v7232_v21 }
 0x157   :  { %2191 = vmatmul.f32.gmra.mxu0 %v6813_v18  ;;  %2665 = vmatpush.msrb.mxu2 %v2525_v60 }
 0x158   :  { %v1521_v13 = vadd.f32 %v1520_v33, %v1470_v10  ;;  %2248 = vmatmul.f32.vlgmr.msrb.gmra.mxu1 %v6713_v27  ;;  %2338 = vmatmul.f32.gmra.mxu3 %v6769_v56 }
 0x159   :  { %2610 = vmatpush.msrb.mxu1 %v7198_v2  ;;  %2575 = vmatpush.msrb.mxu0 %v2530_v14 }
 0x15a   :  { %v7263_v62 = vadd.f32 %v1557_v24, %v1521_v13  ;;  %2295 = vmatmul.f32.gmra.mxu2 %v6755_v48  ;;  %2706 = vmatpush.msrb.mxu3 %v2464_v9 }
 0x15b   :  { %2612 = vmatpush.msrb.mxu1 %v7225_v58  ;;  %v1561_v45 = vpop.f32.mrf.mxu3  ;;  %2669 = vmatpush.msrb.mxu2 %v2531_v1 }
 0x15c   :  { %9211 = vst [vmem:[#allocation31_spill] sm:$0xff] %v7263_v62  ;;  %v1437_v20 = vpop.f32.mrf.mxu0 }
 0x15d   :  { %v1475_v41 = vpop.f32.mrf.mxu1  ;;  %2614 = vmatpush.msrb.mxu1 %v7232_v21  ;;  %v1524_v37 = vpop.f32.mrf.mxu2  ;;  %v1438_v35 = vadd.f32 %v1437_v20, %v7240_v44  ;;  %v169_v20 = vld [vmem:[#allocation7 + $0x88] sm:$0xff] }
 0x15e   :  { %v1476_v34 = vadd.f32 %v1475_v41, %v1433_v39 }
 0x15f   :  { %2616 = vmatpush.msrb.mxu1 %v2464_v9  ;;  %2199 = vmatmul.f32.gmra.mxu0 %v6834_v49 }
 0x160   :  { %v1525_v2 = vadd.f32 %v1524_v37, %v1476_v34  ;;  %2252 = vmatmul.f32.gmra.mxu1 %v6739_v40  ;;  %2344 = vmatmul.f32.gmra.mxu3 %v6818_v28  ;;  %v201_v37 = vld [vmem:[#allocation8 + $0x88] sm:$0xff] }
 0x162   :  { %v7272_v58 = vadd.f32 %v1561_v45, %v1525_v2  ;;  %2300 = vmatmul.f32.gmra.mxu2 %v6808_v17  ;;  %v7288_v45 = vld [vmem:[#allocation2 + $0x28] sm:$0xff] }
 0x163   :  { %v1565_v60 = vpop.f32.mrf.mxu3 }
 0x164   :  { %9212 = vst [vmem:[#allocation32_spill] sm:$0xff] %v7272_v58  ;;  %v1442_v14 = vpop.f32.mrf.mxu0 }
 0x165   :  { %v1481_v1 = vpop.f32.mrf.mxu1  ;;  %v1528_v42 = vpop.f32.mrf.mxu2  ;;  %v1443_v30 = vadd.f32 %v1442_v14, %v1398_v7  ;;  %v7290_v7 = vld [vmem:[#allocation5 + $0x28] sm:$0xff]  ;;  %v329_v14 = vmul.f32 %v201_v37, %v7288_v45 }
 0x166   :  { %v1482_v21 = vadd.f32 %v1481_v1, %v1438_v35  ;;  %v361_v2 = vmul.f32 %v169_v20, %v7290_v7 }
 0x167   :  { %2207 = vmatmul.f32.gmra.mxu0 %v6855_v31 }
 0x168   :  { %v1529_v8 = vadd.f32 %v1528_v42, %v1482_v21  ;;  %2256 = vmatmul.f32.gmra.mxu1 %v6795_v12  ;;  %2350 = vmatmul.f32.gmra.mxu3 %v6837_v51  ;;  %v393_v21 = vadd.f32 %v361_v2, %v329_v14 }
 0x16a   :  { %v7279_v9 = vadd.f32 %v1565_v60, %v1529_v8  ;;  %2305 = vmatmul.f32.gmra.mxu2 %v6826_v38  ;;  %v7299_v8 = vand.u32 4294901760, %v393_v21 }
 0x16b   :  { %v1569_v24 = vpop.f32.mrf.mxu3 }
 0x16c   :  { %v1608_v44 = vpop.f32.mrf.mxu0 }
 0x16d   :  { %v1487_v3 = vpop.f32.mrf.mxu1  ;;  %v1532_v10 = vpop.f32.mrf.mxu2 }
 0x16e   :  { %v1488_v15 = vadd.f32 %v1487_v3, %v1443_v30  ;;  %v7307_v3 = vld [vmem:[#allocation2 + $0x20] sm:$0xff] }
 0x16f   :  { %2383 = vmatmul.f32.vlgmr.msra.gmra.mxu0 %v6713_v27 }
 0x170   :  { %v1533_v33 = vadd.f32 %v1532_v10, %v1488_v15  ;;  %2260 = vmatmul.f32.gmra.mxu1 %v6815_v25  ;;  %2536 = vmatmul.f32.vlgmr.msra.gmra.mxu3 %v6713_v27  ;;  %v168_v15 = vld [vmem:[#allocation7 + $0x80] sm:$0xff] }
 0x171   :  { %2747 = vmatpush.msra.mxu0 %v7299_v8  ;;  %2898 = vmatpush.msra.mxu3 %v7299_v8 }
 0x172   :  { %v7285_v13 = vadd.f32 %v1569_v24, %v1533_v33  ;;  %2471 = vmatmul.f32.vlgmr.msra.gmra.mxu2 %v6774_v59  ;;  %v7303_v24 = vsub.f32 %v393_v21, %v7299_v8 }
 0x173   :  { %v1757_v39 = vpop.f32.mrf.mxu3 }
 0x174   :  { %v1616_v41 = vpop.f32.mrf.mxu0  ;;  %2854 = vmatpush.msra.mxu2 %v7303_v24 }
 0x175   :  { %v1673_v34 = vpop.f32.mrf.mxu1  ;;  %v1715_v60 = vpop.f32.mrf.mxu2 }
 0x176   :  { %v1674_v35 = vadd.f32 %v1673_v34, %v1608_v44  ;;  %v7309_v44 = vld [vmem:[#allocation5 + $0x20] sm:$0xff] }
 0x177   :  { %2387 = vmatmul.f32.gmra.mxu0 %v6739_v40  ;;  %v360_v34 = vmul.f32 %v168_v15, %v7309_v44 }
 0x178   :  { %v1716_v1 = vadd.f32 %v1715_v60, %v1674_v35  ;;  %2420 = vmatmul.f32.vlgmr.msra.gmra.mxu1 %v6713_v27  ;;  %2540 = vmatmul.f32.gmra.mxu3 %v6739_v40  ;;  %v2801_v60 = vand.u32 4294901760, %v7303_v24 }
 0x17a   :  { %v7297_v42 = vadd.f32 %v1757_v39, %v1716_v1  ;;  %2479 = vmatmul.f32.gmra.mxu2 %v6813_v18  ;;  %v200_v39 = vld [vmem:[#allocation8 + $0x80] sm:$0xff]  ;;  %v2802_v21 = vsub.f32 %v7303_v24, %v2801_v60  ;;  %v265_v24 = vmul.f32 %v201_v37, %v7290_v7 }
 0x17b   :  { %v1763_v30 = vpop.f32.mrf.mxu3  ;;  %v328_v14 = vmul.f32 %v200_v39, %v7307_v3 }
 0x17c   :  { %9213 = vst [vmem:[#allocation33_spill] sm:$0xff] %v7297_v42  ;;  %v1624_v10 = vpop.f32.mrf.mxu0 }
 0x17d   :  { %v1677_v33 = vpop.f32.mrf.mxu1  ;;  %v1720_v35 = vpop.f32.mrf.mxu2  ;;  %v392_v42 = vadd.f32 %v360_v34, %v328_v14 }
 0x17e   :  { %v1678_v2 = vadd.f32 %v1677_v33, %v1616_v41  ;;  %v2803_v41 = vand.u32 4294901760, %v2802_v21 }
 0x17f   :  { %2391 = vmatmul.f32.gmra.mxu0 %v6795_v12  ;;  %v7321_v33 = vand.u32 4294901760, %v392_v42 }
 0x180   :  { %v1721_v1 = vadd.f32 %v1720_v35, %v1678_v2  ;;  %2424 = vmatmul.f32.gmra.mxu1 %v6739_v40  ;;  %2544 = vmatmul.f32.gmra.mxu3 %v6795_v12  ;;  %v233_v35 = vmul.f32 %v169_v20, %v7288_v45 }
 0x181   :  { %2804 = vmatpush.msra.mxu1 %v2803_v41  ;;  %v2806_v2 = vsub.f32 %v392_v42, %v7321_v33  ;;  %2749 = vmatpush.msra.mxu0 %v7321_v33 }
 0x182   :  { %v7319_v58 = vadd.f32 %v1763_v30, %v1721_v1  ;;  %2487 = vmatmul.f32.gmra.mxu2 %v6834_v49  ;;  %2900 = vmatpush.msra.mxu3 %v7321_v33 }
 0x183   :  { %v1769_v62 = vpop.f32.mrf.mxu3  ;;  %2857 = vmatpush.msra.mxu2 %v2806_v2  ;;  %v2807_v21 = vand.u32 4294901760, %v2806_v2 }
 0x184   :  { %9214 = vst [vmem:[#allocation34_spill] sm:$0xff] %v7319_v58  ;;  %v1632_v34 = vpop.f32.mrf.mxu0  ;;  %v297_v58 = vsub.f32 %v233_v35, %v265_v24  ;;  %v264_v35 = vmul.f32 %v200_v39, %v7309_v44 }
 0x185   :  { %v1681_v14 = vpop.f32.mrf.mxu1  ;;  %v1725_v1 = vpop.f32.mrf.mxu2  ;;  %v2808_v42 = vsub.f32 %v2806_v2, %v2807_v21 }
 0x186   :  { %v1682_v30 = vadd.f32 %v1681_v14, %v1624_v10  ;;  %v7331_v41 = vand.u32 4294901760, %v297_v58  ;;  %v232_v10 = vmul.f32 %v168_v15, %v7307_v3 }
 0x187   :  { %2395 = vmatmul.f32.gmra.mxu0 %v6815_v25  ;;  %v2809_v37 = vand.u32 4294901760, %v2808_v42 }
 0x188   :  { %v1726_v11 = vadd.f32 %v1725_v1, %v1682_v30  ;;  %2428 = vmatmul.f32.gmra.mxu1 %v6795_v12  ;;  %2548 = vmatmul.f32.gmra.mxu3 %v6815_v25  ;;  %v2812_v22 = vsub.f32 %v297_v58, %v7331_v41 }
 0x189   :  { %2751 = vmatpush.msra.mxu0 %v7331_v41  ;;  %2902 = vmatpush.msra.mxu3 %v7331_v41 }
 0x18a   :  { %v7334_v20 = vadd.f32 %v1769_v62, %v1726_v11  ;;  %2495 = vmatmul.f32.gmra.mxu2 %v6855_v31  ;;  %2810 = vmatpush.msra.mxu1 %v2809_v37  ;;  %v2813_v24 = vand.u32 4294901760, %v2812_v22  ;;  %v296_v62 = vsub.f32 %v232_v10, %v264_v35  ;;  %v171_v10 = vld [vmem:[#allocation7 + $0x98] sm:$0xff] }
 0x18b   :  { %v1775_v2 = vpop.f32.mrf.mxu3  ;;  %2860 = vmatpush.msra.mxu2 %v2812_v22  ;;  %v203_v35 = vld [vmem:[#allocation8 + $0x98] sm:$0xff] }
 0x18c   :  { %9215 = vst [vmem:[#allocation35_spill] sm:$0xff] %v7334_v20  ;;  %v7342_v11 = vpop.f32.mrf.mxu0  ;;  %v2814_v1 = vsub.f32 %v2812_v22, %v2813_v24  ;;  %v2752_v42 = vand.u32 4294901760, %v296_v62 }
 0x18d   :  { %v1685_v14 = vpop.f32.mrf.mxu1  ;;  %9216 = vst [vmem:[#allocation36_spill] sm:$0xff] %v7342_v11  ;;  %v1730_v58 = vpop.f32.mrf.mxu2 }
 0x18e   :  { %v1686_v30 = vadd.f32 %v1685_v14, %v1632_v34  ;;  %v2815_v15 = vand.u32 4294901760, %v2814_v1  ;;  %v2818_v39 = vsub.f32 %v296_v62, %v2752_v42  ;;  %2753 = vmatpush.msra.mxu0 %v2752_v42  ;;  %2904 = vmatpush.msra.mxu3 %v2752_v42  ;;  %v331_v62 = vmul.f32 %v203_v35, %v7288_v45 }
 0x18f   :  { %2578 = vmatmul.f32.vlgmr.msrb.gmra.mxu0 %v6731_v36 }
 0x190   :  { %v1731_v16 = vadd.f32 %v1730_v58, %v1686_v30  ;;  %2432 = vmatmul.f32.gmra.mxu1 %v6815_v25  ;;  %2708 = vmatmul.f32.vlgmr.msrb.gmra.mxu3 %v6713_v27  ;;  %v2819_v34 = vand.u32 4294901760, %v2818_v39 }
 0x191   :  { %2816 = vmatpush.msra.mxu1 %v2815_v15  ;;  %2945 = vmatpush.msrb.mxu0 %v2801_v60 }
 0x192   :  { %v7347_v37 = vadd.f32 %v1775_v2, %v1731_v16  ;;  %2671 = vmatmul.f32.vlgmr.msrb.gmra.mxu2 %v6713_v27  ;;  %v2820_v58 = vsub.f32 %v2818_v39, %v2819_v34  ;;  %v363_v16 = vmul.f32 %v171_v10, %v7290_v7 }
 0x193   :  { %v1961_v22 = vpop.f32.mrf.mxu3  ;;  %2863 = vmatpush.msra.mxu2 %v2818_v39  ;;  %2949 = vmatpush.msrb.mxu0 %v2807_v21 }
 0x194   :  { %9217 = vst [vmem:[#allocation37_spill] sm:$0xff] %v7347_v37  ;;  %v7350_v14 = vpop.f32.mrf.mxu0  ;;  %v2821_v15 = vand.u32 4294901760, %v2820_v58  ;;  %v395_v11 = vadd.f32 %v363_v16, %v331_v62 }
 0x195   :  { %9218 = vst [vmem:[#allocation38_spill] sm:$0xff] %v7350_v14  ;;  %v7352_v30 = vpop.f32.mrf.mxu1  ;;  %v1896_v2 = vpop.f32.mrf.mxu2  ;;  %2953 = vmatpush.msrb.mxu0 %v2813_v24  ;;  %v170_v24 = vld [vmem:[#allocation7 + $0x90] sm:$0xff] }
 0x196   :  { %9219 = vst [vmem:[#allocation39_spill] sm:$0xff] %v7352_v30  ;;  %v7356_v1 = vadd.f32 %v1961_v22, %v1896_v2  ;;  %2822 = vmatpush.msra.mxu1 %v2821_v15  ;;  %v7361_v60 = vand.u32 4294901760, %v395_v11  ;;  %v202_v22 = vld [vmem:[#allocation8 + $0x90] sm:$0xff]  ;;  %v235_v30 = vmul.f32 %v171_v10, %v7288_v45 }
 0x197   :  { %2583 = vmatmul.f32.gmra.mxu0 %v6755_v48 }
 0x198   :  { %2620 = vmatmul.f32.vlgmr.msrb.gmra.mxu1 %v6745_v43  ;;  %2712 = vmatmul.f32.gmra.mxu3 %v6739_v40  ;;  %v7366_v21 = vsub.f32 %v395_v11, %v7361_v60 }
 0x199   :  { %2988 = vmatpush.msrb.mxu1 %v7299_v8  ;;  %2957 = vmatpush.msrb.mxu0 %v2819_v34  ;;  %v330_v8 = vmul.f32 %v202_v22, %v7307_v3  ;;  %v362_v34 = vmul.f32 %v170_v24, %v7309_v44 }
 0x19a   :  { %2675 = vmatmul.f32.gmra.mxu2 %v6739_v40  ;;  %v9111_v16 = vand.u32 4294901760, %v7366_v21 }
 0x19b   :  { %v1965_v39 = vpop.f32.mrf.mxu3  ;;  %3035 = vmatpush.msrb.mxu2 %v7361_v60  ;;  %2990 = vmatpush.msrb.mxu1 %v7321_v33  ;;  %v394_v33 = vadd.f32 %v362_v34, %v330_v8 }
 0x19c   :  { %v7370_v58 = vpop.f32.mrf.mxu0  ;;  %v3090_v15 = vsub.f32 %v7366_v21, %v9111_v16 }
 0x19d   :  { %9220 = vst [vmem:[#allocation40_spill] sm:$0xff] %v7370_v58  ;;  %v7372_v62 = vpop.f32.mrf.mxu1  ;;  %v1904_v2 = vpop.f32.mrf.mxu2  ;;  %2992 = vmatpush.msrb.mxu1 %v7331_v41  ;;  %v7388_v4 = vand.u32 4294901760, %v394_v33 }
 0x19e   :  { %9221 = vst [vmem:[#allocation41_spill] sm:$0xff] %v7372_v62  ;;  %v7378_v11 = vadd.f32 %v1965_v39, %v1904_v2  ;;  %v267_v62 = vmul.f32 %v203_v35, %v7290_v7  ;;  %v3091_v14 = vand.u32 4294901760, %v3090_v15  ;;  %v234_v39 = vmul.f32 %v170_v24, %v7307_v3 }
 0x19f   :  { %2588 = vmatmul.f32.gmra.mxu0 %v6808_v17  ;;  %2994 = vmatpush.msrb.mxu1 %v2752_v42  ;;  %v266_v2 = vmul.f32 %v202_v22, %v7309_v44  ;;  %v3094_v8 = vsub.f32 %v394_v33, %v7388_v4 }
 0x1a0   :  { %2626 = vmatmul.f32.gmra.mxu1 %v6769_v56  ;;  %2716 = vmatmul.f32.gmra.mxu3 %v6795_v12  ;;  %v299_v41 = vsub.f32 %v235_v30, %v267_v62 }
 0x1a1   :  { %3092 = vmatpush.msrb.mxu3 %v3091_v14  ;;  %3037 = vmatpush.msrb.mxu2 %v7388_v4  ;;  %v298_v35 = vsub.f32 %v234_v39, %v266_v2  ;;  %v3095_v42 = vand.u32 4294901760, %v3094_v8 }
 0x1a2   :  { %2679 = vmatmul.f32.gmra.mxu2 %v6795_v12  ;;  %v7395_v10 = vand.u32 4294901760, %v299_v41 }
 0x1a3   :  { %v1969_v34 = vpop.f32.mrf.mxu3  ;;  %v3040_v22 = vand.u32 4294901760, %v298_v35  ;;  %v3096_v62 = vsub.f32 %v3094_v8, %v3095_v42 }
 0x1a4   :  { %v7397_v15 = vpop.f32.mrf.mxu0  ;;  %3039 = vmatpush.msrb.mxu2 %v7395_v10  ;;  %v3100_v24 = vsub.f32 %v299_v41, %v7395_v10 }
 0x1a5   :  { %9222 = vst [vmem:[#allocation42_spill] sm:$0xff] %v7397_v15  ;;  %v7399_v16 = vpop.f32.mrf.mxu1  ;;  %v1912_v30 = vpop.f32.mrf.mxu2  ;;  %v3106_v39 = vsub.f32 %v298_v35, %v3040_v22  ;;  %v3097_v2 = vand.u32 4294901760, %v3096_v62 }
 0x1a6   :  { %9223 = vst [vmem:[#allocation43_spill] sm:$0xff] %v7399_v16  ;;  %v7403_v14 = vadd.f32 %v1969_v34, %v1912_v30  ;;  %v3101_v33 = vand.u32 4294901760, %v3100_v24  ;;  %3041 = vmatpush.msrb.mxu2 %v3040_v22 }
 0x1a7   :  { %2593 = vmatmul.f32.gmra.mxu0 %v6826_v38  ;;  %v3107_v26 = vand.u32 4294901760, %v3106_v39  ;;  %3098 = vmatpush.msrb.mxu3 %v3097_v2 }
 0x1a8   :  { %2632 = vmatmul.f32.gmra.mxu1 %v6818_v28  ;;  %2720 = vmatmul.f32.gmra.mxu3 %v6815_v25  ;;  %v3102_v54 = vsub.f32 %v3100_v24, %v3101_v33 }
 0x1a9   :  { %v3108_v34 = vsub.f32 %v3106_v39, %v3107_v26 }
 0x1aa   :  { %2683 = vmatmul.f32.gmra.mxu2 %v6815_v25  ;;  %v3103_v15 = vand.u32 4294901760, %v3102_v54 }
 0x1ab   :  { %v1973_v41 = vpop.f32.mrf.mxu3  ;;  %v3109_v16 = vand.u32 4294901760, %v3108_v34 }
 0x1ac   :  { %v2003_v37 = vpop.f32.mrf.mxu0  ;;  %3104 = vmatpush.msrb.mxu3 %v3103_v15  ;;  %v9225_v15 = vand.u32 4294901760, %v7366_v21 }
 0x1ad   :  { %v7409_v30 = vpop.f32.mrf.mxu1  ;;  %v1920_v19 = vpop.f32.mrf.mxu2  ;;  %v2004_v54 = vadd.f32 %v2003_v37, %v7356_v1 }
 0x1ae   :  { %9224 = vst [vmem:[#allocation44_spill] sm:$0xff] %v7409_v30  ;;  %v1974_v58 = vadd.f32 %v1973_v41, %v1920_v19  ;;  %3110 = vmatpush.msrb.mxu3 %v3109_v16 }
 0x1af   :  { %2759 = vmatmul.f32.vlgmr.msra.gmra.mxu0 %v6774_v59 }
 0x1b0   :  { %2638 = vmatmul.f32.gmra.mxu1 %v6837_v51  ;;  %2908 = vmatmul.f32.vlgmr.msra.gmra.mxu3 %v6745_v43 }
 0x1b1   :  { %3142 = vmatpush.msra.mxu0 %v7366_v21  ;;  %3276 = vmatpush.msra.mxu3 %v7361_v60 }
 0x1b2   :  { %2866 = vmatmul.f32.vlgmr.msra.gmra.mxu2 %v6731_v36 }
 0x1b3   :  { %v2133_v35 = vpop.f32.mrf.mxu3  ;;  %3233 = vmatpush.msra.mxu2 %v9225_v15  ;;  %3145 = vmatpush.msra.mxu0 %v3094_v8 }
 0x1b4   :  { %v2008_v19 = vpop.f32.mrf.mxu0  ;;  %3278 = vmatpush.msra.mxu3 %v7388_v4 }
 0x1b5   :  { %v2045_v62 = vpop.f32.mrf.mxu1  ;;  %v2096_v41 = vpop.f32.mrf.mxu2  ;;  %3237 = vmatpush.msra.mxu2 %v3095_v42  ;;  %3148 = vmatpush.msra.mxu0 %v3100_v24  ;;  %v2009_v1 = vadd.f32 %v2008_v19, %v7378_v11 }
 0x1b6   :  { %v2046_v2 = vadd.f32 %v2045_v62, %v2004_v54  ;;  %3280 = vmatpush.msra.mxu3 %v7395_v10 }
 0x1b7   :  { %2767 = vmatmul.f32.gmra.mxu0 %v6813_v18  ;;  %3241 = vmatpush.msra.mxu2 %v3101_v33 }
 0x1b8   :  { %v2097_v16 = vadd.f32 %v2096_v41, %v2046_v2  ;;  %2824 = vmatmul.f32.vlgmr.msra.gmra.mxu1 %v6713_v27  ;;  %2914 = vmatmul.f32.gmra.mxu3 %v6769_v56 }
 0x1b9   :  { %3186 = vmatpush.msra.mxu1 %v7361_v60  ;;  %3151 = vmatpush.msra.mxu0 %v3106_v39 }
 0x1ba   :  { %v7426_v37 = vadd.f32 %v2133_v35, %v2097_v16  ;;  %2871 = vmatmul.f32.gmra.mxu2 %v6755_v48  ;;  %3282 = vmatpush.msra.mxu3 %v3040_v22 }
 0x1bb   :  { %3188 = vmatpush.msra.mxu1 %v7388_v4  ;;  %v2137_v21 = vpop.f32.mrf.mxu3  ;;  %3245 = vmatpush.msra.mxu2 %v3107_v26 }
 0x1bc   :  { %9226 = vst [vmem:[#allocation45_spill] sm:$0xff] %v7426_v37  ;;  %v2013_v8 = vpop.f32.mrf.mxu0 }
 0x1bd   :  { %v2051_v42 = vpop.f32.mrf.mxu1  ;;  %3190 = vmatpush.msra.mxu1 %v7395_v10  ;;  %v2100_v34 = vpop.f32.mrf.mxu2  ;;  %v2014_v26 = vadd.f32 %v2013_v8, %v7403_v14  ;;  %v173_v8 = vld [vmem:[#allocation7 + $0xa8] sm:$0xff] }
 0x1be   :  { %v2052_v24 = vadd.f32 %v2051_v42, %v2009_v1  ;;  %v205_v42 = vld [vmem:[#allocation8 + $0xa8] sm:$0xff] }
 0x1bf   :  { %3192 = vmatpush.msra.mxu1 %v3040_v22  ;;  %2775 = vmatmul.f32.gmra.mxu0 %v6834_v49 }
 0x1c0   :  { %v2101_v60 = vadd.f32 %v2100_v34, %v2052_v24  ;;  %2828 = vmatmul.f32.gmra.mxu1 %v6739_v40  ;;  %2920 = vmatmul.f32.gmra.mxu3 %v6818_v28  ;;  %v333_v34 = vmul.f32 %v205_v42, %v7288_v45 }
 0x1c2   :  { %v7435_v4 = vadd.f32 %v2137_v21, %v2101_v60  ;;  %2876 = vmatmul.f32.gmra.mxu2 %v6808_v17  ;;  %v365_v60 = vmul.f32 %v173_v8, %v7290_v7 }
 0x1c3   :  { %v2141_v11 = vpop.f32.mrf.mxu3 }
 0x1c4   :  { %9227 = vst [vmem:[#allocation46_spill] sm:$0xff] %v7435_v4  ;;  %v2018_v33 = vpop.f32.mrf.mxu0 }
 0x1c5   :  { %v2057_v39 = vpop.f32.mrf.mxu1  ;;  %v2104_v54 = vpop.f32.mrf.mxu2  ;;  %v2019_v15 = vadd.f32 %v2018_v33, %v1974_v58  ;;  %v397_v33 = vadd.f32 %v365_v60, %v333_v34 }
 0x1c6   :  { %v2058_v10 = vadd.f32 %v2057_v39, %v2014_v26 }
 0x1c7   :  { %2783 = vmatmul.f32.gmra.mxu0 %v6855_v31 }
 0x1c8   :  { %v2105_v35 = vadd.f32 %v2104_v54, %v2058_v10  ;;  %2832 = vmatmul.f32.gmra.mxu1 %v6795_v12  ;;  %2926 = vmatmul.f32.gmra.mxu3 %v6837_v51  ;;  %v7456_v10 = vand.u32 4294901760, %v397_v33 }
 0x1ca   :  { %v7442_v22 = vadd.f32 %v2141_v11, %v2105_v35  ;;  %2881 = vmatmul.f32.gmra.mxu2 %v6826_v38  ;;  %v7462_v35 = vsub.f32 %v397_v33, %v7456_v10 }
 0x1cb   :  { %v2145_v19 = vpop.f32.mrf.mxu3 }
 0x1cc   :  { %9228 = vst [vmem:[#allocation47_spill] sm:$0xff] %v7442_v22  ;;  %v2184_v14 = vpop.f32.mrf.mxu0 }
 0x1cd   :  { %v2063_v62 = vpop.f32.mrf.mxu1  ;;  %v2108_v41 = vpop.f32.mrf.mxu2 }
 0x1ce   :  { %v2064_v2 = vadd.f32 %v2063_v62, %v2019_v15  ;;  %v204_v62 = vld [vmem:[#allocation8 + $0xa0] sm:$0xff] }
 0x1cf   :  { %2959 = vmatmul.f32.vlgmr.msrb.gmra.mxu0 %v6713_v27 }
 0x1d0   :  { %v2109_v16 = vadd.f32 %v2108_v41, %v2064_v2  ;;  %2836 = vmatmul.f32.gmra.mxu1 %v6815_v25  ;;  %3112 = vmatmul.f32.vlgmr.msrb.gmra.mxu3 %v6713_v27  ;;  %v9112_v41 = vand.u32 4294901760, %v7462_v35 }
 0x1d1   :  { %3323 = vmatpush.msrb.mxu0 %v7456_v10  ;;  %3474 = vmatpush.msrb.mxu3 %v7456_v10 }
 0x1d2   :  { %v7448_v1 = vadd.f32 %v2145_v19, %v2109_v16  ;;  %3047 = vmatmul.f32.vlgmr.msrb.gmra.mxu2 %v6774_v59  ;;  %v172_v19 = vld [vmem:[#allocation7 + $0xa0] sm:$0xff]  ;;  %v332_v16 = vmul.f32 %v204_v62, %v7307_v3  ;;  %v3378_v60 = vsub.f32 %v7462_v35, %v9112_v41 }
 0x1d3   :  { %v2333_v21 = vpop.f32.mrf.mxu3  ;;  %3430 = vmatpush.msrb.mxu2 %v7462_v35 }
 0x1d4   :  { %9229 = vst [vmem:[#allocation48_spill] sm:$0xff] %v7448_v1  ;;  %v2192_v58 = vpop.f32.mrf.mxu0  ;;  %v3379_v33 = vand.u32 4294901760, %v3378_v60 }
 0x1d5   :  { %v2249_v24 = vpop.f32.mrf.mxu1  ;;  %v2291_v11 = vpop.f32.mrf.mxu2 }
 0x1d6   :  { %v2250_v26 = vadd.f32 %v2249_v24, %v2184_v14 }
 0x1d7   :  { %2963 = vmatmul.f32.gmra.mxu0 %v6739_v40 }
 0x1d8   :  { %v2292_v39 = vadd.f32 %v2291_v11, %v2250_v26  ;;  %2996 = vmatmul.f32.vlgmr.msrb.gmra.mxu1 %v6713_v27  ;;  %3116 = vmatmul.f32.gmra.mxu3 %v6739_v40 }
 0x1d9   :  { %3380 = vmatpush.msrb.mxu1 %v3379_v33 }
 0x1da   :  { %v7458_v54 = vadd.f32 %v2333_v21, %v2292_v39  ;;  %3055 = vmatmul.f32.gmra.mxu2 %v6813_v18  ;;  %v364_v21 = vmul.f32 %v172_v19, %v7309_v44 }
 0x1db   :  { %v2339_v15 = vpop.f32.mrf.mxu3 }
 0x1dc   :  { %9230 = vst [vmem:[#allocation49_spill] sm:$0xff] %v7458_v54  ;;  %v2200_v14 = vpop.f32.mrf.mxu0  ;;  %v396_v26 = vadd.f32 %v364_v21, %v332_v16  ;;  %v237_v16 = vmul.f32 %v173_v8, %v7288_v45  ;;  %v269_v21 = vmul.f32 %v205_v42, %v7290_v7 }
 0x1dd   :  { %v2253_v2 = vpop.f32.mrf.mxu1  ;;  %v2296_v34 = vpop.f32.mrf.mxu2 }
 0x1de   :  { %v2254_v24 = vadd.f32 %v2253_v2, %v2192_v58  ;;  %v7476_v39 = vand.u32 4294901760, %v396_v26  ;;  %v301_v41 = vsub.f32 %v237_v16, %v269_v21 }
 0x1df   :  { %2967 = vmatmul.f32.gmra.mxu0 %v6795_v12 }
 0x1e0   :  { %v2297_v11 = vadd.f32 %v2296_v34, %v2254_v24  ;;  %3000 = vmatmul.f32.gmra.mxu1 %v6739_v40  ;;  %3120 = vmatmul.f32.gmra.mxu3 %v6795_v12  ;;  %v3382_v58 = vsub.f32 %v396_v26, %v7476_v39  ;;  %v7488_v26 = vand.u32 4294901760, %v301_v41 }
 0x1e1   :  { %3325 = vmatpush.msrb.mxu0 %v7476_v39  ;;  %3476 = vmatpush.msrb.mxu3 %v7476_v39 }
 0x1e2   :  { %v7478_v54 = vadd.f32 %v2339_v15, %v2297_v11  ;;  %3063 = vmatmul.f32.gmra.mxu2 %v6834_v49  ;;  %v3383_v60 = vand.u32 4294901760, %v3382_v58  ;;  %v3388_v42 = vsub.f32 %v301_v41, %v7488_v26 }
 0x1e3   :  { %v2345_v2 = vpop.f32.mrf.mxu3  ;;  %3433 = vmatpush.msrb.mxu2 %v3382_v58  ;;  %3327 = vmatpush.msrb.mxu0 %v7488_v26 }
 0x1e4   :  { %9231 = vst [vmem:[#allocation50_spill] sm:$0xff] %v7478_v54  ;;  %v2208_v24 = vpop.f32.mrf.mxu0  ;;  %v3384_v54 = vsub.f32 %v3382_v58, %v3383_v60  ;;  %3478 = vmatpush.msrb.mxu3 %v7488_v26  ;;  %v268_v58 = vmul.f32 %v204_v62, %v7309_v44  ;;  %v3389_v21 = vand.u32 4294901760, %v3388_v42 }
 0x1e5   :  { %v2257_v34 = vpop.f32.mrf.mxu1  ;;  %v2301_v11 = vpop.f32.mrf.mxu2  ;;  %3436 = vmatpush.msrb.mxu2 %v3388_v42 }
 0x1e6   :  { %v2258_v15 = vadd.f32 %v2257_v34, %v2200_v14  ;;  %v3385_v8 = vand.u32 4294901760, %v3384_v54  ;;  %v236_v14 = vmul.f32 %v172_v19, %v7307_v3 }
 0x1e7   :  { %2971 = vmatmul.f32.gmra.mxu0 %v6815_v25 }
 0x1e8   :  { %v2302_v33 = vadd.f32 %v2301_v11, %v2258_v15  ;;  %3004 = vmatmul.f32.gmra.mxu1 %v6795_v12  ;;  %3124 = vmatmul.f32.gmra.mxu3 %v6815_v25  ;;  %v3390_v11 = vsub.f32 %v3388_v42, %v3389_v21  ;;  %v9235_v42 = vand.u32 4294901760, %v7462_v35 }
 0x1e9   :  { %3386 = vmatpush.msrb.mxu1 %v3385_v8 }
 0x1ea   :  { %v7491_v4 = vadd.f32 %v2345_v2, %v2302_v33  ;;  %3071 = vmatmul.f32.gmra.mxu2 %v6855_v31  ;;  %v300_v2 = vsub.f32 %v236_v14, %v268_v58  ;;  %v3391_v19 = vand.u32 4294901760, %v3390_v11  ;;  %v175_v58 = vld [vmem:[#allocation7 + $0xb8] sm:$0xff] }
 0x1eb   :  { %v2351_v16 = vpop.f32.mrf.mxu3 }
 0x1ec   :  { %9232 = vst [vmem:[#allocation51_spill] sm:$0xff] %v7491_v4  ;;  %v7499_v54 = vpop.f32.mrf.mxu0  ;;  %v3328_v33 = vand.u32 4294901760, %v300_v2  ;;  %3392 = vmatpush.msrb.mxu1 %v3391_v19 }
 0x1ed   :  { %v2261_v34 = vpop.f32.mrf.mxu1  ;;  %9233 = vst [vmem:[#allocation52_spill] sm:$0xff] %v7499_v54  ;;  %v2306_v41 = vpop.f32.mrf.mxu2 }
 0x1ee   :  { %v2262_v15 = vadd.f32 %v2261_v34, %v2208_v24  ;;  %v3394_v62 = vsub.f32 %v300_v2, %v3328_v33  ;;  %3329 = vmatpush.msrb.mxu0 %v3328_v33  ;;  %3480 = vmatpush.msrb.mxu3 %v3328_v33  ;;  %v207_v34 = vld [vmem:[#allocation8 + $0xb8] sm:$0xff] }
 0x1ef   :  { %3154 = vmatmul.f32.vlgmr.msra.gmra.mxu0 %v6731_v36 }
 0x1f0   :  { %v2307_v37 = vadd.f32 %v2306_v41, %v2262_v15  ;;  %3008 = vmatmul.f32.gmra.mxu1 %v6815_v25  ;;  %3284 = vmatmul.f32.vlgmr.msra.gmra.mxu3 %v6713_v27  ;;  %v3395_v24 = vand.u32 4294901760, %v3394_v62 }
 0x1f1   :  { %3521 = vmatpush.msra.mxu0 %v9235_v42  ;;  %3439 = vmatpush.msrb.mxu2 %v3394_v62 }
 0x1f2   :  { %v7504_v8 = vadd.f32 %v2351_v16, %v2307_v37  ;;  %3247 = vmatmul.f32.vlgmr.msra.gmra.mxu2 %v6713_v27  ;;  %v3396_v2 = vsub.f32 %v3394_v62, %v3395_v24  ;;  %v335_v37 = vmul.f32 %v207_v34, %v7288_v45  ;;  %v367_v16 = vmul.f32 %v175_v58, %v7290_v7 }
 0x1f3   :  { %v2537_v14 = vpop.f32.mrf.mxu3  ;;  %3525 = vmatpush.msra.mxu0 %v3383_v60 }
 0x1f4   :  { %9234 = vst [vmem:[#allocation53_spill] sm:$0xff] %v7504_v8  ;;  %v7509_v15 = vpop.f32.mrf.mxu0  ;;  %v3397_v54 = vand.u32 4294901760, %v3396_v2  ;;  %v399_v35 = vadd.f32 %v367_v16, %v335_v37 }
 0x1f5   :  { %9236 = vst [vmem:[#allocation54_spill] sm:$0xff] %v7509_v15  ;;  %v7511_v41 = vpop.f32.mrf.mxu1  ;;  %v2472_v11 = vpop.f32.mrf.mxu2  ;;  %3529 = vmatpush.msra.mxu0 %v3389_v21  ;;  %v174_v21 = vld [vmem:[#allocation7 + $0xb0] sm:$0xff]  ;;  %v271_v15 = vmul.f32 %v207_v34, %v7290_v7 }
 0x1f6   :  { %9237 = vst [vmem:[#allocation55_spill] sm:$0xff] %v7511_v41  ;;  %v7515_v19 = vadd.f32 %v2537_v14, %v2472_v11  ;;  %3398 = vmatpush.msrb.mxu1 %v3397_v54  ;;  %v7520_v42 = vand.u32 4294901760, %v399_v35  ;;  %v206_v14 = vld [vmem:[#allocation8 + $0xb0] sm:$0xff] }
 0x1f7   :  { %3159 = vmatmul.f32.gmra.mxu0 %v6755_v48 }
 0x1f8   :  { %3196 = vmatmul.f32.vlgmr.msra.gmra.mxu1 %v6745_v43  ;;  %3288 = vmatmul.f32.gmra.mxu3 %v6739_v40  ;;  %v7525_v60 = vsub.f32 %v399_v35, %v7520_v42 }
 0x1f9   :  { %3564 = vmatpush.msra.mxu1 %v7456_v10  ;;  %3533 = vmatpush.msra.mxu0 %v3395_v24  ;;  %v334_v10 = vmul.f32 %v206_v14, %v7307_v3  ;;  %v366_v24 = vmul.f32 %v174_v21, %v7309_v44 }
 0x1fa   :  { %3251 = vmatmul.f32.gmra.mxu2 %v6739_v40  ;;  %v9113_v37 = vand.u32 4294901760, %v7525_v60 }
 0x1fb   :  { %v2541_v62 = vpop.f32.mrf.mxu3  ;;  %3611 = vmatpush.msra.mxu2 %v7520_v42  ;;  %3566 = vmatpush.msra.mxu1 %v7476_v39  ;;  %v398_v39 = vadd.f32 %v366_v24, %v334_v10 }
 0x1fc   :  { %v7529_v2 = vpop.f32.mrf.mxu0  ;;  %v3666_v35 = vsub.f32 %v7525_v60, %v9113_v37 }
 0x1fd   :  { %9238 = vst [vmem:[#allocation56_spill] sm:$0xff] %v7529_v2  ;;  %v7531_v54 = vpop.f32.mrf.mxu1  ;;  %v2480_v16 = vpop.f32.mrf.mxu2  ;;  %3568 = vmatpush.msra.mxu1 %v7488_v26  ;;  %v7547_v8 = vand.u32 4294901760, %v398_v39 }
 0x1fe   :  { %9239 = vst [vmem:[#allocation57_spill] sm:$0xff] %v7531_v54  ;;  %v7537_v11 = vadd.f32 %v2541_v62, %v2480_v16  ;;  %v239_v54 = vmul.f32 %v175_v58, %v7288_v45  ;;  %v3667_v41 = vand.u32 4294901760, %v3666_v35  ;;  %v238_v62 = vmul.f32 %v174_v21, %v7307_v3 }
 0x1ff   :  { %3164 = vmatmul.f32.gmra.mxu0 %v6808_v17  ;;  %3570 = vmatpush.msra.mxu1 %v3328_v33  ;;  %v270_v16 = vmul.f32 %v206_v14, %v7309_v44  ;;  %v3670_v10 = vsub.f32 %v398_v39, %v7547_v8 }
 0x200   :  { %3202 = vmatmul.f32.gmra.mxu1 %v6769_v56  ;;  %3292 = vmatmul.f32.gmra.mxu3 %v6795_v12  ;;  %v303_v26 = vsub.f32 %v239_v54, %v271_v15 }
 0x201   :  { %3668 = vmatpush.msra.mxu3 %v3667_v41  ;;  %3613 = vmatpush.msra.mxu2 %v7547_v8  ;;  %v302_v7 = vsub.f32 %v238_v62, %v270_v16  ;;  %v3671_v33 = vand.u32 4294901760, %v3670_v10 }
 0x202   :  { %3255 = vmatmul.f32.gmra.mxu2 %v6795_v12  ;;  %v7554_v45 = vand.u32 4294901760, %v303_v26 }
 0x203   :  { %v2545_v24 = vpop.f32.mrf.mxu3  ;;  %v3616_v44 = vand.u32 4294901760, %v302_v7  ;;  %v3672_v21 = vsub.f32 %v3670_v10, %v3671_v33 }
 0x204   :  { %v7556_v58 = vpop.f32.mrf.mxu0  ;;  %3615 = vmatpush.msra.mxu2 %v7554_v45  ;;  %v3676_v3 = vsub.f32 %v303_v26, %v7554_v45 }
 0x205   :  { %9240 = vst [vmem:[#allocation58_spill] sm:$0xff] %v7556_v58  ;;  %v7558_v34 = vpop.f32.mrf.mxu1  ;;  %v2488_v15 = vpop.f32.mrf.mxu2  ;;  %v3682_v54 = vsub.f32 %v302_v7, %v3616_v44  ;;  %v3673_v35 = vand.u32 4294901760, %v3672_v21 }
 0x206   :  { %9241 = vst [vmem:[#allocation59_spill] sm:$0xff] %v7558_v34  ;;  %v7562_v41 = vadd.f32 %v2545_v24, %v2488_v15  ;;  %v3677_v14 = vand.u32 4294901760, %v3676_v3  ;;  %3617 = vmatpush.msra.mxu2 %v3616_v44 }
 0x207   :  { %3169 = vmatmul.f32.gmra.mxu0 %v6826_v38  ;;  %v3683_v62 = vand.u32 4294901760, %v3682_v54  ;;  %3674 = vmatpush.msra.mxu3 %v3673_v35  ;;  %v9243_v35 = vand.u32 4294901760, %v7525_v60 }
 0x208   :  { %3208 = vmatmul.f32.gmra.mxu1 %v6818_v28  ;;  %3296 = vmatmul.f32.gmra.mxu3 %v6815_v25  ;;  %v3678_v39 = vsub.f32 %v3676_v3, %v3677_v14 }
 0x209   :  { %v3684_v24 = vsub.f32 %v3682_v54, %v3683_v62 }
 0x20a   :  { %3259 = vmatmul.f32.gmra.mxu2 %v6815_v25  ;;  %v3679_v16 = vand.u32 4294901760, %v3678_v39 }
 0x20b   :  { %v2549_v26 = vpop.f32.mrf.mxu3  ;;  %v3685_v34 = vand.u32 4294901760, %v3684_v24 }
 0x20c   :  { %v2579_v37 = vpop.f32.mrf.mxu0  ;;  %3680 = vmatpush.msra.mxu3 %v3679_v16 }
 0x20d   :  { %v7568_v15 = vpop.f32.mrf.mxu1  ;;  %v2496_v58 = vpop.f32.mrf.mxu2  ;;  %v2580_v7 = vadd.f32 %v2579_v37, %v7515_v19 }
 0x20e   :  { %9242 = vst [vmem:[#allocation60_spill] sm:$0xff] %v7568_v15  ;;  %v2550_v2 = vadd.f32 %v2549_v26, %v2496_v58  ;;  %3686 = vmatpush.msra.mxu3 %v3685_v34 }
 0x20f   :  { %3335 = vmatmul.f32.vlgmr.msrb.gmra.mxu0 %v6774_v59 }
 0x210   :  { %3214 = vmatmul.f32.gmra.mxu1 %v6837_v51  ;;  %3484 = vmatmul.f32.vlgmr.msrb.gmra.mxu3 %v6745_v43 }
 0x211   :  { %3718 = vmatpush.msrb.mxu0 %v7525_v60  ;;  %3852 = vmatpush.msrb.mxu3 %v7520_v42 }
 0x212   :  { %3442 = vmatmul.f32.vlgmr.msrb.gmra.mxu2 %v6731_v36 }
 0x213   :  { %v2709_v21 = vpop.f32.mrf.mxu3  ;;  %3809 = vmatpush.msrb.mxu2 %v9243_v35  ;;  %3721 = vmatpush.msrb.mxu0 %v3670_v10 }
 0x214   :  { %v2584_v58 = vpop.f32.mrf.mxu0  ;;  %3854 = vmatpush.msrb.mxu3 %v7547_v8 }
 0x215   :  { %v2621_v39 = vpop.f32.mrf.mxu1  ;;  %v2672_v16 = vpop.f32.mrf.mxu2  ;;  %3813 = vmatpush.msrb.mxu2 %v3671_v33  ;;  %3724 = vmatpush.msrb.mxu0 %v3676_v3  ;;  %v2585_v60 = vadd.f32 %v2584_v58, %v7537_v11 }
 0x216   :  { %v2622_v26 = vadd.f32 %v2621_v39, %v2580_v7  ;;  %3856 = vmatpush.msrb.mxu3 %v7554_v45 }
 0x217   :  { %3343 = vmatmul.f32.gmra.mxu0 %v6813_v18  ;;  %3817 = vmatpush.msrb.mxu2 %v3677_v14 }
 0x218   :  { %v2673_v34 = vadd.f32 %v2672_v16, %v2622_v26  ;;  %3400 = vmatmul.f32.vlgmr.msrb.gmra.mxu1 %v6713_v27  ;;  %3490 = vmatmul.f32.gmra.mxu3 %v6769_v56 }
 0x219   :  { %3762 = vmatpush.msrb.mxu1 %v7520_v42  ;;  %3727 = vmatpush.msrb.mxu0 %v3682_v54 }
 0x21a   :  { %v7585_v19 = vadd.f32 %v2709_v21, %v2673_v34  ;;  %3447 = vmatmul.f32.gmra.mxu2 %v6755_v48  ;;  %3858 = vmatpush.msrb.mxu3 %v3616_v44 }
 0x21b   :  { %3764 = vmatpush.msrb.mxu1 %v7547_v8  ;;  %v2713_v37 = vpop.f32.mrf.mxu3  ;;  %3821 = vmatpush.msrb.mxu2 %v3683_v62 }
 0x21c   :  { %9244 = vst [vmem:[#allocation61_spill] sm:$0xff] %v7585_v19  ;;  %v2589_v10 = vpop.f32.mrf.mxu0 }
 0x21d   :  { %v2627_v33 = vpop.f32.mrf.mxu1  ;;  %3766 = vmatpush.msrb.mxu1 %v7554_v45  ;;  %v2676_v24 = vpop.f32.mrf.mxu2  ;;  %v2590_v11 = vadd.f32 %v2589_v10, %v7562_v41  ;;  %v7610_v10 = vld [vmem:[#allocation2 + $0x38] sm:$0xff] }
 0x21e   :  { %v2628_v3 = vadd.f32 %v2627_v33, %v2585_v60  ;;  %v177_v33 = vld [vmem:[#allocation7 + $0xc8] sm:$0xff] }
 0x21f   :  { %3768 = vmatpush.msrb.mxu1 %v3616_v44  ;;  %3351 = vmatmul.f32.gmra.mxu0 %v6834_v49 }
 0x220   :  { %v2677_v42 = vadd.f32 %v2676_v24, %v2628_v3  ;;  %3404 = vmatmul.f32.gmra.mxu1 %v6739_v40  ;;  %3496 = vmatmul.f32.gmra.mxu3 %v6818_v28 }
 0x222   :  { %v7594_v8 = vadd.f32 %v2713_v37, %v2677_v42  ;;  %3452 = vmatmul.f32.gmra.mxu2 %v6808_v17  ;;  %v209_v42 = vld [vmem:[#allocation8 + $0xc8] sm:$0xff] }
 0x223   :  { %v2717_v14 = vpop.f32.mrf.mxu3 }
 0x224   :  { %9245 = vst [vmem:[#allocation62_spill] sm:$0xff] %v7594_v8  ;;  %v2594_v54 = vpop.f32.mrf.mxu0 }
 0x225   :  { %v2633_v62 = vpop.f32.mrf.mxu1  ;;  %v2680_v7 = vpop.f32.mrf.mxu2  ;;  %v2595_v35 = vadd.f32 %v2594_v54, %v2550_v2  ;;  %v7612_v2 = vld [vmem:[#allocation5 + $0x38] sm:$0xff] }
 0x226   :  { %v2634_v45 = vadd.f32 %v2633_v62, %v2590_v11  ;;  %v369_v11 = vmul.f32 %v177_v33, %v7612_v2  ;;  %v337_v62 = vmul.f32 %v209_v42, %v7610_v10 }
 0x227   :  { %3359 = vmatmul.f32.gmra.mxu0 %v6855_v31 }
 0x228   :  { %v2681_v21 = vadd.f32 %v2680_v7, %v2634_v45  ;;  %3408 = vmatmul.f32.gmra.mxu1 %v6795_v12  ;;  %3502 = vmatmul.f32.gmra.mxu3 %v6837_v51  ;;  %v401_v7 = vadd.f32 %v369_v11, %v337_v62 }
 0x22a   :  { %v7601_v44 = vadd.f32 %v2717_v14, %v2681_v21  ;;  %3457 = vmatmul.f32.gmra.mxu2 %v6826_v38 }
 0x22b   :  { %v2721_v58 = vpop.f32.mrf.mxu3 }
 0x22c   :  { %9246 = vst [vmem:[#allocation63_spill] sm:$0xff] %v7601_v44  ;;  %v2760_v41 = vpop.f32.mrf.mxu0 }
 0x22d   :  { %v2639_v39 = vpop.f32.mrf.mxu1  ;;  %v2684_v16 = vpop.f32.mrf.mxu2 }
 0x22e   :  { %v2640_v26 = vadd.f32 %v2639_v39, %v2595_v35  ;;  %v7621_v35 = vand.u32 4294901760, %v401_v7 }
 0x22f   :  { %3535 = vmatmul.f32.vlgmr.msra.gmra.mxu0 %v6713_v27 }
 0x230   :  { %v2685_v34 = vadd.f32 %v2684_v16, %v2640_v26  ;;  %3412 = vmatmul.f32.gmra.mxu1 %v6815_v25  ;;  %3688 = vmatmul.f32.vlgmr.msra.gmra.mxu3 %v6713_v27  ;;  %v7625_v39 = vsub.f32 %v401_v7, %v7621_v35  ;;  %v7631_v26 = vld [vmem:[#allocation5 + $0x30] sm:$0xff]  ;;  %v176_v16 = vld [vmem:[#allocation7 + $0xc0] sm:$0xff] }
 0x231   :  { %3899 = vmatpush.msra.mxu0 %v7621_v35  ;;  %4050 = vmatpush.msra.mxu3 %v7621_v35  ;;  %v368_v11 = vmul.f32 %v176_v16, %v7631_v26 }
 0x232   :  { %v7607_v60 = vadd.f32 %v2721_v58, %v2685_v34  ;;  %3623 = vmatmul.f32.vlgmr.msra.gmra.mxu2 %v6774_v59  ;;  %v3953_v62 = vand.u32 4294901760, %v7625_v39 }
 0x233   :  { %v2909_v37 = vpop.f32.mrf.mxu3  ;;  %4006 = vmatpush.msra.mxu2 %v7625_v39 }
 0x234   :  { %9247 = vst [vmem:[#allocation64_spill] sm:$0xff] %v7607_v60  ;;  %v2768_v3 = vpop.f32.mrf.mxu0  ;;  %v3954_v19 = vsub.f32 %v7625_v39, %v3953_v62  ;;  %v273_v39 = vmul.f32 %v209_v42, %v7612_v2 }
 0x235   :  { %v2825_v24 = vpop.f32.mrf.mxu1  ;;  %v2867_v54 = vpop.f32.mrf.mxu2 }
 0x236   :  { %v2826_v14 = vadd.f32 %v2825_v24, %v2760_v41  ;;  %v7629_v41 = vld [vmem:[#allocation2 + $0x30] sm:$0xff]  ;;  %v208_v24 = vld [vmem:[#allocation8 + $0xc0] sm:$0xff] }
 0x237   :  { %3539 = vmatmul.f32.gmra.mxu0 %v6739_v40  ;;  %v240_v15 = vmul.f32 %v176_v16, %v7629_v41 }
 0x238   :  { %v2868_v45 = vadd.f32 %v2867_v54, %v2826_v14  ;;  %3572 = vmatmul.f32.vlgmr.msra.gmra.mxu1 %v6713_v27  ;;  %3692 = vmatmul.f32.gmra.mxu3 %v6739_v40 }
 0x23a   :  { %v7619_v21 = vadd.f32 %v2909_v37, %v2868_v45  ;;  %3631 = vmatmul.f32.gmra.mxu2 %v6813_v18  ;;  %v336_v45 = vmul.f32 %v208_v24, %v7629_v41 }
 0x23b   :  { %v2915_v58 = vpop.f32.mrf.mxu3 }
 0x23c   :  { %9248 = vst [vmem:[#allocation65_spill] sm:$0xff] %v7619_v21  ;;  %v7633_v34 = vpop.f32.mrf.mxu0  ;;  %v400_v8 = vadd.f32 %v368_v11, %v336_v45 }
 0x23d   :  { %v2829_v37 = vpop.f32.mrf.mxu1  ;;  %v2872_v54 = vpop.f32.mrf.mxu2 }
 0x23e   :  { %v2830_v14 = vadd.f32 %v2829_v37, %v2768_v3  ;;  %v3955_v3 = vand.u32 4294901760, %v3954_v19  ;;  %v7645_v37 = vand.u32 4294901760, %v400_v8 }
 0x23f   :  { %3543 = vmatmul.f32.gmra.mxu0 %v6795_v12 }
 0x240   :  { %v2873_v7 = vadd.f32 %v2872_v54, %v2830_v14  ;;  %3576 = vmatmul.f32.gmra.mxu1 %v6739_v40  ;;  %3696 = vmatmul.f32.gmra.mxu3 %v6795_v12  ;;  %v3958_v14 = vsub.f32 %v400_v8, %v7645_v37  ;;  %v241_v54 = vmul.f32 %v177_v33, %v7610_v10 }
 0x241   :  { %3956 = vmatpush.msra.mxu1 %v3955_v3  ;;  %3901 = vmatpush.msra.mxu0 %v7645_v37 }
 0x242   :  { %v7643_v44 = vadd.f32 %v2915_v58, %v2873_v7  ;;  %3639 = vmatmul.f32.gmra.mxu2 %v6834_v49  ;;  %4052 = vmatpush.msra.mxu3 %v7645_v37  ;;  %v3959_v45 = vand.u32 4294901760, %v3958_v14  ;;  %v305_v7 = vsub.f32 %v241_v54, %v273_v39  ;;  %v272_v54 = vmul.f32 %v208_v24, %v7631_v26 }
 0x243   :  { %v7648_v60 = vpop.f32.mrf.mxu3  ;;  %4009 = vmatpush.msra.mxu2 %v3958_v14 }
 0x244   :  { %9249 = vst [vmem:[#allocation66_spill] sm:$0xff] %v7643_v44  ;;  %v7654_v11 = vpop.f32.mrf.mxu0  ;;  %v3960_v8 = vsub.f32 %v3958_v14, %v3959_v45  ;;  %v7661_v3 = vand.u32 4294901760, %v305_v7 }
 0x245   :  { %v2833_v58 = vpop.f32.mrf.mxu1  ;;  %v7657_v19 = vpop.f32.mrf.mxu2 }
 0x246   :  { %v3961_v33 = vand.u32 4294901760, %v3960_v8  ;;  %v3964_v42 = vsub.f32 %v305_v7, %v7661_v3  ;;  %3903 = vmatpush.msra.mxu0 %v7661_v3  ;;  %4054 = vmatpush.msra.mxu3 %v7661_v3  ;;  %v304_v7 = vsub.f32 %v240_v15, %v272_v54  ;;  %v179_v54 = vld [vmem:[#allocation7 + $0xd8] sm:$0xff] }
 0x247   :  { %3547 = vmatmul.f32.gmra.mxu0 %v6815_v25 }
 0x248   :  { %3580 = vmatmul.f32.gmra.mxu1 %v6795_v12  ;;  %3700 = vmatmul.f32.gmra.mxu3 %v6815_v25  ;;  %v3965_v14 = vand.u32 4294901760, %v3964_v42  ;;  %v3904_v30 = vand.u32 4294901760, %v304_v7 }
 0x249   :  { %3962 = vmatpush.msra.mxu1 %v3961_v33  ;;  %4012 = vmatpush.msra.mxu2 %v3964_v42 }
 0x24a   :  { %3647 = vmatmul.f32.gmra.mxu2 %v6855_v31  ;;  %v3966_v22 = vsub.f32 %v3964_v42, %v3965_v14  ;;  %v3970_v24 = vsub.f32 %v304_v7, %v3904_v30  ;;  %3905 = vmatpush.msra.mxu0 %v3904_v30  ;;  %v211_v42 = vld [vmem:[#allocation8 + $0xd8] sm:$0xff]  ;;  %v371_v7 = vmul.f32 %v179_v54, %v7612_v2 }
 0x24b   :  { %v7670_v39 = vpop.f32.mrf.mxu3  ;;  %4056 = vmatpush.msra.mxu3 %v3904_v30 }
 0x24c   :  { %v7674_v8 = vpop.f32.mrf.mxu0  ;;  %v3967_v16 = vand.u32 4294901760, %v3966_v22  ;;  %v3971_v33 = vand.u32 4294901760, %v3970_v24  ;;  %4015 = vmatpush.msra.mxu2 %v3970_v24  ;;  %v339_v22 = vmul.f32 %v211_v42, %v7610_v10 }
 0x24d   :  { %v7672_v4 = vpop.f32.mrf.mxu1  ;;  %9250 = vst [vmem:[#allocation67_spill] sm:$0xff] %v7674_v8  ;;  %v7676_v1 = vpop.f32.mrf.mxu2 }
 0x24e   :  { %3968 = vmatpush.msra.mxu1 %v3967_v16  ;;  %v3972_v44 = vsub.f32 %v3970_v24, %v3971_v33  ;;  %v403_v63 = vadd.f32 %v371_v7, %v339_v22 }
 0x24f   :  { %3730 = vmatmul.f32.vlgmr.msrb.gmra.mxu0 %v6731_v36 }
 0x250   :  { %3584 = vmatmul.f32.gmra.mxu1 %v6815_v25  ;;  %3860 = vmatmul.f32.vlgmr.msrb.gmra.mxu3 %v6713_v27  ;;  %v3973_v52 = vand.u32 4294901760, %v3972_v44  ;;  %v7694_v24 = vand.u32 4294901760, %v403_v63 }
 0x251   :  { %4097 = vmatpush.msrb.mxu0 %v3953_v62  ;;  %v2834_v62 = vadd.f32 %v2833_v58, %v7633_v34 }
 0x252   :  { %3823 = vmatmul.f32.vlgmr.msrb.gmra.mxu2 %v6713_v27  ;;  %3974 = vmatpush.msra.mxu1 %v3973_v52  ;;  %v7699_v44 = vsub.f32 %v403_v63, %v7694_v24 }
 0x253   :  { %v3113_v15 = vpop.f32.mrf.mxu3  ;;  %4101 = vmatpush.msrb.mxu0 %v3959_v45  ;;  %4187 = vmatpush.msrb.mxu2 %v7694_v24  ;;  %v2878_v34 = vadd.f32 %v7657_v19, %v2834_v62  ;;  %v243_v19 = vmul.f32 %v179_v54, %v7610_v10  ;;  %v275_v62 = vmul.f32 %v211_v42, %v7612_v2 }
 0x254   :  { %v7682_v20 = vpop.f32.mrf.mxu0 }
 0x255   :  { %9251 = vst [vmem:[#allocation68_spill] sm:$0xff] %v7682_v20  ;;  %v7684_v61 = vpop.f32.mrf.mxu1  ;;  %v3048_v16 = vpop.f32.mrf.mxu2  ;;  %4105 = vmatpush.msrb.mxu0 %v3965_v14  ;;  %v178_v14 = vld [vmem:[#allocation7 + $0xd0] sm:$0xff] }
 0x256   :  { %9252 = vst [vmem:[#allocation69_spill] sm:$0xff] %v7684_v61  ;;  %v7688_v6 = vadd.f32 %v3113_v15, %v3048_v16  ;;  %v210_v15 = vld [vmem:[#allocation8 + $0xd0] sm:$0xff]  ;;  %v370_v22 = vmul.f32 %v178_v14, %v7631_v26 }
 0x257   :  { %3735 = vmatmul.f32.gmra.mxu0 %v6755_v48 }
 0x258   :  { %3772 = vmatmul.f32.vlgmr.msrb.gmra.mxu1 %v6745_v43  ;;  %3864 = vmatmul.f32.gmra.mxu3 %v6739_v40 }
 0x259   :  { %4140 = vmatpush.msrb.mxu1 %v7621_v35  ;;  %4109 = vmatpush.msrb.mxu0 %v3971_v33  ;;  %v9114_v35 = vand.u32 4294901760, %v7699_v44  ;;  %v338_v33 = vmul.f32 %v210_v15, %v7629_v41 }
 0x25a   :  { %3827 = vmatmul.f32.gmra.mxu2 %v6739_v40 }
 0x25b   :  { %v3117_v45 = vpop.f32.mrf.mxu3  ;;  %4142 = vmatpush.msrb.mxu1 %v7645_v37  ;;  %v4242_v37 = vsub.f32 %v7699_v44, %v9114_v35  ;;  %v402_v16 = vadd.f32 %v370_v22, %v338_v33  ;;  %v307_v33 = vsub.f32 %v243_v19, %v275_v62  ;;  %v242_v22 = vmul.f32 %v178_v14, %v7629_v41 }
 0x25c   :  { %v2968_v52 = vpop.f32.mrf.mxu0  ;;  %v274_v35 = vmul.f32 %v210_v15, %v7631_v26 }
 0x25d   :  { %v7704_v58 = vpop.f32.mrf.mxu1  ;;  %v3056_v63 = vpop.f32.mrf.mxu2  ;;  %4144 = vmatpush.msrb.mxu1 %v7661_v3  ;;  %v4243_v3 = vand.u32 4294901760, %v4242_v37 }
 0x25e   :  { %9253 = vst [vmem:[#allocation70_spill] sm:$0xff] %v7704_v58  ;;  %v7710_v7 = vadd.f32 %v3117_v45, %v3056_v63  ;;  %v2922_v58 = vadd.f32 %v7648_v60, %v2878_v34  ;;  %v7721_v45 = vand.u32 4294901760, %v402_v16  ;;  %v2838_v63 = vadd.f32 %v7672_v4, %v7654_v11 }
 0x25f   :  { %3740 = vmatmul.f32.gmra.mxu0 %v6808_v17  ;;  %4146 = vmatpush.msrb.mxu1 %v3904_v30  ;;  %v7732_v34 = vand.u32 4294901760, %v307_v33  ;;  %v306_v30 = vsub.f32 %v242_v22, %v274_v35 }
 0x260   :  { %3778 = vmatmul.f32.gmra.mxu1 %v6769_v56  ;;  %3868 = vmatmul.f32.gmra.mxu3 %v6795_v12  ;;  %v4246_v54 = vsub.f32 %v402_v16, %v7721_v45  ;;  %v2969_v60 = vadd.f32 %v2968_v52, %v2922_v58  ;;  %v2883_v14 = vadd.f32 %v7676_v1, %v2838_v63 }
 0x261   :  { %4244 = vmatpush.msrb.mxu3 %v4243_v3  ;;  %4189 = vmatpush.msrb.mxu2 %v7721_v45  ;;  %v4252_v16 = vsub.f32 %v307_v33, %v7732_v34  ;;  %v7739_v52 = vand.u32 4294901760, %v306_v30 }
 0x262   :  { %3831 = vmatmul.f32.gmra.mxu2 %v6795_v12  ;;  %v4247_v11 = vand.u32 4294901760, %v4246_v54  ;;  %v2928_v3 = vadd.f32 %v7670_v39, %v2883_v14 }
 0x263   :  { %v7729_v42 = vpop.f32.mrf.mxu3  ;;  %4191 = vmatpush.msrb.mxu2 %v7732_v34  ;;  %v4253_v35 = vand.u32 4294901760, %v4252_v16  ;;  %v4258_v62 = vsub.f32 %v306_v30, %v7739_v52 }
 0x264   :  { %v2972_v37 = vpop.f32.mrf.mxu0  ;;  %v4248_v58 = vsub.f32 %v4246_v54, %v4247_v11 }
 0x265   :  { %v3005_v4 = vpop.f32.mrf.mxu1  ;;  %v7735_v19 = vpop.f32.mrf.mxu2  ;;  %v4254_v63 = vsub.f32 %v4252_v16, %v4253_v35  ;;  %4193 = vmatpush.msrb.mxu2 %v7739_v52  ;;  %v4259_v33 = vand.u32 4294901760, %v4258_v62  ;;  %v2973_v22 = vadd.f32 %v2972_v37, %v2928_v3 }
 0x266   :  { %v3006_v15 = vadd.f32 %v3005_v4, %v2969_v60  ;;  %v4249_v1 = vand.u32 4294901760, %v4248_v58 }
 0x267   :  { %3745 = vmatmul.f32.gmra.mxu0 %v6826_v38  ;;  %v4255_v4 = vand.u32 4294901760, %v4254_v63  ;;  %v4260_v20 = vsub.f32 %v4258_v62, %v4259_v33 }
 0x268   :  { %3784 = vmatmul.f32.gmra.mxu1 %v6818_v28  ;;  %3872 = vmatmul.f32.gmra.mxu3 %v6815_v25 }
 0x269   :  { %3014 = vrot.lane.b32.xlu0 %v3006_v15, %s6604_s6  ;;  %4250 = vmatpush.msrb.mxu3 %v4249_v1  ;;  %v4261_v15 = vand.u32 4294901760, %v4260_v20  ;;  %v9254_v20 = vand.u32 4294901760, %v7699_v44 }
 0x26a   :  { %3835 = vmatmul.f32.gmra.mxu2 %v6815_v25 }
 0x26b   :  { %v7749_v60 = vpop.f32.mrf.mxu3  ;;  %4256 = vmatpush.msrb.mxu3 %v4255_v4 }
 0x26c   :  { %v3155_v61 = vpop.f32.mrf.mxu0 }
 0x26d   :  { %v3009_v30 = vpop.f32.mrf.mxu1  ;;  %v3072_v21 = vpop.f32.mrf.mxu2  ;;  %4262 = vmatpush.msrb.mxu3 %v4261_v15  ;;  %v3156_v39 = vadd.f32 %v3155_v61, %v7688_v6 }
 0x26e   :  { %v3010_v8 = vadd.f32 %v3009_v30, %v2973_v22 }
 0x26f   :  { %3911 = vmatmul.f32.vlgmr.msra.gmra.mxu0 %v6774_v59 }
 0x270   :  { %3790 = vmatmul.f32.gmra.mxu1 %v6837_v51  ;;  %4060 = vmatmul.f32.vlgmr.msra.gmra.mxu3 %v6745_v43 }
 0x271   :  { %3016 = vrot.lane.b32.xlu0 %v3010_v8, %s6604_s6  ;;  %4294 = vmatpush.msra.mxu0 %v7699_v44 }
 0x272   :  { %4018 = vmatmul.f32.vlgmr.msra.gmra.mxu2 %v6731_v36  ;;  %4428 = vmatpush.msra.mxu3 %v7694_v24 }
 0x273   :  { %v3285_v37 = vpop.f32.mrf.mxu3  ;;  %4385 = vmatpush.msra.mxu2 %v9254_v20  ;;  %4297 = vmatpush.msra.mxu0 %v4246_v54 }
 0x274   :  { %v3160_v14 = vpop.f32.mrf.mxu0  ;;  %4430 = vmatpush.msra.mxu3 %v7721_v45 }
 0x275   :  { %v3197_v58 = vpop.f32.mrf.mxu1  ;;  %v3248_v8 = vpop.f32.mrf.mxu2  ;;  %4389 = vmatpush.msra.mxu2 %v4247_v11  ;;  %4300 = vmatpush.msra.mxu0 %v4252_v16  ;;  %v3161_v61 = vadd.f32 %v3160_v14, %v7710_v7 }
 0x276   :  { %v3198_v1 = vadd.f32 %v3197_v58, %v3156_v39  ;;  %4432 = vmatpush.msra.mxu3 %v7732_v34 }
 0x277   :  { %3919 = vmatmul.f32.gmra.mxu0 %v6813_v18  ;;  %4393 = vmatpush.msra.mxu2 %v4253_v35 }
 0x278   :  { %v3249_v3 = vadd.f32 %v3248_v8, %v3198_v1  ;;  %3976 = vmatmul.f32.vlgmr.msra.gmra.mxu1 %v6713_v27  ;;  %4066 = vmatmul.f32.gmra.mxu3 %v6769_v56  ;;  %v213_v1 = vld [vmem:[#allocation8 + $0xe8] sm:$0xff] }
 0x279   :  { %998 = vrot.lane.b32.xlu0 %v7120_v0, %s6604_s6  ;;  %4338 = vmatpush.msra.mxu1 %v7694_v24  ;;  %v3122_v24 = vadd.f32 %v7729_v42, %v7735_v19 }
 0x27a   :  { %v7768_v6 = vadd.f32 %v3285_v37, %v3249_v3  ;;  %4023 = vmatmul.f32.gmra.mxu2 %v6755_v48  ;;  %4303 = vmatpush.msra.mxu0 %v4258_v62 }
 0x27b   :  { %v3289_v44 = vpop.f32.mrf.mxu3  ;;  %4340 = vmatpush.msra.mxu1 %v7721_v45  ;;  %4397 = vmatpush.msra.mxu2 %v4259_v33 }
 0x27c   :  { %v3165_v54 = vpop.f32.mrf.mxu0  ;;  %4434 = vmatpush.msra.mxu3 %v7739_v52 }
 0x27d   :  { %v3203_v11 = vpop.f32.mrf.mxu1  ;;  %v3252_v0 = vpop.f32.mrf.mxu2  ;;  %4342 = vmatpush.msra.mxu1 %v7732_v34  ;;  %v3166_v45 = vadd.f32 %v3165_v54, %v3122_v24 }
 0x27e   :  { %v3204_v16 = vadd.f32 %v3203_v11, %v3161_v61  ;;  %v341_v61 = vmul.f32 %v213_v1, %v7610_v10 }
 0x27f   :  { %3927 = vmatmul.f32.gmra.mxu0 %v6834_v49  ;;  %4344 = vmatpush.msra.mxu1 %v7739_v52  ;;  %v3126_v52 = vadd.f32 %v7749_v60, %v3072_v21  ;;  %v181_v60 = vld [vmem:[#allocation7 + $0xe8] sm:$0xff] }
 0x280   :  { %v3253_v63 = vadd.f32 %v3252_v0, %v3204_v16  ;;  %3980 = vmatmul.f32.gmra.mxu1 %v6739_v40  ;;  %4072 = vmatmul.f32.gmra.mxu3 %v6818_v28 }
 0x282   :  { %v7782_v7 = vadd.f32 %v3289_v44, %v3253_v63  ;;  %4028 = vmatmul.f32.gmra.mxu2 %v6808_v17  ;;  %v373_v44 = vmul.f32 %v181_v60, %v7612_v2 }
 0x283   :  { %v3293_v35 = vpop.f32.mrf.mxu3 }
 0x284   :  { %v3170_v62 = vpop.f32.mrf.mxu0  ;;  %v405_v16 = vadd.f32 %v373_v44, %v341_v61 }
 0x285   :  { %v3209_v34 = vpop.f32.mrf.mxu1  ;;  %v3256_v22 = vpop.f32.mrf.mxu2  ;;  %v3171_v19 = vadd.f32 %v3170_v62, %v3126_v52  ;;  %v180_v62 = vld [vmem:[#allocation7 + $0xe0] sm:$0xff] }
 0x286   :  { %v3210_v33 = vadd.f32 %v3209_v34, %v3166_v45  ;;  %v7801_v63 = vand.u32 4294901760, %v405_v16  ;;  %v212_v34 = vld [vmem:[#allocation8 + $0xe0] sm:$0xff] }
 0x287   :  { %3935 = vmatmul.f32.gmra.mxu0 %v6855_v31  ;;  %v340_v52 = vmul.f32 %v212_v34, %v7629_v41 }
 0x288   :  { %v3257_v4 = vadd.f32 %v3256_v22, %v3210_v33  ;;  %3984 = vmatmul.f32.gmra.mxu1 %v6795_v12  ;;  %4078 = vmatmul.f32.gmra.mxu3 %v6837_v51  ;;  %v7807_v45 = vsub.f32 %v405_v16, %v7801_v63 }
 0x28a   :  { %v3294_v42 = vadd.f32 %v3293_v35, %v3257_v4  ;;  %4033 = vmatmul.f32.gmra.mxu2 %v6826_v38  ;;  %v4529_v4 = vand.u32 4294901760, %v7807_v45 }
 0x28b   :  { %v3297_v30 = vpop.f32.mrf.mxu3 }
 0x28c   :  { %3302 = vrot.lane.b32.xlu1 %v3294_v42, %s6604_s6  ;;  %v3336_v39 = vpop.f32.mrf.mxu0  ;;  %v372_v42 = vmul.f32 %v180_v62, %v7631_v26 }
 0x28d   :  { %v3215_v15 = vpop.f32.mrf.mxu1  ;;  %v3260_v20 = vpop.f32.mrf.mxu2 }
 0x28e   :  { %v3216_v37 = vadd.f32 %v3215_v15, %v3171_v19  ;;  %v4530_v15 = vsub.f32 %v7807_v45, %v4529_v4 }
 0x28f   :  { %4111 = vmatmul.f32.vlgmr.msrb.gmra.mxu0 %v6713_v27 }
 0x290   :  { %v3261_v14 = vadd.f32 %v3260_v20, %v3216_v37  ;;  %3988 = vmatmul.f32.gmra.mxu1 %v6815_v25  ;;  %4264 = vmatmul.f32.vlgmr.msrb.gmra.mxu3 %v6713_v27  ;;  %v4531_v37 = vand.u32 4294901760, %v4530_v15 }
 0x291   :  { %4475 = vmatpush.msrb.mxu0 %v7801_v63  ;;  %4626 = vmatpush.msrb.mxu3 %v7801_v63 }
 0x292   :  { %v3298_v58 = vadd.f32 %v3297_v30, %v3261_v14  ;;  %4199 = vmatmul.f32.vlgmr.msrb.gmra.mxu2 %v6774_v59 }
 0x293   :  { %v3485_v21 = vpop.f32.mrf.mxu3  ;;  %4582 = vmatpush.msrb.mxu2 %v7807_v45 }
 0x294   :  { %3304 = vrot.lane.b32.xlu2 %v3298_v58, %s6604_s6  ;;  %v3344_v8 = vpop.f32.mrf.mxu0 }
 0x295   :  { %v3401_v3 = vpop.f32.mrf.mxu1  ;;  %v3443_v11 = vpop.f32.mrf.mxu2 }
 0x296   :  { %v3402_v54 = vadd.f32 %v3401_v3, %v3336_v39  ;;  %v277_v3 = vmul.f32 %v213_v1, %v7612_v2 }
 0x297   :  { %4115 = vmatmul.f32.gmra.mxu0 %v6739_v40 }
 0x298   :  { %v3444_v0 = vadd.f32 %v3443_v11, %v3402_v54  ;;  %4148 = vmatmul.f32.vlgmr.msrb.gmra.mxu1 %v6713_v27  ;;  %4268 = vmatmul.f32.gmra.mxu3 %v6739_v40 }
 0x299   :  { %4532 = vmatpush.msrb.mxu1 %v4531_v37 }
 0x29a   :  { %v7803_v24 = vadd.f32 %v3485_v21, %v3444_v0  ;;  %4207 = vmatmul.f32.gmra.mxu2 %v6813_v18 }
 0x29b   :  { %v3491_v35 = vpop.f32.mrf.mxu3 }
 0x29c   :  { %1000 = vrot.lane.b32.xlu2 %v7126_v32, %s6604_s6  ;;  %v7813_v33 = vpop.f32.mrf.mxu0  ;;  %v404_v32 = vadd.f32 %v372_v42, %v340_v52 }
 0x29d   :  { %v3405_v22 = vpop.f32.mrf.mxu1  ;;  %v3448_v30 = vpop.f32.mrf.mxu2 }
 0x29e   :  { %v3406_v19 = vadd.f32 %v3405_v22, %v3344_v8  ;;  %v7823_v20 = vand.u32 4294901760, %v404_v32  ;;  %v245_v8 = vmul.f32 %v181_v60, %v7610_v10  ;;  %v276_v22 = vmul.f32 %v212_v34, %v7631_v26 }
 0x29f   :  { %4119 = vmatmul.f32.gmra.mxu0 %v6795_v12 }
 0x2a0   :  { %v3449_v39 = vadd.f32 %v3448_v30, %v3406_v19  ;;  %4152 = vmatmul.f32.gmra.mxu1 %v6739_v40  ;;  %4272 = vmatmul.f32.gmra.mxu3 %v6795_v12  ;;  %v4534_v58 = vsub.f32 %v404_v32, %v7823_v20  ;;  %v309_v16 = vsub.f32 %v245_v8, %v277_v3  ;;  %v183_v3 = vld [vmem:[#allocation7 + $0xf8] sm:$0xff] }
 0x2a1   :  { %4477 = vmatpush.msrb.mxu0 %v7823_v20  ;;  %4628 = vmatpush.msrb.mxu3 %v7823_v20 }
 0x2a2   :  { %v7825_v14 = vadd.f32 %v3491_v35, %v3449_v39  ;;  %4215 = vmatmul.f32.gmra.mxu2 %v6834_v49  ;;  %v4535_v54 = vand.u32 4294901760, %v4534_v58  ;;  %v7841_v45 = vand.u32 4294901760, %v309_v16  ;;  %v244_v35 = vmul.f32 %v180_v62, %v7629_v41 }
 0x2a3   :  { %v7829_v21 = vpop.f32.mrf.mxu3  ;;  %4585 = vmatpush.msrb.mxu2 %v4534_v58 }
 0x2a4   :  { %9255 = vst [vmem:[#allocation71_spill] sm:$0xff] %v7825_v14  ;;  %v7835_v61 = vpop.f32.mrf.mxu0  ;;  %v4536_v0 = vsub.f32 %v4534_v58, %v4535_v54  ;;  %v4540_v1 = vsub.f32 %v309_v16, %v7841_v45  ;;  %4479 = vmatpush.msrb.mxu0 %v7841_v45  ;;  %4630 = vmatpush.msrb.mxu3 %v7841_v45  ;;  %v215_v16 = vld [vmem:[#allocation8 + $0xf8] sm:$0xff] }
 0x2a5   :  { %v3409_v44 = vpop.f32.mrf.mxu1  ;;  %v7837_v11 = vpop.f32.mrf.mxu2  ;;  %v308_v15 = vsub.f32 %v244_v35, %v276_v22  ;;  %v343_v35 = vmul.f32 %v215_v16, %v7610_v10  ;;  %v375_v22 = vmul.f32 %v183_v3, %v7612_v2 }
 0x2a6   :  { %v4537_v60 = vand.u32 4294901760, %v4536_v0  ;;  %4588 = vmatpush.msrb.mxu2 %v4540_v1  ;;  %v4541_v42 = vand.u32 4294901760, %v4540_v1 }
 0x2a7   :  { %4123 = vmatmul.f32.gmra.mxu0 %v6815_v25  ;;  %v4480_v37 = vand.u32 4294901760, %v308_v15  ;;  %v407_v14 = vadd.f32 %v375_v22, %v343_v35 }
 0x2a8   :  { %4156 = vmatmul.f32.gmra.mxu1 %v6795_v12  ;;  %4276 = vmatmul.f32.gmra.mxu3 %v6815_v25  ;;  %v4542_v39 = vsub.f32 %v4540_v1, %v4541_v42 }
 0x2a9   :  { %4538 = vmatpush.msrb.mxu1 %v4537_v60  ;;  %v4546_v34 = vsub.f32 %v308_v15, %v4480_v37  ;;  %4481 = vmatpush.msrb.mxu0 %v4480_v37 }
 0x2aa   :  { %4223 = vmatmul.f32.gmra.mxu2 %v6855_v31  ;;  %v4543_v62 = vand.u32 4294901760, %v4542_v39  ;;  %4632 = vmatpush.msrb.mxu3 %v4480_v37 }
 0x2ab   :  { %v7850_v52 = vpop.f32.mrf.mxu3  ;;  %v4547_v58 = vand.u32 4294901760, %v4546_v34  ;;  %4591 = vmatpush.msrb.mxu2 %v4546_v34 }
 0x2ac   :  { %v7854_v30 = vpop.f32.mrf.mxu0  ;;  %4544 = vmatpush.msrb.mxu1 %v4543_v62 }
 0x2ad   :  { %v7852_v19 = vpop.f32.mrf.mxu1  ;;  %v7856_v32 = vpop.f32.mrf.mxu2  ;;  %v4548_v1 = vsub.f32 %v4546_v34, %v4547_v58  ;;  %v3410_v34 = vadd.f32 %v3409_v44, %v7813_v33 }
 0x2af   :  { %4306 = vmatmul.f32.vlgmr.msra.gmra.mxu0 %v6731_v36  ;;  %v4549_v62 = vand.u32 4294901760, %v4548_v1  ;;  %v3454_v33 = vadd.f32 %v7837_v11, %v3410_v34  ;;  %v279_v34 = vmul.f32 %v215_v16, %v7612_v2 }
 0x2b0   :  { %4160 = vmatmul.f32.gmra.mxu1 %v6815_v25  ;;  %4436 = vmatmul.f32.vlgmr.msra.gmra.mxu3 %v6713_v27 }
 0x2b1   :  { %4673 = vmatpush.msra.mxu0 %v4529_v4  ;;  %4550 = vmatpush.msrb.mxu1 %v4549_v62  ;;  %v7873_v4 = vand.u32 4294901760, %v407_v14 }
 0x2b2   :  { %4399 = vmatmul.f32.vlgmr.msra.gmra.mxu2 %v6713_v27 }
 0x2b3   :  { %v3689_v8 = vpop.f32.mrf.mxu3  ;;  %4677 = vmatpush.msra.mxu0 %v4535_v54  ;;  %v7879_v54 = vsub.f32 %v407_v14, %v7873_v4  ;;  %4763 = vmatpush.msra.mxu2 %v7873_v4 }
 0x2b4   :  { %v7862_v0 = vpop.f32.mrf.mxu0 }
 0x2b5   :  { %9256 = vst [vmem:[#allocation72_spill] sm:$0xff] %v7862_v0  ;;  %v7864_v60 = vpop.f32.mrf.mxu1  ;;  %v3624_v15 = vpop.f32.mrf.mxu2  ;;  %4681 = vmatpush.msra.mxu0 %v4541_v42  ;;  %v9115_v35 = vand.u32 4294901760, %v7879_v54 }
 0x2b6   :  { %v7868_v39 = vadd.f32 %v3689_v8, %v3624_v15 }
 0x2b7   :  { %4311 = vmatmul.f32.gmra.mxu0 %v6755_v48  ;;  %v4818_v14 = vsub.f32 %v7879_v54, %v9115_v35 }
 0x2b8   :  { %4348 = vmatmul.f32.vlgmr.msra.gmra.mxu1 %v6745_v43  ;;  %4440 = vmatmul.f32.gmra.mxu3 %v6739_v40 }
 0x2b9   :  { %4716 = vmatpush.msra.mxu1 %v7801_v63  ;;  %4685 = vmatpush.msra.mxu0 %v4547_v58  ;;  %v182_v63 = vld [vmem:[#allocation7 + $0xf0] sm:$0xff]  ;;  %v4819_v11 = vand.u32 4294901760, %v4818_v14 }
 0x2ba   :  { %4403 = vmatmul.f32.gmra.mxu2 %v6739_v40  ;;  %v214_v58 = vld [vmem:[#allocation8 + $0xf0] sm:$0xff]  ;;  %v374_v15 = vmul.f32 %v182_v63, %v7631_v26  ;;  %v246_v0 = vmul.f32 %v182_v63, %v7629_v41 }
 0x2bb   :  { %v3693_v42 = vpop.f32.mrf.mxu3  ;;  %4718 = vmatpush.msra.mxu1 %v7823_v20  ;;  %v342_v20 = vmul.f32 %v214_v58, %v7629_v41  ;;  %4820 = vmatpush.msra.mxu3 %v4819_v11  ;;  %v278_v14 = vmul.f32 %v214_v58, %v7631_v26 }
 0x2bc   :  { %v3544_v8 = vpop.f32.mrf.mxu0 }
 0x2bd   :  { %v7883_v1 = vpop.f32.mrf.mxu1  ;;  %v3632_v44 = vpop.f32.mrf.mxu2  ;;  %4720 = vmatpush.msra.mxu1 %v7841_v45  ;;  %v406_v62 = vadd.f32 %v374_v15, %v342_v20  ;;  %v247_v45 = vmul.f32 %v183_v3, %v7610_v10 }
 0x2be   :  { %9257 = vst [vmem:[#allocation73_spill] sm:$0xff] %v7883_v1  ;;  %v7888_v22 = vadd.f32 %v3693_v42, %v3632_v44  ;;  %v3414_v42 = vadd.f32 %v7852_v19, %v7835_v61  ;;  %v3498_v44 = vadd.f32 %v7829_v21, %v3454_v33  ;;  %v310_v19 = vsub.f32 %v246_v0, %v278_v14 }
 0x2bf   :  { %4316 = vmatmul.f32.gmra.mxu0 %v6808_v17  ;;  %4722 = vmatpush.msra.mxu1 %v4480_v37  ;;  %v7904_v35 = vand.u32 4294901760, %v406_v62  ;;  %v311_v1 = vsub.f32 %v247_v45, %v279_v34 }
 0x2c0   :  { %4354 = vmatmul.f32.gmra.mxu1 %v6769_v56  ;;  %4444 = vmatmul.f32.gmra.mxu3 %v6795_v12  ;;  %v3545_v20 = vadd.f32 %v3544_v8, %v3498_v44  ;;  %v3459_v3 = vadd.f32 %v7856_v32, %v3414_v42  ;;  %v7919_v8 = vand.u32 4294901760, %v310_v19 }
 0x2c1   :  { %4765 = vmatpush.msra.mxu2 %v7904_v35  ;;  %v4822_v61 = vsub.f32 %v406_v62, %v7904_v35  ;;  %v7912_v21 = vand.u32 4294901760, %v311_v1 }
 0x2c2   :  { %4407 = vmatmul.f32.gmra.mxu2 %v6795_v12  ;;  %v4834_v63 = vsub.f32 %v310_v19, %v7919_v8  ;;  %v3504_v58 = vadd.f32 %v7850_v52, %v3459_v3 }
 0x2c3   :  { %v7908_v10 = vpop.f32.mrf.mxu3  ;;  %v4823_v41 = vand.u32 4294901760, %v4822_v61  ;;  %4767 = vmatpush.msra.mxu2 %v7912_v21  ;;  %v4828_v26 = vsub.f32 %v311_v1, %v7912_v21 }
 0x2c4   :  { %v3548_v2 = vpop.f32.mrf.mxu0  ;;  %v4835_v11 = vand.u32 4294901760, %v4834_v63 }
 0x2c5   :  { %v3581_v37 = vpop.f32.mrf.mxu1  ;;  %v7915_v33 = vpop.f32.mrf.mxu2  ;;  %v4824_v0 = vsub.f32 %v4822_v61, %v4823_v41  ;;  %v4829_v32 = vand.u32 4294901760, %v4828_v26  ;;  %4769 = vmatpush.msra.mxu2 %v7919_v8  ;;  %v3549_v62 = vadd.f32 %v3548_v2, %v3504_v58  ;;  %v1245_v2 = vadd.f32 %v7234_v55, %v7182_v23 }
 0x2c6   :  { %v3582_v16 = vadd.f32 %v3581_v37, %v3545_v20  ;;  %v4836_v14 = vsub.f32 %v4834_v63, %v4835_v11  ;;  %v1241_v20 = vadd.f32 %v7207_v57, %v7169_v50 }
 0x2c7   :  { %4321 = vmatmul.f32.gmra.mxu0 %v6826_v38  ;;  %v4825_v1 = vand.u32 4294901760, %v4824_v0  ;;  %v4830_v15 = vsub.f32 %v4828_v26, %v4829_v32 }
 0x2c8   :  { %4360 = vmatmul.f32.gmra.mxu1 %v6818_v28  ;;  %4448 = vmatmul.f32.gmra.mxu3 %v6815_v25  ;;  %v4837_v19 = vand.u32 4294901760, %v4836_v14  ;;  %v1278_v3 = vadd.f32 %v7236_v5, %v1241_v20  ;;  %v9258_v5 = vand.u32 4294901760, %v7879_v54 }
 0x2c9   :  { %3590 = vrot.lane.b32.xlu1 %v3582_v16, %s6604_s6  ;;  %4826 = vmatpush.msra.mxu3 %v4825_v1  ;;  %v4831_v44 = vand.u32 4294901760, %v4830_v15  ;;  %v1282_v15 = vadd.f32 %v7246_v47, %v1245_v2 }
 0x2ca   :  { %4411 = vmatmul.f32.gmra.mxu2 %v6815_v25 }
 0x2cb   :  { %v7929_v45 = vpop.f32.mrf.mxu3  ;;  %4832 = vmatpush.msra.mxu3 %v4831_v44 }
 0x2cc   :  { %v3731_v42 = vpop.f32.mrf.mxu0 }
 0x2cd   :  { %v3585_v34 = vpop.f32.mrf.mxu1  ;;  %v7933_v52 = vpop.f32.mrf.mxu2  ;;  %4838 = vmatpush.msra.mxu3 %v4837_v19  ;;  %v3732_v50 = vadd.f32 %v3731_v42, %v7868_v39 }
 0x2ce   :  { %v3586_v37 = vadd.f32 %v3585_v34, %v3549_v62 }
 0x2cf   :  { %4487 = vmatmul.f32.vlgmr.msrb.gmra.mxu0 %v6774_v59 }
 0x2d0   :  { %4366 = vmatmul.f32.gmra.mxu1 %v6837_v51  ;;  %4636 = vmatmul.f32.vlgmr.msrb.gmra.mxu3 %v6745_v43 }
 0x2d1   :  { %3592 = vrot.lane.b32.xlu0 %v3586_v37, %s6604_s6  ;;  %1286 = vrot.lane.b32.xlu1 %v1278_v3, %s6604_s6 }
 0x2d2   :  { %4594 = vmatmul.f32.vlgmr.msrb.gmra.mxu2 %v6731_v36  ;;  %4870 = vmatpush.msrb.mxu0 %v7879_v54 }
 0x2d3   :  { %v3861_v57 = vpop.f32.mrf.mxu3  ;;  %4961 = vmatpush.msrb.mxu2 %v9258_v5  ;;  %5004 = vmatpush.msrb.mxu3 %v7873_v4 }
 0x2d4   :  { %v3736_v16 = vpop.f32.mrf.mxu0  ;;  %4873 = vmatpush.msrb.mxu0 %v4822_v61 }
 0x2d5   :  { %v3773_v0 = vpop.f32.mrf.mxu1  ;;  %v3824_v1 = vpop.f32.mrf.mxu2  ;;  %4965 = vmatpush.msrb.mxu2 %v4823_v41  ;;  %5006 = vmatpush.msrb.mxu3 %v7904_v35  ;;  %v3737_v55 = vadd.f32 %v3736_v16, %v7888_v22 }
 0x2d6   :  { %v3774_v58 = vadd.f32 %v3773_v0, %v3732_v50  ;;  %4876 = vmatpush.msrb.mxu0 %v4828_v26 }
 0x2d7   :  { %4495 = vmatmul.f32.gmra.mxu0 %v6813_v18  ;;  %4969 = vmatpush.msrb.mxu2 %v4829_v32 }
 0x2d8   :  { %v3825_v39 = vadd.f32 %v3824_v1, %v3774_v58  ;;  %4552 = vmatmul.f32.vlgmr.msrb.gmra.mxu1 %v6713_v27  ;;  %4642 = vmatmul.f32.gmra.mxu3 %v6769_v56 }
 0x2d9   :  { %1288 = vrot.lane.b32.xlu0 %v1282_v15, %s6604_s6  ;;  %4914 = vmatpush.msrb.mxu1 %v7873_v4 }
 0x2da   :  { %v7955_v23 = vadd.f32 %v3861_v57, %v3825_v39  ;;  %4599 = vmatmul.f32.gmra.mxu2 %v6755_v48  ;;  %5008 = vmatpush.msrb.mxu3 %v7912_v21 }
 0x2db   :  { %v3865_v47 = vpop.f32.mrf.mxu3  ;;  %4916 = vmatpush.msrb.mxu1 %v7904_v35  ;;  %4973 = vmatpush.msrb.mxu2 %v4835_v11  ;;  %v3698_v35 = vadd.f32 %v7908_v10, %v7915_v33  ;;  %v3702_v10 = vadd.f32 %v7929_v45, %v7933_v52 }
 0x2dc   :  { %v3741_v54 = vpop.f32.mrf.mxu0  ;;  %4879 = vmatpush.msrb.mxu0 %v4834_v63  ;;  %5010 = vmatpush.msrb.mxu3 %v7919_v8 }
 0x2dd   :  { %v3779_v61 = vpop.f32.mrf.mxu1  ;;  %v3828_v26 = vpop.f32.mrf.mxu2  ;;  %4918 = vmatpush.msrb.mxu1 %v7912_v21  ;;  %v3742_v32 = vadd.f32 %v3741_v54, %v3698_v35  ;;  %v414_v54 = vld [vmem:[#allocation13 + $0x10] sm:$0xff] }
 0x2de   :  { %v3780_v41 = vadd.f32 %v3779_v61, %v3737_v55  ;;  %v415_v55 = vld [vmem:[#allocation13 + $0x18] sm:$0xff]  ;;  %v8007_v61 = vand.u32 4294901760, %v414_v54 }
 0x2df   :  { %4503 = vmatmul.f32.gmra.mxu0 %v6834_v49  ;;  %4920 = vmatpush.msrb.mxu1 %v7919_v8 }
 0x2e0   :  { %v3829_v4 = vadd.f32 %v3828_v26, %v3780_v41  ;;  %4556 = vmatmul.f32.gmra.mxu1 %v6739_v40  ;;  %4648 = vmatmul.f32.gmra.mxu3 %v6818_v28  ;;  %v413_v26 = vld [vmem:[#allocation13 + $0x8] sm:$0xff] }
 0x2e2   :  { %v7970_v22 = vadd.f32 %v3865_v47, %v3829_v4  ;;  %4604 = vmatmul.f32.gmra.mxu2 %v6808_v17  ;;  %v8000_v47 = vand.u32 4294901760, %v415_v55 }
 0x2e3   :  { %v3869_v63 = vpop.f32.mrf.mxu3 }
 0x2e4   :  { %v3746_v11 = vpop.f32.mrf.mxu0 }
 0x2e5   :  { %v3785_v21 = vpop.f32.mrf.mxu1  ;;  %v3832_v34 = vpop.f32.mrf.mxu2  ;;  %v3747_v8 = vadd.f32 %v3746_v11, %v3702_v10 }
 0x2e6   :  { %v3786_v62 = vadd.f32 %v3785_v21, %v3742_v32  ;;  %v412_v21 = vld [vmem:[#allocation13] sm:$0xff] }
 0x2e7   :  { %4511 = vmatmul.f32.gmra.mxu0 %v6855_v31  ;;  %v8025_v10 = vand.u32 4294901760, %v412_v21 }
 0x2e8   :  { %v3833_v42 = vadd.f32 %v3832_v34, %v3786_v62  ;;  %4560 = vmatmul.f32.gmra.mxu1 %v6795_v12  ;;  %4654 = vmatmul.f32.gmra.mxu3 %v6837_v51 }
 0x2ea   :  { %v3870_v33 = vadd.f32 %v3869_v63, %v3833_v42  ;;  %4609 = vmatmul.f32.gmra.mxu2 %v6826_v38  ;;  %v8018_v63 = vand.u32 4294901760, %v413_v26 }
 0x2eb   :  { %v3873_v44 = vpop.f32.mrf.mxu3 }
 0x2ec   :  { %3878 = vrot.lane.b32.xlu2 %v3870_v33, %s6604_s6  ;;  %v3912_v20 = vpop.f32.mrf.mxu0  ;;  %v5436_v42 = vsub.f32 %v413_v26, %v8018_v63 }
 0x2ed   :  { %v3791_v14 = vpop.f32.mrf.mxu1  ;;  %v3836_v19 = vpop.f32.mrf.mxu2 }
 0x2ee   :  { %v3792_v37 = vadd.f32 %v3791_v14, %v3747_v8  ;;  %v8032_v14 = vsub.f32 %v412_v21, %v8025_v10  ;;  %v9262_v21 = vld [vmem:[#allocation20_spill] sm:$0xff] }
 0x2ef   :  { %4687 = vmatmul.f32.vlgmr.msra.gmra.mxu0 %v6713_v27 }
 0x2f0   :  { %v3837_v3 = vadd.f32 %v3836_v19, %v3792_v37  ;;  %4564 = vmatmul.f32.gmra.mxu1 %v6815_v25  ;;  %4840 = vmatmul.f32.vlgmr.msra.gmra.mxu3 %v6713_v27  ;;  %v5443_v19 = vand.u32 4294901760, %v8032_v14 }
 0x2f1   :  { %5147 = vmatpush.msra.mxu0 %v8000_v47 }
 0x2f2   :  { %v3874_v50 = vadd.f32 %v3873_v44, %v3837_v3  ;;  %4775 = vmatmul.f32.vlgmr.msra.gmra.mxu2 %v6774_v59  ;;  %v5437_v44 = vand.u32 4294901760, %v5436_v42 }
 0x2f3   :  { %v4061_v45 = vpop.f32.mrf.mxu3  ;;  %6374 = vmatpush.msra.mxu2 %v8000_v47  ;;  %5149 = vmatpush.msra.mxu0 %v8007_v61 }
 0x2f4   :  { %3880 = vrot.lane.b32.xlu1 %v3874_v50, %s6604_s6  ;;  %1574 = vrot.lane.b32.xlu2 %v7279_v9, %s6604_s6  ;;  %v3920_v52 = vpop.f32.mrf.mxu0  ;;  %v5438_v37 = vsub.f32 %v5436_v42, %v5437_v44 }
 0x2f5   :  { %v3977_v57 = vpop.f32.mrf.mxu1  ;;  %v4019_v2 = vpop.f32.mrf.mxu2  ;;  %6375 = vmatpush.msra.mxu2 %v8007_v61  ;;  %5151 = vmatpush.msra.mxu0 %v8018_v63 }
 0x2f6   :  { %v3978_v5 = vadd.f32 %v3977_v57, %v3912_v20  ;;  %v5444_v57 = vsub.f32 %v8032_v14, %v5443_v19 }
 0x2f7   :  { %4691 = vmatmul.f32.gmra.mxu0 %v6739_v40  ;;  %6376 = vmatpush.msra.mxu2 %v8018_v63 }
 0x2f8   :  { %v4020_v16 = vadd.f32 %v4019_v2, %v3978_v5  ;;  %4724 = vmatmul.f32.vlgmr.msra.gmra.mxu1 %v6713_v27  ;;  %4844 = vmatmul.f32.gmra.mxu3 %v6739_v40  ;;  %v3015_v2 = vpop.permute.xlu0 %3014 }
 0x2f9   :  { %5153 = vmatpush.msra.mxu0 %v8025_v10  ;;  %6377 = vmatpush.msra.mxu2 %v8025_v10 }
 0x2fa   :  { %v7990_v0 = vadd.f32 %v4061_v45, %v4020_v16  ;;  %4783 = vmatmul.f32.gmra.mxu2 %v6813_v18  ;;  %v656_v16 = vadd.f32 %v7013_v29, %v6958_v46 }
 0x2fb   :  { %v4067_v59 = vpop.f32.mrf.mxu3 }
 0x2fc   :  { %1576 = vrot.lane.b32.xlu1 %v7285_v13, %s6604_s6  ;;  %v7995_v9 = vpop.f32.mrf.mxu0  ;;  %v5424_v13 = vsub.f32 %v415_v55, %v8000_v47  ;;  %v9260_v55 = vld [vmem:[#allocation67_spill] sm:$0xff] }
 0x2fd   :  { %v3981_v58 = vpop.f32.mrf.mxu1  ;;  %v4024_v15 = vpop.f32.mrf.mxu2 }
 0x2fe   :  { %v3982_v1 = vadd.f32 %v3981_v58, %v3920_v52  ;;  %v5425_v32 = vand.u32 4294901760, %v5424_v13  ;;  %v5439_v52 = vand.u32 4294901760, %v5438_v37  ;;  %v9266_v37 = vld [vmem:[#allocation68_spill] sm:$0xff] }
 0x2ff   :  { %4695 = vmatmul.f32.gmra.mxu0 %v6795_v12 }
 0x300   :  { %v4025_v39 = vadd.f32 %v4024_v15, %v3982_v1  ;;  %4728 = vmatmul.f32.gmra.mxu1 %v6739_v40  ;;  %4848 = vmatmul.f32.gmra.mxu3 %v6795_v12  ;;  %v5426_v62 = vsub.f32 %v5424_v13, %v5425_v32 }
 0x302   :  { %v8002_v18 = vadd.f32 %v4067_v59, %v4025_v39  ;;  %4791 = vmatmul.f32.gmra.mxu2 %v6834_v49  ;;  %v5430_v49 = vsub.f32 %v414_v54, %v8007_v61  ;;  %v5427_v33 = vand.u32 4294901760, %v5426_v62  ;;  %v710_v59 = vpop.permute.xlu1 %709  ;;  %v9263_v62 = vld [vmem:[#allocation21_spill] sm:$0xff] }
 0x303   :  { %v8009_v41 = vpop.f32.mrf.mxu3 }
 0x304   :  { %v8012_v4 = vpop.f32.mrf.mxu0  ;;  %v5431_v34 = vand.u32 4294901760, %v5430_v49  ;;  %6378 = vmatpush.msra.mxu3 %v5427_v33  ;;  %5428 = vmatpush.msra.mxu1 %v5427_v33 }
 0x305   :  { %v8014_v35 = vpop.f32.mrf.mxu1  ;;  %v8020_v11 = vpop.f32.mrf.mxu2 }
 0x306   :  { %v5432_v8 = vsub.f32 %v5430_v49, %v5431_v34 }
 0x307   :  { %4699 = vmatmul.f32.gmra.mxu0 %v6815_v25 }
 0x308   :  { %4732 = vmatmul.f32.gmra.mxu1 %v6795_v12  ;;  %4852 = vmatmul.f32.gmra.mxu3 %v6815_v25  ;;  %v5433_v20 = vand.u32 4294901760, %v5432_v8 }
 0x30a   :  { %4799 = vmatmul.f32.gmra.mxu2 %v6855_v31  ;;  %6379 = vmatpush.msra.mxu3 %v5433_v20  ;;  %v5445_v31 = vand.u32 4294901760, %v5444_v57 }
 0x30b   :  { %v8037_v3 = vpop.f32.mrf.mxu3  ;;  %5434 = vmatpush.msra.mxu1 %v5433_v20 }
 0x30c   :  { %v8042_v45 = vpop.f32.mrf.mxu0  ;;  %6380 = vmatpush.msra.mxu3 %v5439_v52 }
 0x30d   :  { %v8040_v50 = vpop.f32.mrf.mxu1  ;;  %v8045_v5 = vpop.f32.mrf.mxu2  ;;  %5440 = vmatpush.msra.mxu1 %v5439_v52 }
 0x30e   :  { %6381 = vmatpush.msra.mxu3 %v5445_v31 }
 0x30f   :  { %4882 = vmatmul.f32.vlgmr.msrb.gmra.mxu0 %v6731_v36  ;;  %5446 = vmatpush.msra.mxu1 %v5445_v31  ;;  %v693_v36 = vadd.f32 %v7023_v53, %v656_v16  ;;  %v712_v53 = vpop.permute.xlu2 %711 }
 0x310   :  { %4736 = vmatmul.f32.gmra.mxu1 %v6815_v25  ;;  %5012 = vmatmul.f32.vlgmr.msrb.gmra.mxu3 %v6713_v27 }
 0x311   :  { %5989 = vmatpush.msrb.mxu0 %v5425_v32  ;;  %5774 = vmatpush.msrb.mxu3 %v8000_v47  ;;  %v716_v54 = vsel %vm715_vm1, %v693_v36, %v710_v59  ;;  %v3017_v32 = vpop.permute.xlu0 %3016  ;;  %v3990_v59 = vadd.f32 %v8040_v50, %v8012_v4 }
 0x312   :  { %4975 = vmatmul.f32.vlgmr.msrb.gmra.mxu2 %v6713_v27  ;;  %v9259_v27 = vld [vmem:[#allocation65_spill] sm:$0xff] }
 0x313   :  { %v4265_v58 = vpop.f32.mrf.mxu3  ;;  %5590 = vmatpush.msrb.mxu2 %v5424_v13  ;;  %5993 = vmatpush.msrb.mxu0 %v5431_v34  ;;  %v2961_v46 = vadd.f32 %v9260_v55, %v9259_v27  ;;  %v9261_v13 = vld [vmem:[#allocation69_spill] sm:$0xff]  ;;  %v660_v34 = vadd.f32 %v9263_v62, %v9262_v21 }
 0x314   :  { %v8054_v1 = vpop.f32.mrf.mxu0  ;;  %5776 = vmatpush.msrb.mxu3 %v8007_v61 }
 0x315   :  { %v8056_v15 = vpop.f32.mrf.mxu1  ;;  %v4200_v39 = vpop.f32.mrf.mxu2  ;;  %5593 = vmatpush.msrb.mxu2 %v5430_v49  ;;  %5997 = vmatpush.msrb.mxu0 %v5437_v44  ;;  %v2998_v26 = vadd.f32 %v9261_v13, %v2961_v46  ;;  %v3986_v49 = vadd.f32 %v8014_v35, %v7995_v9  ;;  %v9264_v9 = vld [vmem:[#allocation22_spill] sm:$0xff] }
 0x316   :  { %v8062_v29 = vadd.f32 %v4265_v58, %v4200_v39  ;;  %5778 = vmatpush.msrb.mxu3 %v8018_v63  ;;  %v697_v35 = vadd.f32 %v9264_v9, %v660_v34  ;;  %v9273_v9 = vld [vmem:[#allocation40_spill] sm:$0xff] }
 0x317   :  { %4887 = vmatmul.f32.gmra.mxu0 %v6755_v48  ;;  %5596 = vmatpush.msrb.mxu2 %v5436_v42  ;;  %v5039_v48 = vsel %vm416_vm0, %v716_v54, 0  ;;  %v3305_v16 = vpop.permute.xlu2 %3304 }
 0x318   :  { %4924 = vmatmul.f32.vlgmr.msrb.gmra.mxu1 %v6745_v43  ;;  %5016 = vmatmul.f32.gmra.mxu3 %v6739_v40  ;;  %v3020_v43 = vsel %vm715_vm1, %v2998_v26, %v3015_v2  ;;  %v8085_v8 = vand.u32 4294901760, %v5039_v48  ;;  %v717_v20 = vsel %vm715_vm1, %v697_v35, %v712_v53  ;;  %v3303_v53 = vpop.permute.xlu1 %3302 }
 0x319   :  { %6144 = vmatpush.msrb.mxu1 %v8000_v47  ;;  %5599 = vmatpush.msrb.mxu2 %v8032_v14  ;;  %v5087_v44 = vsel %vm416_vm0, %v3020_v43, 0  ;;  %v9265_v14 = vld [vmem:[#allocation66_spill] sm:$0xff] }
 0x31a   :  { %4979 = vmatmul.f32.gmra.mxu2 %v6739_v40  ;;  %5780 = vmatpush.msrb.mxu3 %v8025_v10  ;;  %v4030_v40 = vadd.f32 %v8020_v11, %v3986_v49  ;;  %v2965_v52 = vadd.f32 %v9266_v37, %v9265_v14  ;;  %v8098_v31 = vand.u32 4294901760, %v5087_v44  ;;  %v5042_v11 = vsel %vm416_vm0, %v717_v20, 0 }
 0x31b   :  { %6146 = vmatpush.msrb.mxu1 %v8007_v61  ;;  %v4269_v47 = vpop.f32.mrf.mxu3  ;;  %6001 = vmatpush.msrb.mxu0 %v5443_v19  ;;  %v8103_v2 = vsub.f32 %v5039_v48, %v8085_v8  ;;  %v8112_v39 = vand.u32 4294901760, %v5042_v11 }
 0x31c   :  { %v4120_v42 = vpop.f32.mrf.mxu0  ;;  %9268 = vst [vmem:[#allocation65_spill] sm:$0xff] %v8098_v31  ;;  %v8115_v27 = vsub.f32 %v5087_v44, %v8098_v31 }
 0x31d   :  { %v8082_v33 = vpop.f32.mrf.mxu1  ;;  %6148 = vmatpush.msrb.mxu1 %v8018_v63  ;;  %v4208_v61 = vpop.f32.mrf.mxu2  ;;  %v9267_v63 = vld [vmem:[#allocation70_spill] sm:$0xff]  ;;  %v9128_v54 = vand.u32 4294901760, %v8103_v2 }
 0x31e   :  { %v8092_v57 = vadd.f32 %v4269_v47, %v4208_v61  ;;  %v3002_v19 = vadd.f32 %v9267_v63, %v2965_v52  ;;  %9269 = vst [vmem:[#allocation67_spill] sm:$0xff] %v8115_v27  ;;  %v9119_v49 = vand.u32 4294901760, %v8115_v27  ;;  %v9272_v47 = vld [vmem:[#allocation35_spill] sm:$0xff] }
 0x31f   :  { %6150 = vmatpush.msrb.mxu1 %v8025_v10  ;;  %4892 = vmatmul.f32.gmra.mxu0 %v6808_v17  ;;  %v4074_v10 = vadd.f32 %v8009_v41, %v4030_v40  ;;  %v4035_v41 = vadd.f32 %v8045_v5, %v3990_v59  ;;  %v5157_v5 = vsub.f32 %v8103_v2, %v9128_v54  ;;  %v1001_v34 = vpop.permute.xlu2 %1000  ;;  %v9275_v52 = vld [vmem:[#allocation43_spill] sm:$0xff] }
 0x320   :  { %4930 = vmatmul.f32.gmra.mxu1 %v6769_v56  ;;  %5020 = vmatmul.f32.gmra.mxu3 %v6795_v12  ;;  %v3021_v17 = vsel %vm715_vm1, %v3002_v19, %v3017_v32  ;;  %v999_v56 = vpop.permute.xlu0 %998  ;;  %v8127_v32 = vsub.f32 %v5042_v11, %v8112_v39  ;;  %v1817_v35 = vadd.f32 %v9273_v9, %v9272_v47  ;;  %v9276_v19 = vld [vmem:[#allocation24_spill] sm:$0xff] }
 0x321   :  { %v4121_v58 = vadd.f32 %v4120_v42, %v4074_v10  ;;  %v5090_v4 = vsel %vm416_vm0, %v3021_v17, 0  ;;  %v4080_v62 = vadd.f32 %v8037_v3, %v4035_v41  ;;  %v5285_v42 = vsub.f32 %v8115_v27, %v9119_v49 }
 0x322   :  { %4983 = vmatmul.f32.gmra.mxu2 %v6795_v12  ;;  %v9270_v12 = vld [vmem:[#allocation23_spill] sm:$0xff]  ;;  %v8130_v21 = vand.u32 4294901760, %v5090_v4  ;;  %v1854_v63 = vadd.f32 %v9275_v52, %v1817_v35  ;;  %v1005_v11 = vsel %vm715_vm1, %v9276_v19, %v1001_v34  ;;  %v9282_v34 = vld [vmem:[#allocation44_spill] sm:$0xff]  ;;  %v3537_v47 = vadd.f32 %v7854_v30, %v7803_v24 }
 0x323   :  { %v8110_v36 = vpop.f32.mrf.mxu3  ;;  %v1004_v26 = vsel %vm715_vm1, %v9270_v12, %v999_v56  ;;  %v5286_v59 = vand.u32 4294901760, %v5285_v42 }
 0x324   :  { %v4124_v55 = vpop.f32.mrf.mxu0  ;;  %9271 = vst [vmem:[#allocation69_spill] sm:$0xff] %v8130_v21  ;;  %v8150_v3 = vsub.f32 %v5090_v4, %v8130_v21 }
 0x325   :  { %v4157_v46 = vpop.f32.mrf.mxu1  ;;  %v8120_v13 = vpop.f32.mrf.mxu2  ;;  %v4125_v48 = vadd.f32 %v4124_v55, %v4080_v62  ;;  %v5048_v55 = vsel %vm416_vm0, %v1005_v11, 0 }
 0x326   :  { %v4158_v50 = vadd.f32 %v4157_v46, %v4121_v58  ;;  %9274 = vst [vmem:[#allocation20_spill] sm:$0xff] %v8150_v3  ;;  %v9117_v56 = vand.u32 4294901760, %v8150_v3  ;;  %v8194_v62 = vand.u32 4294901760, %v5048_v55 }
 0x327   :  { %4897 = vmatmul.f32.gmra.mxu0 %v6826_v38  ;;  %v5045_v38 = vsel %vm416_vm0, %v1004_v26, 0 }
 0x328   :  { %4936 = vmatmul.f32.gmra.mxu1 %v6818_v28  ;;  %5024 = vmatmul.f32.gmra.mxu3 %v6815_v25  ;;  %v3308_v28 = vsel %vm715_vm1, %v7768_v6, %v3303_v53  ;;  %v9127_v6 = vand.u32 4294901760, %v8127_v32  ;;  %v8155_v61 = vand.u32 4294901760, %v5045_v38  ;;  %v5293_v26 = vsub.f32 %v8150_v3, %v9117_v56  ;;  %v9279_v53 = vld [vmem:[#allocation37_spill] sm:$0xff]  ;;  %9281 = vst [vmem:[#allocation66_spill] sm:$0xff] %v8194_v62 }
 0x329   :  { %4166 = vrot.lane.b32.xlu0 %v4158_v50, %s6604_s6  ;;  %v5093_v20 = vsel %vm416_vm0, %v3308_v28, 0 }
 0x32a   :  { %4987 = vmatmul.f32.gmra.mxu2 %v6815_v25  ;;  %v5158_v25 = vand.u32 4294901760, %v5157_v5  ;;  %v8164_v10 = vand.u32 4294901760, %v5093_v20  ;;  %v5165_v17 = vsub.f32 %v8127_v32, %v9127_v6  ;;  %v8173_v58 = vsub.f32 %v5045_v38, %v8155_v61  ;;  %v9280_v5 = vld [vmem:[#allocation42_spill] sm:$0xff] }
 0x32b   :  { %v8142_v43 = vpop.f32.mrf.mxu3  ;;  %v5294_v35 = vand.u32 4294901760, %v5293_v26 }
 0x32c   :  { %v8152_v40 = vpop.f32.mrf.mxu0  ;;  %9277 = vst [vmem:[#allocation21_spill] sm:$0xff] %v8164_v10  ;;  %v8182_v4 = vsub.f32 %v5093_v20, %v8164_v10  ;;  %v5166_v12 = vand.u32 4294901760, %v5165_v17  ;;  %v9126_v28 = vand.u32 4294901760, %v8173_v58 }
 0x32d   :  { %v4161_v44 = vpop.f32.mrf.mxu1  ;;  %v8158_v37 = vpop.f32.mrf.mxu2 }
 0x32e   :  { %v4162_v14 = vadd.f32 %v4161_v44, %v4125_v48  ;;  %9278 = vst [vmem:[#allocation22_spill] sm:$0xff] %v8182_v4  ;;  %v9116_v42 = vand.u32 4294901760, %v8182_v4  ;;  %v3574_v44 = vadd.f32 %v7864_v60, %v3537_v47  ;;  %v5173_v24 = vsub.f32 %v8173_v58, %v9126_v28  ;;  %v9290_v47 = vld [vmem:[#allocation73_spill] sm:$0xff] }
 0x32f   :  { %5159 = vmatmul.f32.vlgmr.msra.gmra.mxu0 %v5158_v25  ;;  %v8209_v25 = vsub.f32 %v5048_v55, %v8194_v62  ;;  %v9285_v55 = vld [vmem:[#allocation71_spill] sm:$0xff] }
 0x330   :  { %4942 = vmatmul.f32.gmra.mxu1 %v6837_v51  ;;  %5512 = vmatmul.f32.vlgmr.msra.gmra.mxu3 %v8098_v31  ;;  %v3309_v51 = vsel %vm715_vm1, %v7782_v7, %v3305_v16  ;;  %v1821_v7 = vadd.f32 %v9280_v5, %v9279_v53  ;;  %v5301_v19 = vsub.f32 %v8182_v4, %v9116_v42  ;;  %v5174_v17 = vand.u32 4294901760, %v5173_v24  ;;  %v9287_v53 = vld [vmem:[#allocation25_spill] sm:$0xff]  ;;  %v9288_v5 = vld [vmem:[#allocation27_spill] sm:$0xff]  ;;  %v9295_v42 = vld [vmem:[#allocation28_spill] sm:$0xff] }
 0x331   :  { %1862 = vrot.lane.b32.xlu0 %v1854_v63, %s6604_s6  ;;  %4168 = vrot.lane.b32.xlu2 %v4162_v14, %s6604_s6  ;;  %v5096_v16 = vsel %vm416_vm0, %v3309_v51, 0  ;;  %v9124_v51 = vand.u32 4294901760, %v8209_v25 }
 0x332   :  { %5287 = vmatmul.f32.vlgmr.msra.gmra.mxu2 %v5286_v59  ;;  %v1858_v48 = vadd.f32 %v9282_v34, %v1821_v7  ;;  %v8203_v9 = vand.u32 4294901760, %v5096_v16  ;;  %v1233_v7 = vadd.f32 %v9288_v5, %v9287_v53  ;;  %v5302_v34 = vand.u32 4294901760, %v5301_v19 }
 0x333   :  { %v8179_v46 = vpop.f32.mrf.mxu3  ;;  %v5181_v24 = vsub.f32 %v8209_v25, %v9124_v51 }
 0x334   :  { %v8184_v41 = vpop.f32.mrf.mxu0  ;;  %9283 = vst [vmem:[#allocation68_spill] sm:$0xff] %v8203_v9  ;;  %v8219_v52 = vsub.f32 %v5096_v16, %v8203_v9 }
 0x335   :  { %v8186_v50 = vpop.f32.mrf.mxu1  ;;  %v8196_v38 = vpop.f32.mrf.mxu2 }
 0x336   :  { %9284 = vst [vmem:[#allocation70_spill] sm:$0xff] %v8219_v52 }
 0x337   :  { %5167 = vmatmul.f32.gmra.mxu0 %v5166_v12  ;;  %v9286_v12 = vld [vmem:[#allocation72_spill] sm:$0xff] }
 0x338   :  { %5448 = vmatmul.f32.vlgmr.msra.gmra.mxu1 %v8085_v8  ;;  %5516 = vmatmul.f32.gmra.mxu3 %v8130_v21  ;;  %v3541_v26 = vadd.f32 %v9286_v12, %v9285_v55 }
 0x339   :  { %1864 = vrot.lane.b32.xlu2 %v1858_v48, %s6604_s6  ;;  %v9118_v48 = vand.u32 4294901760, %v8219_v52 }
 0x33a   :  { %5295 = vmatmul.f32.gmra.mxu2 %v5294_v35  ;;  %v3578_v35 = vadd.f32 %v9290_v47, %v3541_v26 }
 0x33b   :  { %v3591_v30 = vpop.permute.xlu1 %3590  ;;  %v8216_v14 = vpop.f32.mrf.mxu3 }
 0x33c   :  { %v3596_v20 = vsel %vm715_vm1, %v3574_v44, %v3591_v30  ;;  %v4317_v63 = vpop.f32.mrf.mxu0  ;;  %v4274_v44 = vadd.f32 %v8110_v36, %v8120_v13  ;;  %v9291_v30 = vld [vmem:[#allocation29_spill] sm:$0xff]  ;;  %v5309_v13 = vsub.f32 %v8219_v52, %v9118_v48 }
 0x33d   :  { %v8221_v60 = vpop.f32.mrf.mxu1  ;;  %v5099_v11 = vsel %vm416_vm0, %v3596_v20, 0  ;;  %v8227_v59 = vpop.f32.mrf.mxu2  ;;  %v1270_v20 = vadd.f32 %v9291_v30, %v1233_v7  ;;  %v5182_v30 = vand.u32 4294901760, %v5181_v24  ;;  %v9298_v24 = vld [vmem:[#allocation30_spill] sm:$0xff] }
 0x33e   :  { %v8235_v16 = vand.u32 4294901760, %v5099_v11  ;;  %v4318_v55 = vadd.f32 %v4317_v63, %v4274_v44 }
 0x33f   :  { %5175 = vmatmul.f32.gmra.mxu0 %v5174_v17 }
 0x340   :  { %5452 = vmatmul.f32.gmra.mxu1 %v8112_v39  ;;  %9289 = vst [vmem:[#allocation23_spill] sm:$0xff] %v8235_v16  ;;  %5520 = vmatmul.f32.gmra.mxu3 %v8164_v10  ;;  %v8248_v5 = vsub.f32 %v5099_v11, %v8235_v16  ;;  %v9294_v11 = vld [vmem:[#allocation26_spill] sm:$0xff] }
 0x341   :  { %v1237_v56 = vadd.f32 %v9295_v42, %v9294_v11 }
 0x342   :  { %5303 = vmatmul.f32.gmra.mxu2 %v5302_v34  ;;  %9292 = vst [vmem:[#allocation35_spill] sm:$0xff] %v8248_v5 }
 0x343   :  { %v3593_v17 = vpop.permute.xlu0 %3592  ;;  %v1287_v53 = vpop.permute.xlu1 %1286 }
 0x344   :  { %v3597_v12 = vsel %vm715_vm1, %v3578_v35, %v3593_v17  ;;  %v4445_v19 = vpop.f32.mrf.mxu3  ;;  %v1292_v26 = vsel %vm715_vm1, %v1270_v20, %v1287_v53  ;;  %v4322_v47 = vpop.f32.mrf.mxu0 }
 0x345   :  { %v4361_v36 = vpop.f32.mrf.mxu1  ;;  %v5102_v7 = vsel %vm416_vm0, %v3597_v12, 0  ;;  %v5051_v34 = vsel %vm416_vm0, %v1292_v26, 0  ;;  %v4408_v44 = vpop.f32.mrf.mxu2  ;;  %v9120_v12 = vand.u32 4294901760, %v8248_v5  ;;  %v1274_v26 = vadd.f32 %v9298_v24, %v1237_v56  ;;  %v9301_v24 = vld [vmem:[#allocation31_spill] sm:$0xff] }
 0x346   :  { %v4362_v63 = vadd.f32 %v4361_v36, %v4318_v55  ;;  %v3879_v35 = vpop.permute.xlu2 %3878  ;;  %v8256_v17 = vand.u32 4294901760, %v5051_v34  ;;  %v8261_v53 = vand.u32 4294901760, %v5102_v7  ;;  %v5310_v55 = vand.u32 4294901760, %v5309_v13 }
 0x347   :  { %5183 = vmatmul.f32.gmra.mxu0 %v5182_v30  ;;  %v4278_v36 = vadd.f32 %v8142_v43, %v8158_v37 }
 0x348   :  { %9293 = vst [vmem:[#allocation40_spill] sm:$0xff] %v8256_v17  ;;  %v4409_v20 = vadd.f32 %v4408_v44, %v4362_v63  ;;  %5456 = vmatmul.f32.gmra.mxu1 %v8155_v61  ;;  %v8264_v48 = vsub.f32 %v5051_v34, %v8256_v17  ;;  %5524 = vmatmul.f32.gmra.mxu3 %v8203_v9 }
 0x349   :  { %9296 = vst [vmem:[#allocation43_spill] sm:$0xff] %v8261_v53  ;;  %v3884_v63 = vsel %vm715_vm1, %v7955_v23, %v3879_v35  ;;  %v4323_v34 = vadd.f32 %v4322_v47, %v4278_v36  ;;  %v8277_v13 = vsub.f32 %v5102_v7, %v8261_v53 }
 0x34a   :  { %9297 = vst [vmem:[#allocation24_spill] sm:$0xff] %v8264_v48  ;;  %v4446_v42 = vadd.f32 %v4445_v19, %v4409_v20  ;;  %5311 = vmatmul.f32.gmra.mxu2 %v5310_v55  ;;  %v9123_v30 = vand.u32 4294901760, %v8264_v48  ;;  %v5317_v19 = vsub.f32 %v8248_v5, %v9120_v12  ;;  %v5105_v47 = vsel %vm416_vm0, %v3884_v63, 0 }
 0x34b   :  { %v1289_v44 = vpop.permute.xlu0 %1288  ;;  %9299 = vst [vmem:[#allocation37_spill] sm:$0xff] %v8277_v13  ;;  %v8298_v12 = vand.u32 4294901760, %v5105_v47 }
 0x34c   :  { %v1293_v11 = vsel %vm715_vm1, %v1274_v26, %v1289_v44  ;;  %v4449_v49 = vpop.f32.mrf.mxu3  ;;  %4454 = vrot.lane.b32.xlu1 %v4446_v42, %s6604_s6  ;;  %v8280_v37 = vpop.f32.mrf.mxu0  ;;  %v5189_v23 = vsub.f32 %v8264_v48, %v9123_v30 }
 0x34d   :  { %v5054_v56 = vsel %vm416_vm0, %v1293_v11, 0  ;;  %v4367_v43 = vpop.f32.mrf.mxu1  ;;  %v4412_v7 = vpop.f32.mrf.mxu2  ;;  %9303 = vst [vmem:[#allocation71_spill] sm:$0xff] %v8298_v12 }
 0x34e   :  { %v8289_v35 = vand.u32 4294901760, %v5054_v56  ;;  %v4368_v20 = vadd.f32 %v4367_v43, %v4323_v34  ;;  %v1575_v55 = vpop.permute.xlu2 %1574  ;;  %v5190_v36 = vand.u32 4294901760, %v5189_v23  ;;  %v5318_v34 = vand.u32 4294901760, %v5317_v19 }
 0x34f   :  { %v1580_v26 = vsel %vm715_vm1, %v9301_v24, %v1575_v55  ;;  %v9122_v43 = vand.u32 4294901760, %v8277_v13  ;;  %v8317_v24 = vsub.f32 %v5105_v47, %v8298_v12 }
 0x350   :  { %9300 = vst [vmem:[#allocation42_spill] sm:$0xff] %v8289_v35  ;;  %v8294_v42 = vsub.f32 %v5054_v56, %v8289_v35  ;;  %v4413_v44 = vadd.f32 %v4412_v7, %v4368_v20  ;;  %v5057_v11 = vsel %vm416_vm0, %v1580_v26, 0  ;;  %5460 = vmatmul.f32.gmra.mxu1 %v8194_v62  ;;  %5191 = vmatmul.f32.gmra.mxu0 %v5190_v36  ;;  %v9306_v7 = vld [vmem:[#allocation47_spill] sm:$0xff] }
 0x351   :  { %v8300_v63 = vand.u32 4294901760, %v5057_v11  ;;  %5528 = vmatmul.f32.gmra.mxu3 %v8235_v16  ;;  %9307 = vst [vmem:[#allocation27_spill] sm:$0xff] %v8317_v24  ;;  %v5325_v36 = vsub.f32 %v8277_v13, %v9122_v43  ;;  %v9308_v43 = vld [vmem:[#allocation48_spill] sm:$0xff] }
 0x352   :  { %9302 = vst [vmem:[#allocation44_spill] sm:$0xff] %v8294_v42  ;;  %v4450_v55 = vadd.f32 %v4449_v49, %v4413_v44  ;;  %v9121_v23 = vand.u32 4294901760, %v8294_v42  ;;  %5319 = vmatmul.f32.gmra.mxu2 %v5318_v34 }
 0x353   :  { %9304 = vst [vmem:[#allocation72_spill] sm:$0xff] %v8300_v63  ;;  %v8306_v56 = vsub.f32 %v5057_v11, %v8300_v63  ;;  %v5326_v47 = vand.u32 4294901760, %v5325_v36 }
 0x354   :  { %v8308_v20 = vpop.f32.mrf.mxu3  ;;  %4456 = vrot.lane.b32.xlu0 %v4450_v55, %s6604_s6  ;;  %2150 = vrot.lane.b32.xlu1 %v9306_v7, %s6604_s6  ;;  %v5197_v19 = vsub.f32 %v8294_v42, %v9121_v23  ;;  %v8319_v49 = vpop.f32.mrf.mxu0  ;;  %v9131_v55 = vand.u32 4294901760, %v8317_v24 }
 0x355   :  { %9305 = vst [vmem:[#allocation25_spill] sm:$0xff] %v8306_v56  ;;  %v8321_v26 = vpop.f32.mrf.mxu1  ;;  %v8326_v44 = vpop.f32.mrf.mxu2  ;;  %v9125_v34 = vand.u32 4294901760, %v8306_v56 }
 0x356   :  { %v5198_v11 = vand.u32 4294901760, %v5197_v19 }
 0x357   :  { %v5205_v7 = vsub.f32 %v8306_v56, %v9125_v34 }
 0x358   :  { %5464 = vmatmul.f32.gmra.mxu1 %v8256_v17  ;;  %5199 = vmatmul.f32.gmra.mxu0 %v5198_v11  ;;  %v5333_v11 = vsub.f32 %v8317_v24, %v9131_v55 }
 0x359   :  { %5532 = vmatmul.f32.gmra.mxu3 %v8261_v53  ;;  %v5206_v51 = vand.u32 4294901760, %v5205_v7 }
 0x35a   :  { %5327 = vmatmul.f32.gmra.mxu2 %v5326_v47  ;;  %v5334_v47 = vand.u32 4294901760, %v5333_v11 }
 0x35c   :  { %v8335_v23 = vpop.f32.mrf.mxu3  ;;  %2152 = vrot.lane.b32.xlu0 %v9308_v43, %s6604_s6  ;;  %v4504_v19 = vpop.f32.mrf.mxu0 }
 0x35d   :  { %v8339_v30 = vpop.f32.mrf.mxu1  ;;  %v8344_v36 = vpop.f32.mrf.mxu2 }
 0x360   :  { %5468 = vmatmul.f32.gmra.mxu1 %v8289_v35  ;;  %5207 = vmatmul.f32.gmra.mxu0 %v5206_v51 }
 0x361   :  { %5536 = vmatmul.f32.gmra.mxu3 %v8298_v12 }
 0x362   :  { %5335 = vmatmul.f32.gmra.mxu2 %v5334_v47 }
 0x364   :  { %v4649_v34 = vpop.f32.mrf.mxu3  ;;  %v4512_v28 = vpop.f32.mrf.mxu0 }
 0x365   :  { %v4561_v43 = vpop.f32.mrf.mxu1  ;;  %v4605_v6 = vpop.f32.mrf.mxu2 }
 0x366   :  { %v3881_v54 = vpop.permute.xlu1 %3880 }
 0x367   :  { %v3885_v53 = vsel %vm715_vm1, %v7970_v22, %v3881_v54  ;;  %v9311_v22 = vld [vmem:[#allocation32_spill] sm:$0xff] }
 0x368   :  { %v5108_v55 = vsel %vm416_vm0, %v3885_v53, 0  ;;  %5472 = vmatmul.f32.gmra.mxu1 %v8300_v63 }
 0x369   :  { %v8352_v7 = vand.u32 4294901760, %v5108_v55 }
 0x36b   :  { %9309 = vst [vmem:[#allocation73_spill] sm:$0xff] %v8352_v7  ;;  %v8355_v51 = vsub.f32 %v5108_v55, %v8352_v7  ;;  %5540 = vmatmul.f32.gmra.mxu3 %v8352_v7 }
 0x36c   :  { %v4655_v11 = vpop.f32.mrf.mxu3  ;;  %v8358_v12 = vpop.f32.mrf.mxu0 }
 0x36d   :  { %9310 = vst [vmem:[#allocation29_spill] sm:$0xff] %v8355_v51  ;;  %v4565_v47 = vpop.f32.mrf.mxu1  ;;  %v9150_v24 = vand.u32 4294901760, %v8355_v51  ;;  %v4610_v16 = vpop.f32.mrf.mxu2 }
 0x36e   :  { %v1577_v13 = vpop.permute.xlu1 %1576  ;;  %v4566_v3 = vadd.f32 %v4565_v47, %v4512_v28  ;;  %v9316_v28 = vld [vmem:[#allocation59_spill] sm:$0xff] }
 0x36f   :  { %v1581_v54 = vsel %vm715_vm1, %v9311_v22, %v1577_v13  ;;  %v5341_v53 = vsub.f32 %v8355_v51, %v9150_v24 }
 0x370   :  { %v5060_v55 = vsel %vm416_vm0, %v1581_v54, 0  ;;  %v4611_v17 = vadd.f32 %v4610_v16, %v4566_v3  ;;  %v9317_v16 = vld [vmem:[#allocation53_spill] sm:$0xff] }
 0x371   :  { %v8367_v9 = vand.u32 4294901760, %v5060_v55  ;;  %v5342_v7 = vand.u32 4294901760, %v5341_v53 }
 0x373   :  { %9312 = vst [vmem:[#allocation26_spill] sm:$0xff] %v8367_v9  ;;  %v8370_v5 = vsub.f32 %v5060_v55, %v8367_v9  ;;  %5343 = vmatmul.f32.gmra.mxu2 %v5342_v7  ;;  %5476 = vmatmul.f32.gmra.mxu1 %v8367_v9  ;;  %v4562_v55 = vadd.f32 %v4561_v43, %v4504_v19  ;;  %v9314_v43 = vld [vmem:[#allocation51_spill] sm:$0xff] }
 0x374   :  { %v8373_v10 = vpop.f32.mrf.mxu3  ;;  %v8375_v52 = vpop.f32.mrf.mxu0  ;;  %v4656_v19 = vadd.f32 %v4655_v11, %v4611_v17  ;;  %v9318_v17 = vld [vmem:[#allocation58_spill] sm:$0xff] }
 0x375   :  { %9313 = vst [vmem:[#allocation28_spill] sm:$0xff] %v8370_v5  ;;  %v8377_v13 = vpop.f32.mrf.mxu1  ;;  %v9175_v22 = vand.u32 4294901760, %v8370_v5  ;;  %v8380_v24 = vpop.f32.mrf.mxu2  ;;  %v4606_v4 = vadd.f32 %v4605_v6, %v4562_v55 }
 0x377   :  { %v5213_v54 = vsub.f32 %v8370_v5, %v9175_v22  ;;  %v4650_v27 = vadd.f32 %v4649_v34, %v4606_v4 }
 0x379   :  { %v5214_v53 = vand.u32 4294901760, %v5213_v54  ;;  %v9315_v54 = vld [vmem:[#allocation56_spill] sm:$0xff] }
 0x37b   :  { %5215 = vmatmul.f32.gmra.mxu0 %v5214_v53  ;;  %v2393_v53 = vadd.f32 %v9315_v54, %v9314_v43 }
 0x37c   :  { %v8385_v7 = vpop.f32.mrf.mxu3  ;;  %v4696_v51 = vpop.f32.mrf.mxu0 }
 0x37d   :  { %v8387_v21 = vpop.f32.mrf.mxu1  ;;  %v8389_v31 = vpop.f32.mrf.mxu2  ;;  %v4697_v9 = vadd.f32 %v4696_v51, %v4650_v27  ;;  %v2430_v4 = vadd.f32 %v9316_v28, %v2393_v53  ;;  %v9320_v53 = vld [vmem:[#allocation34_spill] sm:$0xff] }
 0x384   :  { %v4849_v63 = vpop.f32.mrf.mxu3  ;;  %v4700_v35 = vpop.f32.mrf.mxu0 }
 0x385   :  { %v4733_v56 = vpop.f32.mrf.mxu1  ;;  %v4792_v22 = vpop.f32.mrf.mxu2  ;;  %v4701_v5 = vadd.f32 %v4700_v35, %v4656_v19 }
 0x386   :  { %v4734_v42 = vadd.f32 %v4733_v56, %v4697_v9  ;;  %v4117_v9 = vadd.f32 %v8054_v1, %v8002_v18  ;;  %v4113_v18 = vadd.f32 %v8042_v45, %v7990_v0  ;;  %v9322_v45 = vld [vmem:[#allocation41_spill] sm:$0xff] }
 0x388   :  { %4742 = vrot.lane.b32.xlu2 %v4734_v42, %s6604_s6  ;;  %v2397_v42 = vadd.f32 %v9318_v17, %v9317_v16  ;;  %v4154_v56 = vadd.f32 %v8082_v33, %v4117_v9  ;;  %v4150_v1 = vadd.f32 %v8056_v15, %v4113_v18 }
 0x38b   :  { %v4169_v3 = vpop.permute.xlu2 %4168 }
 0x38c   :  { %v4853_v62 = vpop.f32.mrf.mxu3  ;;  %v8394_v55 = vpop.f32.mrf.mxu0  ;;  %v4173_v43 = vsel %vm715_vm1, %v4154_v56, %v4169_v3 }
 0x38d   :  { %v4737_v6 = vpop.f32.mrf.mxu1  ;;  %v4800_v34 = vpop.f32.mrf.mxu2  ;;  %v5114_v54 = vsel %vm416_vm0, %v4173_v43, 0 }
 0x38e   :  { %v4738_v27 = vadd.f32 %v4737_v6, %v4701_v5  ;;  %v9319_v5 = vld [vmem:[#allocation60_spill] sm:$0xff]  ;;  %v9321_v6 = vld [vmem:[#allocation38_spill] sm:$0xff]  ;;  %v8422_v9 = vand.u32 4294901760, %v5114_v54 }
 0x38f   :  { %v2434_v47 = vadd.f32 %v9319_v5, %v2397_v42  ;;  %v1813_v28 = vadd.f32 %v9321_v6, %v9320_v53  ;;  %v9324_v5 = vld [vmem:[#allocation33_spill] sm:$0xff]  ;;  %v9327_v6 = vld [vmem:[#allocation39_spill] sm:$0xff] }
 0x390   :  { %4744 = vrot.lane.b32.xlu1 %v4738_v27, %s6604_s6  ;;  %2438 = vrot.lane.b32.xlu2 %v2430_v4, %s6604_s6  ;;  %v8444_v53 = vsub.f32 %v5114_v54, %v8422_v9 }
 0x391   :  { %v1850_v17 = vadd.f32 %v9322_v45, %v1813_v28 }
 0x392   :  { %v9191_v54 = vand.u32 4294901760, %v8444_v53 }
 0x393   :  { %v1865_v4 = vpop.permute.xlu2 %1864 }
 0x394   :  { %v8403_v35 = vpop.f32.mrf.mxu3  ;;  %v8406_v51 = vpop.f32.mrf.mxu0  ;;  %v1869_v18 = vsel %vm715_vm1, %v1850_v17, %v1865_v4 }
 0x395   :  { %v8408_v11 = vpop.f32.mrf.mxu1  ;;  %v8411_v19 = vpop.f32.mrf.mxu2 }
 0x398   :  { %2440 = vrot.lane.b32.xlu1 %v2434_v47, %s6604_s6  ;;  %v9325_v47 = vld [vmem:[#allocation36_spill] sm:$0xff] }
 0x399   :  { %v1809_v43 = vadd.f32 %v9325_v47, %v9324_v5  ;;  %v5066_v5 = vsel %vm416_vm0, %v1869_v18, 0 }
 0x39a   :  { %v8455_v48 = vand.u32 4294901760, %v5066_v5 }
 0x39b   :  { %v4167_v33 = vpop.permute.xlu0 %4166  ;;  %v1846_v28 = vadd.f32 %v9327_v6, %v1809_v43 }
 0x39c   :  { %v4172_v27 = vsel %vm715_vm1, %v4150_v1, %v4167_v33  ;;  %v8425_v16 = vpop.f32.mrf.mxu3  ;;  %v4893_v56 = vpop.f32.mrf.mxu0  ;;  %v9326_v33 = vld [vmem:[#allocation64_spill] sm:$0xff] }
 0x39d   :  { %v5111_v3 = vsel %vm416_vm0, %v4172_v27, 0  ;;  %v8427_v0 = vpop.f32.mrf.mxu1  ;;  %v8432_v42 = vpop.f32.mrf.mxu2  ;;  %v4850_v27 = vadd.f32 %v4849_v63, %v4792_v22 }
 0x39e   :  { %v8430_v15 = vand.u32 4294901760, %v5111_v3 }
 0x39f   :  { %v4894_v4 = vadd.f32 %v4893_v56, %v4850_v27  ;;  %v4854_v27 = vadd.f32 %v4853_v62, %v4800_v34 }
 0x3a0   :  { %9323 = vst [vmem:[#allocation30_spill] sm:$0xff] %v8430_v15  ;;  %v8438_v1 = vsub.f32 %v5111_v3, %v8430_v15  ;;  %5544 = vmatmul.f32.gmra.mxu3 %v8430_v15  ;;  %2728 = vrot.lane.b32.xlu1 %v9326_v33, %s6604_s6 }
 0x3a2   :  { %v9184_v45 = vand.u32 4294901760, %v8438_v1 }
 0x3a3   :  { %v1863_v47 = vpop.permute.xlu0 %1862 }
 0x3a4   :  { %v1868_v3 = vsel %vm715_vm1, %v1846_v28, %v1863_v47  ;;  %v5349_v17 = vsub.f32 %v8438_v1, %v9184_v45  ;;  %v5021_v6 = vpop.f32.mrf.mxu3  ;;  %v4898_v47 = vpop.f32.mrf.mxu0 }
 0x3a5   :  { %v5063_v33 = vsel %vm416_vm0, %v1868_v3, 0  ;;  %v4937_v15 = vpop.f32.mrf.mxu1  ;;  %v4984_v43 = vpop.f32.mrf.mxu2  ;;  %v8465_v3 = vsub.f32 %v5066_v5, %v8455_v48 }
 0x3a6   :  { %v8457_v63 = vand.u32 4294901760, %v5063_v33  ;;  %v4938_v22 = vadd.f32 %v4937_v15, %v4894_v4  ;;  %v5350_v18 = vand.u32 4294901760, %v5349_v17  ;;  %v5357_v4 = vsub.f32 %v8444_v53, %v9191_v54 }
 0x3a7   :  { %v4899_v17 = vadd.f32 %v4898_v47, %v4854_v27  ;;  %v9198_v5 = vand.u32 4294901760, %v8465_v3  ;;  %v4308_v47 = vadd.f32 %v8152_v40, %v8062_v29 }
 0x3a8   :  { %v8460_v56 = vsub.f32 %v5063_v33, %v8457_v63  ;;  %v4985_v28 = vadd.f32 %v4984_v43, %v4938_v22  ;;  %5351 = vmatmul.f32.gmra.mxu2 %v5350_v18  ;;  %5480 = vmatmul.f32.gmra.mxu1 %v8457_v63  ;;  %v5358_v43 = vand.u32 4294901760, %v5357_v4 }
 0x3a9   :  { %5548 = vmatmul.f32.gmra.mxu3 %v8422_v9  ;;  %v4350_v4 = vadd.f32 %v8186_v50, %v4308_v47 }
 0x3aa   :  { %v5022_v45 = vadd.f32 %v5021_v6, %v4985_v28  ;;  %v9199_v15 = vand.u32 4294901760, %v8460_v56 }
 0x3ac   :  { %5030 = vrot.lane.b32.xlu0 %v5022_v45, %s6604_s6  ;;  %v5221_v62 = vsub.f32 %v8460_v56, %v9199_v15  ;;  %v5025_v28 = vpop.f32.mrf.mxu3  ;;  %v5229_v45 = vsub.f32 %v8465_v3, %v9198_v5 }
 0x3ad   :  { %v4943_v34 = vpop.f32.mrf.mxu1  ;;  %v4988_v18 = vpop.f32.mrf.mxu2 }
 0x3ae   :  { %v4944_v33 = vadd.f32 %v4943_v34, %v4899_v17  ;;  %v5222_v22 = vand.u32 4294901760, %v5221_v62  ;;  %v9328_v17 = vld [vmem:[#allocation63_spill] sm:$0xff]  ;;  %v5230_v62 = vand.u32 4294901760, %v5229_v45  ;;  %v4401_v34 = vadd.f32 %v8196_v38, %v4350_v4  ;;  %v9329_v45 = vld [vmem:[#allocation45_spill] sm:$0xff] }
 0x3b0   :  { %v4989_v6 = vadd.f32 %v4988_v18, %v4944_v33  ;;  %5223 = vmatmul.f32.gmra.mxu0 %v5222_v22  ;;  %5359 = vmatmul.f32.gmra.mxu2 %v5358_v43  ;;  %v4313_v33 = vadd.f32 %v8184_v41, %v8092_v57  ;;  %v4438_v22 = vadd.f32 %v8179_v46, %v4401_v34 }
 0x3b1   :  { %5484 = vmatmul.f32.gmra.mxu1 %v8455_v48 }
 0x3b2   :  { %v5026_v27 = vadd.f32 %v5025_v28, %v4989_v6  ;;  %v4356_v43 = vadd.f32 %v8221_v60, %v4313_v33 }
 0x3b4   :  { %2726 = vrot.lane.b32.xlu0 %v9328_v17, %s6604_s6  ;;  %5032 = vrot.lane.b32.xlu2 %v5026_v27, %s6604_s6  ;;  %v4405_v6 = vadd.f32 %v8227_v59, %v4356_v43 }
 0x3b6   :  { %v4442_v57 = vadd.f32 %v8216_v14, %v4405_v6 }
 0x3b8   :  { %5231 = vmatmul.f32.gmra.mxu0 %v5230_v62 }
 0x3be   :  { %v4455_v18 = vpop.permute.xlu1 %4454 }
 0x3bf   :  { %v4460_v29 = vsel %vm715_vm1, %v4438_v22, %v4455_v18 }
 0x3c0   :  { %v5117_v40 = vsel %vm416_vm0, %v4460_v29, 0 }
 0x3c1   :  { %v8494_v28 = vand.u32 4294901760, %v5117_v40 }
 0x3c3   :  { %v8497_v50 = vsub.f32 %v5117_v40, %v8494_v28  ;;  %5552 = vmatmul.f32.gmra.mxu3 %v8494_v28  ;;  %v9330_v40 = vld [vmem:[#allocation46_spill] sm:$0xff] }
 0x3c5   :  { %v9190_v46 = vand.u32 4294901760, %v8497_v50 }
 0x3c6   :  { %v4457_v41 = vpop.permute.xlu0 %4456  ;;  %v2151_v60 = vpop.permute.xlu1 %2150 }
 0x3c7   :  { %v4461_v38 = vsel %vm715_vm1, %v4442_v57, %v4457_v41  ;;  %v5365_v27 = vsub.f32 %v8497_v50, %v9190_v46  ;;  %v2156_v47 = vsel %vm715_vm1, %v9329_v45, %v2151_v60  ;;  %v4554_v45 = vadd.f32 %v8321_v26, %v8280_v37 }
 0x3c8   :  { %v5120_v59 = vsel %vm416_vm0, %v4461_v38, 0  ;;  %v5069_v4 = vsel %vm416_vm0, %v2156_v47, 0 }
 0x3c9   :  { %v8509_v17 = vand.u32 4294901760, %v5120_v59  ;;  %v5366_v14 = vand.u32 4294901760, %v5365_v27  ;;  %v8512_v62 = vand.u32 4294901760, %v5069_v4 }
 0x3cb   :  { %v8515_v34 = vsub.f32 %v5120_v59, %v8509_v17  ;;  %5367 = vmatmul.f32.gmra.mxu2 %v5366_v14  ;;  %5556 = vmatmul.f32.gmra.mxu3 %v8509_v17  ;;  %v8519_v33 = vsub.f32 %v5069_v4, %v8512_v62  ;;  %v4596_v14 = vadd.f32 %v8326_v44, %v4554_v45 }
 0x3cc   :  { %5488 = vmatmul.f32.gmra.mxu1 %v8512_v62 }
 0x3cd   :  { %v9185_v22 = vand.u32 4294901760, %v8515_v34  ;;  %v9197_v43 = vand.u32 4294901760, %v8519_v33 }
 0x3ce   :  { %v2153_v18 = vpop.permute.xlu0 %2152 }
 0x3cf   :  { %v5373_v29 = vsub.f32 %v8515_v34, %v9185_v22  ;;  %v2157_v6 = vsel %vm715_vm1, %v9330_v40, %v2153_v18  ;;  %v5237_v57 = vsub.f32 %v8519_v33, %v9197_v43 }
 0x3d0   :  { %v5072_v41 = vsel %vm416_vm0, %v2157_v6, 0 }
 0x3d1   :  { %v5374_v38 = vand.u32 4294901760, %v5373_v29  ;;  %v8533_v60 = vand.u32 4294901760, %v5072_v41  ;;  %v5238_v27 = vand.u32 4294901760, %v5237_v57  ;;  %v4638_v29 = vadd.f32 %v8308_v20, %v4596_v14  ;;  %v9333_v20 = vld [vmem:[#allocation55_spill] sm:$0xff] }
 0x3d3   :  { %5375 = vmatmul.f32.gmra.mxu2 %v5374_v38  ;;  %v8536_v59 = vsub.f32 %v5072_v41, %v8533_v60  ;;  %5239 = vmatmul.f32.gmra.mxu0 %v5238_v27  ;;  %v4689_v40 = vadd.f32 %v8358_v12, %v4638_v29  ;;  %v9331_v38 = vld [vmem:[#allocation49_spill] sm:$0xff]  ;;  %v9332_v27 = vld [vmem:[#allocation52_spill] sm:$0xff] }
 0x3d4   :  { %5492 = vmatmul.f32.gmra.mxu1 %v8533_v60  ;;  %v2385_v22 = vadd.f32 %v9332_v27, %v9331_v38 }
 0x3d5   :  { %v9196_v47 = vand.u32 4294901760, %v8536_v59  ;;  %v4726_v6 = vadd.f32 %v8377_v13, %v4689_v40 }
 0x3d6   :  { %v2422_v45 = vadd.f32 %v9333_v20, %v2385_v22 }
 0x3d7   :  { %v5245_v4 = vsub.f32 %v8536_v59, %v9196_v47 }
 0x3d9   :  { %v5246_v18 = vand.u32 4294901760, %v5245_v4 }
 0x3db   :  { %5247 = vmatmul.f32.gmra.mxu0 %v5246_v18 }
 0x3e2   :  { %v4743_v57 = vpop.permute.xlu2 %4742 }
 0x3e3   :  { %v4748_v41 = vsel %vm715_vm1, %v4726_v6, %v4743_v57 }
 0x3e4   :  { %v5123_v37 = vsel %vm416_vm0, %v4748_v41, 0  ;;  %v4558_v41 = vadd.f32 %v8339_v30, %v8319_v49 }
 0x3e5   :  { %v8551_v26 = vand.u32 4294901760, %v5123_v37 }
 0x3e6   :  { %v4601_v38 = vadd.f32 %v8344_v36, %v4558_v41 }
 0x3e7   :  { %v8556_v44 = vsub.f32 %v5123_v37, %v8551_v26  ;;  %5560 = vmatmul.f32.gmra.mxu3 %v8551_v26 }
 0x3e8   :  { %v4644_v27 = vadd.f32 %v8335_v23, %v4601_v38  ;;  %v9336_v23 = vld [vmem:[#allocation57_spill] sm:$0xff] }
 0x3e9   :  { %v9186_v12 = vand.u32 4294901760, %v8556_v44 }
 0x3ea   :  { %v2439_v13 = vpop.permute.xlu2 %2438  ;;  %v4693_v20 = vadd.f32 %v8375_v52, %v4644_v27 }
 0x3eb   :  { %v2444_v4 = vsel %vm715_vm1, %v2422_v45, %v2439_v13  ;;  %v5381_v14 = vsub.f32 %v8556_v44, %v9186_v12  ;;  %v9335_v12 = vld [vmem:[#allocation54_spill] sm:$0xff] }
 0x3ec   :  { %v5075_v18 = vsel %vm416_vm0, %v2444_v4, 0  ;;  %v4730_v45 = vadd.f32 %v8387_v21, %v4693_v20 }
 0x3ed   :  { %v8566_v29 = vand.u32 4294901760, %v5075_v18  ;;  %v5382_v40 = vand.u32 4294901760, %v5381_v14 }
 0x3ef   :  { %v8569_v6 = vsub.f32 %v5075_v18, %v8566_v29  ;;  %5383 = vmatmul.f32.gmra.mxu2 %v5382_v40  ;;  %5496 = vmatmul.f32.gmra.mxu1 %v8566_v29  ;;  %v9334_v40 = vld [vmem:[#allocation50_spill] sm:$0xff] }
 0x3f0   :  { %v2389_v30 = vadd.f32 %v9335_v12, %v9334_v40  ;;  %v4846_v12 = vadd.f32 %v8385_v7, %v8389_v31 }
 0x3f1   :  { %v9195_v22 = vand.u32 4294901760, %v8569_v6 }
 0x3f2   :  { %v2426_v36 = vadd.f32 %v9336_v23, %v2389_v30  ;;  %v4889_v20 = vadd.f32 %v8406_v51, %v4846_v12  ;;  %v9337_v12 = vld [vmem:[#allocation62_spill] sm:$0xff] }
 0x3f3   :  { %v5253_v57 = vsub.f32 %v8569_v6, %v9195_v22 }
 0x3f5   :  { %v5254_v37 = vand.u32 4294901760, %v5253_v57 }
 0x3f7   :  { %5255 = vmatmul.f32.gmra.mxu0 %v5254_v37 }
 0x402   :  { %v4745_v13 = vpop.permute.xlu1 %4744 }
 0x403   :  { %v4749_v4 = vsel %vm715_vm1, %v4730_v45, %v4745_v13  ;;  %v4842_v13 = vadd.f32 %v8373_v10, %v8380_v24 }
 0x404   :  { %v5126_v14 = vsel %vm416_vm0, %v4749_v4, 0  ;;  %v4932_v4 = vadd.f32 %v8427_v0, %v4889_v20  ;;  %v8639_v20 = vpop.f32.mrf.mxu3 }
 0x405   :  { %v8584_v18 = vand.u32 4294901760, %v5126_v14  ;;  %v4884_v31 = vadd.f32 %v8394_v55, %v4842_v13  ;;  %9338 = vst [vmem:[#allocation31_spill] sm:$0xff] %v8639_v20  ;;  %v9401_v20 = vld [vmem:[#allocation69_spill] sm:$0xff] }
 0x406   :  { %v4981_v40 = vadd.f32 %v8432_v42, %v4932_v4 }
 0x407   :  { %v8589_v49 = vsub.f32 %v5126_v14, %v8584_v18  ;;  %5564 = vmatmul.f32.gmra.mxu3 %v8584_v18  ;;  %v4926_v51 = vadd.f32 %v8408_v11, %v4884_v31  ;;  %v9339_v31 = vld [vmem:[#allocation61_spill] sm:$0xff] }
 0x408   :  { %v5018_v10 = vadd.f32 %v8425_v16, %v4981_v40  ;;  %v8647_v40 = vpop.f32.mrf.mxu1 }
 0x409   :  { %v9189_v52 = vand.u32 4294901760, %v8589_v49 }
 0x40a   :  { %v2441_v21 = vpop.permute.xlu1 %2440 }
 0x40b   :  { %v2445_v57 = vsel %vm715_vm1, %v2426_v36, %v2441_v21  ;;  %v5389_v41 = vsub.f32 %v8589_v49, %v9189_v52  ;;  %v4977_v36 = vadd.f32 %v8411_v19, %v4926_v51 }
 0x40c   :  { %v5078_v37 = vsel %vm416_vm0, %v2445_v57, 0 }
 0x40d   :  { %v8601_v38 = vand.u32 4294901760, %v5078_v37  ;;  %v5390_v27 = vand.u32 4294901760, %v5389_v41  ;;  %v5014_v0 = vadd.f32 %v8403_v35, %v4977_v36 }
 0x40e   :  { %v5033_v23 = vpop.permute.xlu2 %5032 }
 0x40f   :  { %v8605_v45 = vsub.f32 %v5078_v37, %v8601_v38  ;;  %5391 = vmatmul.f32.gmra.mxu2 %v5390_v27  ;;  %5500 = vmatmul.f32.gmra.mxu1 %v8601_v38  ;;  %v5037_v24 = vsel %vm715_vm1, %v5018_v10, %v5033_v23 }
 0x410   :  { %v5132_v55 = vsel %vm416_vm0, %v5037_v24, 0 }
 0x411   :  { %v9194_v14 = vand.u32 4294901760, %v8605_v45  ;;  %v8625_v42 = vand.u32 4294901760, %v5132_v55 }
 0x412   :  { %v2729_v41 = vpop.permute.xlu1 %2728 }
 0x413   :  { %v5261_v7 = vsub.f32 %v8605_v45, %v9194_v14  ;;  %v2733_v19 = vsel %vm715_vm1, %v9337_v12, %v2729_v41  ;;  %v8636_v35 = vsub.f32 %v5132_v55, %v8625_v42  ;;  %v8667_v41 = vpop.f32.mrf.mxu2  ;;  %v8672_v12 = vpop.f32.mrf.mxu0 }
 0x414   :  { %v5084_v13 = vsel %vm416_vm0, %v2733_v19, 0  ;;  %9340 = vst [vmem:[#allocation47_spill] sm:$0xff] %v8667_v41  ;;  %v8674_v19 = vpop.f32.mrf.mxu3  ;;  %v9402_v41 = vld [vmem:[#allocation70_spill] sm:$0xff] }
 0x415   :  { %v5262_v30 = vand.u32 4294901760, %v5261_v7  ;;  %v8650_v23 = vand.u32 4294901760, %v5084_v13  ;;  %v9187_v24 = vand.u32 4294901760, %v8636_v35  ;;  %9341 = vst [vmem:[#allocation48_spill] sm:$0xff] %v8674_v19 }
 0x417   :  { %5263 = vmatmul.f32.gmra.mxu0 %v5262_v30  ;;  %v8661_v55 = vsub.f32 %v5084_v13, %v8650_v23 }
 0x419   :  { %v9192_v13 = vand.u32 4294901760, %v8661_v55 }
 0x41e   :  { %v5031_v21 = vpop.permute.xlu0 %5030 }
 0x41f   :  { %v5036_v57 = vsel %vm715_vm1, %v5014_v0, %v5031_v21 }
 0x420   :  { %v5129_v11 = vsel %vm416_vm0, %v5036_v57, 0  ;;  %v5405_v57 = vsub.f32 %v8636_v35, %v9187_v24 }
 0x421   :  { %v8627_v37 = vand.u32 4294901760, %v5129_v11 }
 0x423   :  { %v8632_v16 = vsub.f32 %v5129_v11, %v8627_v37  ;;  %5568 = vmatmul.f32.gmra.mxu3 %v8627_v37 }
 0x425   :  { %v9188_v27 = vand.u32 4294901760, %v8632_v16 }
 0x426   :  { %v2727_v4 = vpop.permute.xlu0 %2726 }
 0x427   :  { %v2732_v7 = vsel %vm715_vm1, %v9339_v31, %v2727_v4  ;;  %v5397_v51 = vsub.f32 %v8632_v16, %v9188_v27  ;;  %v5406_v31 = vand.u32 4294901760, %v5405_v57  ;;  %v8689_v57 = vpop.f32.mrf.mxu3 }
 0x428   :  { %v5081_v30 = vsel %vm416_vm0, %v2732_v7, 0  ;;  %v8677_v7 = vpop.f32.mrf.mxu1  ;;  %9344 = vst [vmem:[#allocation51_spill] sm:$0xff] %v8689_v57 }
 0x429   :  { %v8652_v36 = vand.u32 4294901760, %v5081_v30  ;;  %v5398_v10 = vand.u32 4294901760, %v5397_v51  ;;  %v9342_v51 = vand.u32 4294901760, %v8103_v2 }
 0x42b   :  { %v8656_v0 = vsub.f32 %v5081_v30, %v8652_v36  ;;  %5399 = vmatmul.f32.gmra.mxu2 %v5398_v10  ;;  %5504 = vmatmul.f32.gmra.mxu1 %v8652_v36  ;;  %v5277_v30 = vsub.f32 %v8661_v55, %v9192_v13  ;;  %v8685_v10 = vpop.f32.mrf.mxu2 }
 0x42c   :  { %5572 = vmatmul.f32.gmra.mxu3 %v8625_v42  ;;  %9343 = vst [vmem:[#allocation32_spill] sm:$0xff] %v8685_v10 }
 0x42d   :  { %v9193_v21 = vand.u32 4294901760, %v8656_v0  ;;  %v5278_v24 = vand.u32 4294901760, %v5277_v30 }
 0x42f   :  { %v5269_v11 = vsub.f32 %v8656_v0, %v9193_v21  ;;  %v8703_v27 = vpop.f32.mrf.mxu3 }
 0x430   :  { %9347 = vst [vmem:[#allocation59_spill] sm:$0xff] %v8703_v27 }
 0x431   :  { %v5270_v4 = vand.u32 4294901760, %v5269_v11  ;;  %v8687_v11 = vpop.f32.mrf.mxu0 }
 0x433   :  { %5271 = vmatmul.f32.gmra.mxu0 %v5270_v4  ;;  %5407 = vmatmul.f32.gmra.mxu2 %v5406_v31  ;;  %v8692_v4 = vpop.f32.mrf.mxu1  ;;  %v9345_v31 = vand.u32 4294901760, %v8127_v32 }
 0x434   :  { %5508 = vmatmul.f32.gmra.mxu1 %v8650_v23  ;;  %5784 = vmatmul.f32.vlgmr.msrb.gmra.mxu3 %v9342_v51  ;;  %v8697_v51 = vpop.f32.mrf.mxu2 }
 0x435   :  { %9346 = vst [vmem:[#allocation56_spill] sm:$0xff] %v8697_v51 }
 0x437   :  { %v8719_v52 = vpop.f32.mrf.mxu3 }
 0x438   :  { %9351 = vst [vmem:[#allocation58_spill] sm:$0xff] %v8719_v52 }
 0x439   :  { %v8701_v30 = vpop.f32.mrf.mxu0 }
 0x43b   :  { %5279 = vmatmul.f32.gmra.mxu0 %v5278_v24  ;;  %5602 = vmatmul.f32.vlgmr.msrb.gmra.mxu2 %v8103_v2  ;;  %v9348_v24 = vand.u32 4294901760, %v8173_v58  ;;  %v8708_v2 = vpop.f32.mrf.mxu1 }
 0x43c   :  { %5790 = vmatmul.f32.gmra.mxu3 %v9345_v31  ;;  %6152 = vmatmul.f32.vlgmr.msrb.gmra.mxu1 %v8085_v8  ;;  %v8712_v31 = vpop.f32.mrf.mxu2 }
 0x43d   :  { %9349 = vst [vmem:[#allocation53_spill] sm:$0xff] %v8712_v31 }
 0x43f   :  { %v8732_v13 = vpop.f32.mrf.mxu3 }
 0x440   :  { %9356 = vst [vmem:[#allocation34_spill] sm:$0xff] %v8732_v13 }
 0x443   :  { %5607 = vmatmul.f32.gmra.mxu2 %v8127_v32  ;;  %6003 = vmatmul.f32.vlgmr.msrb.gmra.mxu0 %v8085_v8  ;;  %v9350_v32 = vand.u32 4294901760, %v8209_v25  ;;  %v8717_v8 = vpop.f32.mrf.mxu0 }
 0x444   :  { %5796 = vmatmul.f32.gmra.mxu3 %v9348_v24  ;;  %6156 = vmatmul.f32.gmra.mxu1 %v8112_v39  ;;  %v8721_v24 = vpop.f32.mrf.mxu1  ;;  %v8728_v54 = vpop.f32.mrf.mxu2 }
 0x445   :  { %9355 = vst [vmem:[#allocation60_spill] sm:$0xff] %v8728_v54 }
 0x447   :  { %v8745_v47 = vpop.f32.mrf.mxu3 }
 0x448   :  { %9361 = vst [vmem:[#allocation41_spill] sm:$0xff] %v8745_v47 }
 0x44b   :  { %5612 = vmatmul.f32.gmra.mxu2 %v8173_v58  ;;  %6007 = vmatmul.f32.gmra.mxu0 %v8112_v39  ;;  %v9352_v58 = vld [vmem:[#allocation24_spill] sm:$0xff]  ;;  %v9354_v39 = vld [vmem:[#allocation66_spill] sm:$0xff] }
 0x44c   :  { %5802 = vmatmul.f32.gmra.mxu3 %v9350_v32  ;;  %6160 = vmatmul.f32.gmra.mxu1 %v8155_v61  ;;  %v9353_v46 = vand.u32 4294901760, %v9352_v58  ;;  %v8730_v32 = vpop.f32.mrf.mxu0  ;;  %v8734_v21 = vpop.f32.mrf.mxu1 }
 0x44f   :  { %v8756_v15 = vpop.f32.mrf.mxu3 }
 0x450   :  { %9366 = vst [vmem:[#allocation36_spill] sm:$0xff] %v8756_v15  ;;  %v9372_v15 = vand.u32 4294901760, %v8460_v56 }
 0x453   :  { %5617 = vmatmul.f32.gmra.mxu2 %v8209_v25  ;;  %6011 = vmatmul.f32.gmra.mxu0 %v8155_v61  ;;  %v9357_v25 = vld [vmem:[#allocation44_spill] sm:$0xff] }
 0x454   :  { %5808 = vmatmul.f32.gmra.mxu3 %v9353_v46  ;;  %6164 = vmatmul.f32.gmra.mxu1 %v9354_v39  ;;  %v9358_v14 = vand.u32 4294901760, %v9357_v25  ;;  %v9359_v61 = vld [vmem:[#allocation40_spill] sm:$0xff]  ;;  %v8741_v46 = vpop.f32.mrf.mxu2  ;;  %v8743_v22 = vpop.f32.mrf.mxu0 }
 0x455   :  { %9360 = vst [vmem:[#allocation38_spill] sm:$0xff] %v8741_v46  ;;  %v8749_v43 = vpop.f32.mrf.mxu1  ;;  %v9369_v46 = vld [vmem:[#allocation72_spill] sm:$0xff] }
 0x457   :  { %v8769_v52 = vpop.f32.mrf.mxu3 }
 0x458   :  { %9371 = vst [vmem:[#allocation39_spill] sm:$0xff] %v8769_v52 }
 0x45b   :  { %5622 = vmatmul.f32.gmra.mxu2 %v9352_v58  ;;  %6015 = vmatmul.f32.gmra.mxu0 %v9354_v39  ;;  %v9362_v58 = vld [vmem:[#allocation25_spill] sm:$0xff]  ;;  %v9364_v39 = vld [vmem:[#allocation42_spill] sm:$0xff] }
 0x45c   :  { %5814 = vmatmul.f32.gmra.mxu3 %v9358_v14  ;;  %6168 = vmatmul.f32.gmra.mxu1 %v9359_v61  ;;  %v9363_v5 = vand.u32 4294901760, %v9362_v58  ;;  %v8754_v14 = vpop.f32.mrf.mxu2  ;;  %v8760_v47 = vpop.f32.mrf.mxu0 }
 0x45d   :  { %9365 = vst [vmem:[#allocation33_spill] sm:$0xff] %v8754_v14  ;;  %v9373_v14 = vld [vmem:[#allocation26_spill] sm:$0xff] }
 0x45f   :  { %v8784_v52 = vpop.f32.mrf.mxu3 }
 0x460   :  { %9375 = vst [vmem:[#allocation45_spill] sm:$0xff] %v8784_v52 }
 0x463   :  { %5627 = vmatmul.f32.gmra.mxu2 %v9357_v25  ;;  %6019 = vmatmul.f32.gmra.mxu0 %v9359_v61  ;;  %v8762_v25 = vpop.f32.mrf.mxu1  ;;  %v9367_v61 = vld [vmem:[#allocation28_spill] sm:$0xff] }
 0x464   :  { %5820 = vmatmul.f32.gmra.mxu3 %v9363_v5  ;;  %6172 = vmatmul.f32.gmra.mxu1 %v9364_v39  ;;  %v9368_v13 = vand.u32 4294901760, %v9367_v61  ;;  %v8767_v5 = vpop.f32.mrf.mxu2 }
 0x465   :  { %9370 = vst [vmem:[#allocation64_spill] sm:$0xff] %v8767_v5 }
 0x46b   :  { %5632 = vmatmul.f32.gmra.mxu2 %v9362_v58  ;;  %6023 = vmatmul.f32.gmra.mxu0 %v9364_v39  ;;  %v8773_v58 = vpop.f32.mrf.mxu0  ;;  %v8775_v39 = vpop.f32.mrf.mxu1 }
 0x46c   :  { %5826 = vmatmul.f32.gmra.mxu3 %v9368_v13  ;;  %6176 = vmatmul.f32.gmra.mxu1 %v9369_v46  ;;  %v8780_v13 = vpop.f32.mrf.mxu2 }
 0x46d   :  { %9374 = vst [vmem:[#allocation63_spill] sm:$0xff] %v8780_v13 }
 0x473   :  { %5637 = vmatmul.f32.gmra.mxu2 %v9367_v61  ;;  %6027 = vmatmul.f32.gmra.mxu0 %v9369_v46  ;;  %v8786_v61 = vpop.f32.mrf.mxu0  ;;  %v9376_v46 = vand.u32 4294901760, %v8465_v3  ;;  %v8791_v5 = vpop.f32.mrf.mxu1 }
 0x474   :  { %5832 = vmatmul.f32.gmra.mxu3 %v9372_v15  ;;  %6180 = vmatmul.f32.gmra.mxu1 %v9373_v14  ;;  %v8795_v15 = vpop.f32.mrf.mxu2 }
 0x475   :  { %9377 = vst [vmem:[#allocation46_spill] sm:$0xff] %v8795_v15 }
 0x47b   :  { %5642 = vmatmul.f32.gmra.mxu2 %v8460_v56  ;;  %6031 = vmatmul.f32.gmra.mxu0 %v9373_v14  ;;  %v8797_v56 = vpop.f32.mrf.mxu3  ;;  %v9379_v14 = vand.u32 4294901760, %v8519_v33  ;;  %v8802_v52 = vpop.f32.mrf.mxu0 }
 0x47c   :  { %5838 = vmatmul.f32.gmra.mxu3 %v9376_v46  ;;  %6184 = vmatmul.f32.gmra.mxu1 %v8457_v63  ;;  %9378 = vst [vmem:[#allocation49_spill] sm:$0xff] %v8797_v56  ;;  %v8804_v46 = vpop.f32.mrf.mxu1 }
 0x483   :  { %5647 = vmatmul.f32.gmra.mxu2 %v8465_v3  ;;  %6035 = vmatmul.f32.gmra.mxu0 %v8457_v63  ;;  %v8808_v3 = vpop.f32.mrf.mxu2  ;;  %v9381_v63 = vand.u32 4294901760, %v8536_v59  ;;  %v8813_v56 = vpop.f32.mrf.mxu3 }
 0x484   :  { %5844 = vmatmul.f32.gmra.mxu3 %v9379_v14  ;;  %6188 = vmatmul.f32.gmra.mxu1 %v8455_v48  ;;  %9380 = vst [vmem:[#allocation52_spill] sm:$0xff] %v8808_v3  ;;  %v8815_v14 = vpop.f32.mrf.mxu0  ;;  %v8817_v15 = vpop.f32.mrf.mxu1 }
 0x485   :  { %9382 = vst [vmem:[#allocation55_spill] sm:$0xff] %v8813_v56 }
 0x48b   :  { %5652 = vmatmul.f32.gmra.mxu2 %v8519_v33  ;;  %6039 = vmatmul.f32.gmra.mxu0 %v8455_v48  ;;  %v9383_v33 = vand.u32 4294901760, %v8569_v6  ;;  %v8824_v48 = vpop.f32.mrf.mxu2 }
 0x48c   :  { %5850 = vmatmul.f32.gmra.mxu3 %v9381_v63  ;;  %6192 = vmatmul.f32.gmra.mxu1 %v8512_v62  ;;  %9384 = vst [vmem:[#allocation50_spill] sm:$0xff] %v8824_v48  ;;  %v8826_v63 = vpop.f32.mrf.mxu3  ;;  %v8828_v3 = vpop.f32.mrf.mxu0 }
 0x48d   :  { %9385 = vst [vmem:[#allocation54_spill] sm:$0xff] %v8826_v63  ;;  %v8830_v56 = vpop.f32.mrf.mxu1 }
 0x493   :  { %5657 = vmatmul.f32.gmra.mxu2 %v8536_v59  ;;  %6043 = vmatmul.f32.gmra.mxu0 %v8512_v62  ;;  %v9386_v59 = vand.u32 4294901760, %v8605_v45  ;;  %v8837_v62 = vpop.f32.mrf.mxu2 }
 0x494   :  { %5856 = vmatmul.f32.gmra.mxu3 %v9383_v33  ;;  %6196 = vmatmul.f32.gmra.mxu1 %v8533_v60  ;;  %9387 = vst [vmem:[#allocation57_spill] sm:$0xff] %v8837_v62  ;;  %v8839_v33 = vpop.f32.mrf.mxu3  ;;  %v8841_v48 = vpop.f32.mrf.mxu0 }
 0x495   :  { %9388 = vst [vmem:[#allocation62_spill] sm:$0xff] %v8839_v33  ;;  %v8843_v63 = vpop.f32.mrf.mxu1 }
 0x49b   :  { %5662 = vmatmul.f32.gmra.mxu2 %v8569_v6  ;;  %6047 = vmatmul.f32.gmra.mxu0 %v8533_v60  ;;  %v9389_v6 = vand.u32 4294901760, %v8656_v0  ;;  %v8850_v60 = vpop.f32.mrf.mxu2 }
 0x49c   :  { %5862 = vmatmul.f32.gmra.mxu3 %v9386_v59  ;;  %6200 = vmatmul.f32.gmra.mxu1 %v8566_v29  ;;  %9390 = vst [vmem:[#allocation61_spill] sm:$0xff] %v8850_v60  ;;  %v8852_v13 = vpop.f32.mrf.mxu0 }
 0x4a3   :  { %5667 = vmatmul.f32.gmra.mxu2 %v8605_v45  ;;  %6051 = vmatmul.f32.gmra.mxu0 %v8566_v29  ;;  %v9391_v45 = vand.u32 4294901760, %v8661_v55 }
 0x4a4   :  { %5868 = vmatmul.f32.gmra.mxu3 %v9389_v6  ;;  %6204 = vmatmul.f32.gmra.mxu1 %v8601_v38 }
 0x4a6   :  { %v5569_v59 = vpop.f32.mrf.mxu3 }
 0x4a8   :  { %v8854_v62 = vpop.f32.mrf.mxu1 }
 0x4ab   :  { %5672 = vmatmul.f32.gmra.mxu2 %v8656_v0  ;;  %6055 = vmatmul.f32.gmra.mxu0 %v8601_v38  ;;  %v9393_v0 = vld [vmem:[#allocation67_spill] sm:$0xff] }
 0x4ac   :  { %5874 = vmatmul.f32.gmra.mxu3 %v9391_v45  ;;  %6208 = vmatmul.f32.gmra.mxu1 %v8652_v36  ;;  %v9394_v27 = vand.u32 4294901760, %v9393_v0 }
 0x4ae   :  { %v5400_v29 = vpop.f32.mrf.mxu2 }
 0x4af   :  { %v8861_v6 = vadd.f32 %v5569_v59, %v5400_v29  ;;  %v5573_v33 = vpop.f32.mrf.mxu3 }
 0x4b0   :  { %v8863_v54 = vpop.f32.mrf.mxu0 }
 0x4b1   :  { %9392 = vst [vmem:[#allocation24_spill] sm:$0xff] %v8861_v6  ;;  %v8865_v60 = vpop.f32.mrf.mxu1  ;;  %v9396_v6 = vld [vmem:[#allocation20_spill] sm:$0xff] }
 0x4b3   :  { %5677 = vmatmul.f32.gmra.mxu2 %v8661_v55  ;;  %6059 = vmatmul.f32.gmra.mxu0 %v8652_v36  ;;  %v9397_v55 = vand.u32 4294901760, %v9396_v6  ;;  %v9398_v36 = vld [vmem:[#allocation65_spill] sm:$0xff] }
 0x4b4   :  { %5880 = vmatmul.f32.gmra.mxu3 %v9394_v27  ;;  %6212 = vmatmul.f32.gmra.mxu1 %v8650_v23  ;;  %v5450_v27 = vadd.f32 %v8647_v40, %v8672_v12  ;;  %v5454_v40 = vadd.f32 %v8677_v7, %v8687_v11  ;;  %v9403_v7 = vand.u32 4294901760, %v9402_v41  ;;  %v5458_v11 = vadd.f32 %v8692_v4, %v8701_v30  ;;  %v9407_v4 = vld [vmem:[#allocation68_spill] sm:$0xff] }
 0x4b6   :  { %v5408_v38 = vpop.f32.mrf.mxu2 }
 0x4b7   :  { %v8872_v45 = vadd.f32 %v5573_v33, %v5408_v38  ;;  %v5785_v31 = vpop.f32.mrf.mxu3 }
 0x4b8   :  { %v8874_v59 = vpop.f32.mrf.mxu0 }
 0x4b9   :  { %9395 = vst [vmem:[#allocation66_spill] sm:$0xff] %v8872_v45  ;;  %v6153_v29 = vpop.f32.mrf.mxu1 }
 0x4bb   :  { %5682 = vmatmul.f32.gmra.mxu2 %v9393_v0  ;;  %6063 = vmatmul.f32.gmra.mxu0 %v8650_v23  ;;  %v8885_v23 = vld [vmem:[#allocation10] sm:$0xff]  ;;  %v9399_v0 = vld [vmem:[#allocation22_spill] sm:$0xff] }
 0x4bc   :  { %5886 = vmatmul.f32.gmra.mxu3 %v9397_v55  ;;  %6216 = vmatmul.f32.gmra.mxu1 %v9398_v36  ;;  %v9400_v55 = vand.u32 4294901760, %v9399_v0 }
 0x4be   :  { %v5603_v57 = vpop.f32.mrf.mxu2 }
 0x4bf   :  { %v5604_v51 = vadd.f32 %v5603_v57, %v5450_v27  ;;  %v5791_v33 = vpop.f32.mrf.mxu3 }
 0x4c0   :  { %v6004_v38 = vpop.f32.mrf.mxu0 }
 0x4c1   :  { %v5786_v45 = vadd.f32 %v5785_v31, %v5604_v51  ;;  %v6157_v19 = vpop.f32.mrf.mxu1 }
 0x4c3   :  { %v6005_v10 = vadd.f32 %v6004_v38, %v5786_v45  ;;  %5687 = vmatmul.f32.gmra.mxu2 %v9396_v6  ;;  %6067 = vmatmul.f32.gmra.mxu0 %v9398_v36 }
 0x4c4   :  { %5892 = vmatmul.f32.gmra.mxu3 %v9400_v55  ;;  %6220 = vmatmul.f32.gmra.mxu1 %v9401_v20  ;;  %v8896_v55 = vld [vmem:[#allocation10 + $0x8] sm:$0xff] }
 0x4c5   :  { %v6154_v12 = vadd.f32 %v6153_v29, %v6005_v10  ;;  %v9404_v10 = vld [vmem:[#allocation21_spill] sm:$0xff] }
 0x4c6   :  { %v5608_v57 = vpop.f32.mrf.mxu2 }
 0x4c7   :  { %v6288_v51 = vmul.f32 %v8885_v23, %v6154_v12  ;;  %v5609_v31 = vadd.f32 %v5608_v57, %v5454_v40  ;;  %v5797_v45 = vpop.f32.mrf.mxu3 }
 0x4c8   :  { %v6008_v27 = vpop.f32.mrf.mxu0 }
 0x4c9   :  { %6320 = vst.msk [vmem:[#allocation14] sm:$0xff] %vm416_vm0, %v6288_v51  ;;  %v5792_v6 = vadd.f32 %v5791_v33, %v5609_v31  ;;  %v6161_v36 = vpop.f32.mrf.mxu1 }
 0x4cb   :  { %v6009_v38 = vadd.f32 %v6008_v27, %v5792_v6  ;;  %5692 = vmatmul.f32.gmra.mxu2 %v9399_v0  ;;  %6071 = vmatmul.f32.gmra.mxu0 %v9401_v20  ;;  %v9405_v27 = vld [vmem:[#allocation35_spill] sm:$0xff] }
 0x4cc   :  { %5898 = vmatmul.f32.gmra.mxu3 %v9403_v7  ;;  %6224 = vmatmul.f32.gmra.mxu1 %v9404_v10  ;;  %v9406_v6 = vand.u32 4294901760, %v9405_v27 }
 0x4cd   :  { %v6158_v29 = vadd.f32 %v6157_v19, %v6009_v38  ;;  %v5462_v19 = vadd.f32 %v8708_v2, %v8717_v8  ;;  %v9410_v2 = vld [vmem:[#allocation23_spill] sm:$0xff]  ;;  %v5466_v8 = vadd.f32 %v8721_v24, %v8730_v32  ;;  %v5470_v32 = vadd.f32 %v8734_v21, %v8743_v22 }
 0x4ce   :  { %v5613_v40 = vpop.f32.mrf.mxu2  ;;  %v9413_v24 = vld [vmem:[#allocation43_spill] sm:$0xff]  ;;  %v5474_v21 = vadd.f32 %v8749_v43, %v8760_v47  ;;  %v9418_v43 = vld [vmem:[#allocation73_spill] sm:$0xff]  ;;  %v5478_v47 = vadd.f32 %v8762_v25, %v8773_v58  ;;  %v9420_v25 = vld [vmem:[#allocation30_spill] sm:$0xff]  ;;  %v5482_v58 = vadd.f32 %v8775_v39, %v8786_v61  ;;  %v9421_v39 = vand.u32 4294901760, %v8497_v50 }
 0x4cf   :  { %v6289_v33 = vmul.f32 %v8896_v55, %v6158_v29  ;;  %v5614_v12 = vadd.f32 %v5613_v40, %v5458_v11  ;;  %v5803_v57 = vpop.f32.mrf.mxu3  ;;  %v9416_v22 = vld [vmem:[#allocation71_spill] sm:$0xff]  ;;  %v5486_v61 = vadd.f32 %v8791_v5, %v8802_v52  ;;  %v9422_v52 = vand.u32 4294901760, %v8515_v34 }
 0x4d0   :  { %v6012_v51 = vpop.f32.mrf.mxu0  ;;  %v5490_v5 = vadd.f32 %v8804_v46, %v8815_v14  ;;  %v5494_v46 = vadd.f32 %v8817_v15, %v8828_v3  ;;  %v5498_v15 = vadd.f32 %v8830_v56, %v8841_v48  ;;  %v5502_v56 = vadd.f32 %v8843_v63, %v8852_v13 }
 0x4d1   :  { %6321 = vst.msk [vmem:[#allocation14 + $0x8] sm:$0xff] %vm416_vm0, %v6289_v33  ;;  %v5798_v20 = vadd.f32 %v5797_v45, %v5614_v12  ;;  %v6165_v0 = vpop.f32.mrf.mxu1  ;;  %v9408_v33 = vld [vmem:[#allocation37_spill] sm:$0xff]  ;;  %v5506_v13 = vadd.f32 %v8854_v62, %v8863_v54  ;;  %v5510_v54 = vadd.f32 %v8865_v60, %v8874_v59 }
 0x4d2   :  { %v9409_v12 = vand.u32 4294901760, %v9408_v33 }
 0x4d3   :  { %v6013_v31 = vadd.f32 %v6012_v51, %v5798_v20  ;;  %5697 = vmatmul.f32.gmra.mxu2 %v9402_v41  ;;  %6075 = vmatmul.f32.gmra.mxu0 %v9404_v10 }
 0x4d4   :  { %5904 = vmatmul.f32.gmra.mxu3 %v9406_v6  ;;  %6228 = vmatmul.f32.gmra.mxu1 %v9407_v4 }
 0x4d5   :  { %v6162_v30 = vadd.f32 %v6161_v36, %v6013_v31 }
 0x4d6   :  { %v5618_v38 = vpop.f32.mrf.mxu2 }
 0x4d7   :  { %v6290_v7 = vmul.f32 %v8885_v23, %v6162_v30  ;;  %v5619_v11 = vadd.f32 %v5618_v38, %v5462_v19  ;;  %v5809_v45 = vpop.f32.mrf.mxu3  ;;  %v9411_v30 = vld [vmem:[#allocation27_spill] sm:$0xff] }
 0x4d8   :  { %v6016_v29 = vpop.f32.mrf.mxu0  ;;  %v9412_v38 = vand.u32 4294901760, %v9411_v30 }
 0x4d9   :  { %6322 = vst.msk [vmem:[#allocation14 + $0x10] sm:$0xff] %vm416_vm0, %v6290_v7  ;;  %v5804_v41 = vadd.f32 %v5803_v57, %v5619_v11  ;;  %v6169_v40 = vpop.f32.mrf.mxu1 }
 0x4db   :  { %v6017_v10 = vadd.f32 %v6016_v29, %v5804_v41  ;;  %5702 = vmatmul.f32.gmra.mxu2 %v9405_v27  ;;  %6079 = vmatmul.f32.gmra.mxu0 %v9407_v4 }
 0x4dc   :  { %5910 = vmatmul.f32.gmra.mxu3 %v9409_v12  ;;  %6232 = vmatmul.f32.gmra.mxu1 %v9410_v2 }
 0x4dd   :  { %v6166_v36 = vadd.f32 %v6165_v0, %v6017_v10 }
 0x4de   :  { %v5623_v51 = vpop.f32.mrf.mxu2 }
 0x4df   :  { %v6291_v20 = vmul.f32 %v8896_v55, %v6166_v36  ;;  %v5624_v31 = vadd.f32 %v5623_v51, %v5466_v8  ;;  %v5815_v57 = vpop.f32.mrf.mxu3 }
 0x4e0   :  { %v6020_v6 = vpop.f32.mrf.mxu0 }
 0x4e1   :  { %6323 = vst.msk [vmem:[#allocation14 + $0x18] sm:$0xff] %vm416_vm0, %v6291_v20  ;;  %v5810_v27 = vadd.f32 %v5809_v45, %v5624_v31  ;;  %v6173_v19 = vpop.f32.mrf.mxu1 }
 0x4e3   :  { %v6021_v4 = vadd.f32 %v6020_v6, %v5810_v27  ;;  %5707 = vmatmul.f32.gmra.mxu2 %v9408_v33  ;;  %6083 = vmatmul.f32.gmra.mxu0 %v9410_v2  ;;  %v9414_v2 = vld [vmem:[#allocation29_spill] sm:$0xff] }
 0x4e4   :  { %5916 = vmatmul.f32.gmra.mxu3 %v9412_v38  ;;  %6236 = vmatmul.f32.gmra.mxu1 %v9413_v24  ;;  %v9415_v8 = vand.u32 4294901760, %v9414_v2 }
 0x4e5   :  { %v6170_v0 = vadd.f32 %v6169_v40, %v6021_v4 }
 0x4e6   :  { %v5628_v7 = vpop.f32.mrf.mxu2 }
 0x4e7   :  { %v6292_v11 = vmul.f32 %v8885_v23, %v6170_v0  ;;  %v5629_v29 = vadd.f32 %v5628_v7, %v5470_v32  ;;  %v5821_v45 = vpop.f32.mrf.mxu3 }
 0x4e8   :  { %v6024_v41 = vpop.f32.mrf.mxu0 }
 0x4e9   :  { %6324 = vst.msk [vmem:[#allocation14 + $0x20] sm:$0xff] %vm416_vm0, %v6292_v11  ;;  %v5816_v10 = vadd.f32 %v5815_v57, %v5629_v29  ;;  %v6177_v33 = vpop.f32.mrf.mxu1 }
 0x4eb   :  { %v6025_v12 = vadd.f32 %v6024_v41, %v5816_v10  ;;  %5712 = vmatmul.f32.gmra.mxu2 %v9411_v30  ;;  %6087 = vmatmul.f32.gmra.mxu0 %v9413_v24  ;;  %v9417_v30 = vand.u32 4294901760, %v8438_v1  ;;  %v9419_v41 = vand.u32 4294901760, %v8444_v53 }
 0x4ec   :  { %5922 = vmatmul.f32.gmra.mxu3 %v9415_v8  ;;  %6240 = vmatmul.f32.gmra.mxu1 %v9416_v22 }
 0x4ed   :  { %v6174_v40 = vadd.f32 %v6173_v19, %v6025_v12 }
 0x4ee   :  { %v5633_v36 = vpop.f32.mrf.mxu2 }
 0x4ef   :  { %v6293_v51 = vmul.f32 %v8896_v55, %v6174_v40  ;;  %v5634_v20 = vadd.f32 %v5633_v36, %v5474_v21  ;;  %v5827_v31 = vpop.f32.mrf.mxu3  ;;  %v8961_v40 = vld [vmem:[#allocation10 + $0x10] sm:$0xff] }
 0x4f0   :  { %v6028_v57 = vpop.f32.mrf.mxu0 }
 0x4f1   :  { %6325 = vst.msk [vmem:[#allocation14 + $0x28] sm:$0xff] %vm416_vm0, %v6293_v51  ;;  %v5822_v6 = vadd.f32 %v5821_v45, %v5634_v20  ;;  %v6181_v27 = vpop.f32.mrf.mxu1 }
 0x4f3   :  { %v6029_v4 = vadd.f32 %v6028_v57, %v5822_v6  ;;  %5717 = vmatmul.f32.gmra.mxu2 %v9414_v2  ;;  %6091 = vmatmul.f32.gmra.mxu0 %v9416_v22 }
 0x4f4   :  { %5928 = vmatmul.f32.gmra.mxu3 %v9417_v30  ;;  %6244 = vmatmul.f32.gmra.mxu1 %v9418_v43 }
 0x4f5   :  { %v6178_v19 = vadd.f32 %v6177_v33, %v6029_v4  ;;  %v8972_v4 = vld [vmem:[#allocation10 + $0x18] sm:$0xff] }
 0x4f6   :  { %v5638_v38 = vpop.f32.mrf.mxu2 }
 0x4f7   :  { %v6294_v24 = vmul.f32 %v8885_v23, %v6178_v19  ;;  %v5639_v32 = vadd.f32 %v5638_v38, %v5478_v47  ;;  %v5833_v0 = vpop.f32.mrf.mxu3 }
 0x4f8   :  { %v6032_v7 = vpop.f32.mrf.mxu0 }
 0x4f9   :  { %6326 = vst.msk [vmem:[#allocation14 + $0x30] sm:$0xff] %vm416_vm0, %v6294_v24  ;;  %v5828_v11 = vadd.f32 %v5827_v31, %v5639_v32  ;;  %v6185_v29 = vpop.f32.mrf.mxu1 }
 0x4fb   :  { %v6033_v45 = vadd.f32 %v6032_v7, %v5828_v11  ;;  %5722 = vmatmul.f32.gmra.mxu2 %v8438_v1  ;;  %6095 = vmatmul.f32.gmra.mxu0 %v9418_v43 }
 0x4fc   :  { %5934 = vmatmul.f32.gmra.mxu3 %v9419_v41  ;;  %6248 = vmatmul.f32.gmra.mxu1 %v9420_v25 }
 0x4fd   :  { %v6182_v23 = vadd.f32 %v6181_v27, %v6033_v45 }
 0x4fe   :  { %v5643_v10 = vpop.f32.mrf.mxu2 }
 0x4ff   :  { %v6295_v33 = vmul.f32 %v8896_v55, %v6182_v23  ;;  %v5644_v12 = vadd.f32 %v5643_v10, %v5482_v58  ;;  %v5839_v2 = vpop.f32.mrf.mxu3  ;;  %v9424_v58 = vand.u32 4294901760, %v8589_v49 }
 0x500   :  { %v6036_v8 = vpop.f32.mrf.mxu0 }
 0x501   :  { %6327 = vst.msk [vmem:[#allocation14 + $0x38] sm:$0xff] %vm416_vm0, %v6295_v33  ;;  %v5834_v1 = vadd.f32 %v5833_v0, %v5644_v12  ;;  %v6189_v22 = vpop.f32.mrf.mxu1  ;;  %v9423_v0 = vand.u32 4294901760, %v8556_v44 }
 0x503   :  { %v6037_v21 = vadd.f32 %v6036_v8, %v5834_v1  ;;  %5727 = vmatmul.f32.gmra.mxu2 %v8444_v53  ;;  %6099 = vmatmul.f32.gmra.mxu0 %v9420_v25  ;;  %v9425_v1 = vand.u32 4294901760, %v8632_v16 }
 0x504   :  { %5940 = vmatmul.f32.gmra.mxu3 %v9421_v39  ;;  %6252 = vmatmul.f32.gmra.mxu1 %v8422_v9 }
 0x505   :  { %v6186_v55 = vadd.f32 %v6185_v29, %v6037_v21 }
 0x506   :  { %v5648_v36 = vpop.f32.mrf.mxu2 }
 0x507   :  { %v6296_v51 = vmul.f32 %v8961_v40, %v6186_v55  ;;  %v5649_v20 = vadd.f32 %v5648_v36, %v5486_v61  ;;  %v5845_v31 = vpop.f32.mrf.mxu3 }
 0x508   :  { %v6040_v57 = vpop.f32.mrf.mxu0 }
 0x509   :  { %6328 = vst.msk [vmem:[#allocation14 + $0x40] sm:$0xff] %vm416_vm0, %v6296_v51  ;;  %v5840_v53 = vadd.f32 %v5839_v2, %v5649_v20  ;;  %v6193_v6 = vpop.f32.mrf.mxu1  ;;  %v9426_v51 = vand.u32 4294901760, %v8636_v35 }
 0x50b   :  { %v6041_v27 = vadd.f32 %v6040_v57, %v5840_v53  ;;  %5732 = vmatmul.f32.gmra.mxu2 %v8497_v50  ;;  %6103 = vmatmul.f32.gmra.mxu0 %v8422_v9 }
 0x50c   :  { %5946 = vmatmul.f32.gmra.mxu3 %v9422_v52  ;;  %6256 = vmatmul.f32.gmra.mxu1 %v8494_v28 }
 0x50d   :  { %v6190_v30 = vadd.f32 %v6189_v22, %v6041_v27 }
 0x50e   :  { %v5653_v43 = vpop.f32.mrf.mxu2 }
 0x50f   :  { %v6297_v47 = vmul.f32 %v8972_v4, %v6190_v30  ;;  %v5654_v19 = vadd.f32 %v5653_v43, %v5490_v5  ;;  %v5851_v38 = vpop.f32.mrf.mxu3 }
 0x510   :  { %v6044_v24 = vpop.f32.mrf.mxu0 }
 0x511   :  { %6329 = vst.msk [vmem:[#allocation14 + $0x48] sm:$0xff] %vm416_vm0, %v6297_v47  ;;  %v5846_v9 = vadd.f32 %v5845_v31, %v5654_v19  ;;  %v6197_v50 = vpop.f32.mrf.mxu1 }
 0x513   :  { %v6045_v32 = vadd.f32 %v6044_v24, %v5846_v9  ;;  %5737 = vmatmul.f32.gmra.mxu2 %v8515_v34  ;;  %6107 = vmatmul.f32.gmra.mxu0 %v8494_v28 }
 0x514   :  { %5952 = vmatmul.f32.gmra.mxu3 %v9423_v0  ;;  %6260 = vmatmul.f32.gmra.mxu1 %v8509_v17 }
 0x515   :  { %v6194_v14 = vadd.f32 %v6193_v6, %v6045_v32 }
 0x516   :  { %v5658_v7 = vpop.f32.mrf.mxu2 }
 0x517   :  { %v6298_v11 = vmul.f32 %v8961_v40, %v6194_v14  ;;  %v5659_v29 = vadd.f32 %v5658_v7, %v5494_v46  ;;  %v5857_v45 = vpop.f32.mrf.mxu3 }
 0x518   :  { %v6048_v41 = vpop.f32.mrf.mxu0 }
 0x519   :  { %6330 = vst.msk [vmem:[#allocation14 + $0x50] sm:$0xff] %vm416_vm0, %v6298_v11  ;;  %v5852_v34 = vadd.f32 %v5851_v38, %v5659_v29  ;;  %v6201_v25 = vpop.f32.mrf.mxu1  ;;  %v9029_v11 = vld [vmem:[#allocation10 + $0x20] sm:$0xff] }
 0x51a   :  { %v9429_v29 = vld [vmem:[#allocation32_spill] sm:$0xff] }
 0x51b   :  { %v6049_v28 = vadd.f32 %v6048_v41, %v5852_v34  ;;  %5742 = vmatmul.f32.gmra.mxu2 %v8556_v44  ;;  %6111 = vmatmul.f32.gmra.mxu0 %v8509_v17 }
 0x51c   :  { %5958 = vmatmul.f32.gmra.mxu3 %v9424_v58  ;;  %6264 = vmatmul.f32.gmra.mxu1 %v8551_v26 }
 0x51d   :  { %v6198_v3 = vadd.f32 %v6197_v50, %v6049_v28 }
 0x51e   :  { %v5663_v23 = vpop.f32.mrf.mxu2 }
 0x51f   :  { %v6299_v10 = vmul.f32 %v8972_v4, %v6198_v3  ;;  %v5664_v33 = vadd.f32 %v5663_v23, %v5498_v15  ;;  %v5863_v12 = vpop.f32.mrf.mxu3 }
 0x520   :  { %v6052_v2 = vpop.f32.mrf.mxu0 }
 0x521   :  { %6331 = vst.msk [vmem:[#allocation14 + $0x58] sm:$0xff] %vm416_vm0, %v6299_v10  ;;  %v5858_v44 = vadd.f32 %v5857_v45, %v5664_v33  ;;  %v6205_v8 = vpop.f32.mrf.mxu1  ;;  %v9430_v45 = vld [vmem:[#allocation48_spill] sm:$0xff]  ;;  %v9035_v10 = vld [vmem:[#allocation10 + $0x28] sm:$0xff] }
 0x522   :  { %v9431_v33 = vld [vmem:[#allocation56_spill] sm:$0xff] }
 0x523   :  { %v6053_v17 = vadd.f32 %v6052_v2, %v5858_v44  ;;  %5747 = vmatmul.f32.gmra.mxu2 %v8589_v49  ;;  %6115 = vmatmul.f32.gmra.mxu0 %v8551_v26 }
 0x524   :  { %5964 = vmatmul.f32.gmra.mxu3 %v9425_v1  ;;  %6268 = vmatmul.f32.gmra.mxu1 %v8584_v18 }
 0x525   :  { %v6202_v48 = vadd.f32 %v6201_v25, %v6053_v17 }
 0x526   :  { %v5668_v22 = vpop.f32.mrf.mxu2 }
 0x527   :  { %v6300_v21 = vmul.f32 %v8961_v40, %v6202_v48  ;;  %v5669_v39 = vadd.f32 %v5668_v22, %v5502_v56  ;;  %v5869_v61 = vpop.f32.mrf.mxu3 }
 0x528   :  { %v6056_v55 = vpop.f32.mrf.mxu0 }
 0x529   :  { %6332 = vst.msk [vmem:[#allocation14 + $0x60] sm:$0xff] %vm416_vm0, %v6300_v21  ;;  %v5864_v49 = vadd.f32 %v5863_v12, %v5669_v39  ;;  %v6209_v36 = vpop.f32.mrf.mxu1  ;;  %v9432_v12 = vld [vmem:[#allocation51_spill] sm:$0xff] }
 0x52a   :  { %v5522_v2 = vadd.f32 %v9432_v12, %v9431_v33 }
 0x52b   :  { %v6057_v26 = vadd.f32 %v6056_v55, %v5864_v49  ;;  %5752 = vmatmul.f32.gmra.mxu2 %v8632_v16  ;;  %6119 = vmatmul.f32.gmra.mxu0 %v8584_v18  ;;  %v9434_v55 = vld [vmem:[#allocation59_spill] sm:$0xff] }
 0x52c   :  { %5970 = vmatmul.f32.gmra.mxu3 %v9426_v51  ;;  %6272 = vmatmul.f32.gmra.mxu1 %v8627_v37 }
 0x52d   :  { %v6206_v63 = vadd.f32 %v6205_v8, %v6057_v26 }
 0x52e   :  { %v5673_v20 = vpop.f32.mrf.mxu2 }
 0x52f   :  { %v6301_v31 = vmul.f32 %v8972_v4, %v6206_v63  ;;  %v5674_v57 = vadd.f32 %v5673_v20, %v5506_v13  ;;  %v5875_v53 = vpop.f32.mrf.mxu3 }
 0x530   :  { %v6060_v6 = vpop.f32.mrf.mxu0 }
 0x531   :  { %6333 = vst.msk [vmem:[#allocation14 + $0x68] sm:$0xff] %vm416_vm0, %v6301_v31  ;;  %v5870_v16 = vadd.f32 %v5869_v61, %v5674_v57  ;;  %v6213_v27 = vpop.f32.mrf.mxu1  ;;  %v9433_v61 = vld [vmem:[#allocation53_spill] sm:$0xff] }
 0x532   :  { %v5526_v49 = vadd.f32 %v9434_v55, %v9433_v61 }
 0x533   :  { %v6061_v18 = vadd.f32 %v6060_v6, %v5870_v16  ;;  %5757 = vmatmul.f32.gmra.mxu2 %v8636_v35  ;;  %6123 = vmatmul.f32.gmra.mxu0 %v8627_v37  ;;  %v9427_v37 = vld [vmem:[#allocation47_spill] sm:$0xff]  ;;  %v9435_v6 = vld [vmem:[#allocation60_spill] sm:$0xff]  ;;  %v9436_v16 = vld [vmem:[#allocation58_spill] sm:$0xff] }
 0x534   :  { %6276 = vmatmul.f32.gmra.mxu1 %v8625_v42  ;;  %v9428_v35 = vld [vmem:[#allocation31_spill] sm:$0xff] }
 0x535   :  { %v6210_v62 = vadd.f32 %v6209_v36, %v6061_v18  ;;  %v5514_v9 = vadd.f32 %v9428_v35, %v9427_v37 }
 0x536   :  { %v5678_v52 = vpop.f32.mrf.mxu2 }
 0x537   :  { %v6302_v5 = vmul.f32 %v8961_v40, %v6210_v62  ;;  %v5679_v30 = vadd.f32 %v5678_v52, %v5510_v54  ;;  %v5881_v43 = vpop.f32.mrf.mxu3 }
 0x538   :  { %v6064_v47 = vpop.f32.mrf.mxu0 }
 0x539   :  { %6334 = vst.msk [vmem:[#allocation14 + $0x70] sm:$0xff] %vm416_vm0, %v6302_v5  ;;  %v5876_v19 = vadd.f32 %v5875_v53, %v5679_v30  ;;  %v6217_v38 = vpop.f32.mrf.mxu1 }
 0x53b   :  { %v6065_v24 = vadd.f32 %v6064_v47, %v5876_v19  ;;  %6127 = vmatmul.f32.gmra.mxu0 %v8625_v42  ;;  %v5518_v42 = vadd.f32 %v9430_v45, %v9429_v29 }
 0x53d   :  { %v6214_v50 = vadd.f32 %v6213_v27, %v6065_v24  ;;  %v5530_v27 = vadd.f32 %v9436_v16, %v9435_v6  ;;  %v9438_v24 = vld [vmem:[#allocation34_spill] sm:$0xff] }
 0x53e   :  { %v5683_v32 = vpop.f32.mrf.mxu2 }
 0x53f   :  { %v6303_v60 = vmul.f32 %v8972_v4, %v6214_v50  ;;  %v5684_v59 = vadd.f32 %v5683_v32, %v5514_v9  ;;  %v5887_v0 = vpop.f32.mrf.mxu3 }
 0x540   :  { %v6068_v40 = vpop.f32.mrf.mxu0 }
 0x541   :  { %6335 = vst.msk [vmem:[#allocation14 + $0x78] sm:$0xff] %vm416_vm0, %v6303_v60  ;;  %v5882_v46 = vadd.f32 %v5881_v43, %v5684_v59  ;;  %v6221_v14 = vpop.f32.mrf.mxu1 }
 0x543   :  { %v6069_v7 = vadd.f32 %v6068_v40, %v5882_v46 }
 0x545   :  { %v6218_v41 = vadd.f32 %v6217_v38, %v6069_v7  ;;  %v9437_v38 = vld [vmem:[#allocation38_spill] sm:$0xff]  ;;  %v9440_v7 = vld [vmem:[#allocation41_spill] sm:$0xff] }
 0x546   :  { %v5688_v34 = vpop.f32.mrf.mxu2  ;;  %v5534_v37 = vadd.f32 %v9438_v24, %v9437_v38 }
 0x547   :  { %v6304_v25 = vmul.f32 %v9029_v11, %v6218_v41  ;;  %v5689_v28 = vadd.f32 %v5688_v34, %v5518_v42  ;;  %v5893_v58 = vpop.f32.mrf.mxu3 }
 0x548   :  { %v6072_v4 = vpop.f32.mrf.mxu0 }
 0x549   :  { %6336 = vst.msk [vmem:[#allocation14 + $0x80] sm:$0xff] %vm416_vm0, %v6304_v25  ;;  %v5888_v15 = vadd.f32 %v5887_v0, %v5689_v28  ;;  %v6225_v3 = vpop.f32.mrf.mxu1 }
 0x54b   :  { %v6073_v23 = vadd.f32 %v6072_v4, %v5888_v15 }
 0x54d   :  { %v6222_v44 = vadd.f32 %v6221_v14, %v6073_v23  ;;  %v9439_v14 = vld [vmem:[#allocation33_spill] sm:$0xff]  ;;  %v9442_v23 = vld [vmem:[#allocation36_spill] sm:$0xff] }
 0x54e   :  { %v5693_v8 = vpop.f32.mrf.mxu2  ;;  %v5538_v29 = vadd.f32 %v9440_v7, %v9439_v14 }
 0x54f   :  { %v6305_v17 = vmul.f32 %v9035_v10, %v6222_v44  ;;  %v5694_v1 = vadd.f32 %v5693_v8, %v5522_v2  ;;  %v5899_v56 = vpop.f32.mrf.mxu3 }
 0x550   :  { %v6076_v48 = vpop.f32.mrf.mxu0 }
 0x551   :  { %6337 = vst.msk [vmem:[#allocation14 + $0x88] sm:$0xff] %vm416_vm0, %v6305_v17  ;;  %v5894_v22 = vadd.f32 %v5893_v58, %v5694_v1  ;;  %v6229_v21 = vpop.f32.mrf.mxu1 }
 0x553   :  { %v6077_v39 = vadd.f32 %v6076_v48, %v5894_v22 }
 0x555   :  { %v6226_v36 = vadd.f32 %v6225_v3, %v6077_v39  ;;  %v9441_v3 = vld [vmem:[#allocation64_spill] sm:$0xff]  ;;  %v9444_v39 = vld [vmem:[#allocation39_spill] sm:$0xff] }
 0x556   :  { %v5698_v26 = vpop.f32.mrf.mxu2  ;;  %v5542_v33 = vadd.f32 %v9442_v23, %v9441_v3 }
 0x557   :  { %v6306_v51 = vmul.f32 %v9029_v11, %v6226_v36  ;;  %v5699_v13 = vadd.f32 %v5698_v26, %v5526_v49  ;;  %v5905_v63 = vpop.f32.mrf.mxu3 }
 0x558   :  { %v6080_v20 = vpop.f32.mrf.mxu0 }
 0x559   :  { %6338 = vst.msk [vmem:[#allocation14 + $0x90] sm:$0xff] %vm416_vm0, %v6306_v51  ;;  %v5900_v31 = vadd.f32 %v5899_v56, %v5699_v13  ;;  %v6233_v57 = vpop.f32.mrf.mxu1 }
 0x55b   :  { %v6081_v53 = vadd.f32 %v6080_v20, %v5900_v31  ;;  %v9065_v31 = vld [vmem:[#allocation10 + $0x30] sm:$0xff] }
 0x55d   :  { %v6230_v18 = vadd.f32 %v6229_v21, %v6081_v53  ;;  %v9443_v21 = vld [vmem:[#allocation63_spill] sm:$0xff]  ;;  %v9446_v53 = vld [vmem:[#allocation45_spill] sm:$0xff] }
 0x55e   :  { %v5703_v54 = vpop.f32.mrf.mxu2  ;;  %v5546_v61 = vadd.f32 %v9444_v39, %v9443_v21 }
 0x55f   :  { %v6307_v62 = vmul.f32 %v9035_v10, %v6230_v18  ;;  %v5704_v52 = vadd.f32 %v5703_v54, %v5530_v27  ;;  %v5911_v5 = vpop.f32.mrf.mxu3 }
 0x560   :  { %v6084_v30 = vpop.f32.mrf.mxu0 }
 0x561   :  { %6339 = vst.msk [vmem:[#allocation14 + $0x98] sm:$0xff] %vm416_vm0, %v6307_v62  ;;  %v5906_v43 = vadd.f32 %v5905_v63, %v5704_v52  ;;  %v6237_v47 = vpop.f32.mrf.mxu1 }
 0x563   :  { %v6085_v19 = vadd.f32 %v6084_v30, %v5906_v43  ;;  %v9071_v43 = vld [vmem:[#allocation10 + $0x38] sm:$0xff] }
 0x565   :  { %v6234_v35 = vadd.f32 %v6233_v57, %v6085_v19  ;;  %v9445_v57 = vld [vmem:[#allocation46_spill] sm:$0xff]  ;;  %v9448_v19 = vld [vmem:[#allocation49_spill] sm:$0xff] }
 0x566   :  { %v5708_v9 = vpop.f32.mrf.mxu2  ;;  %v5550_v6 = vadd.f32 %v9446_v53, %v9445_v57  ;;  %v9455_v57 = vld [vmem:[#allocation24_spill] sm:$0xff] }
 0x567   :  { %v6308_v50 = vmul.f32 %v9029_v11, %v6234_v35  ;;  %v5709_v32 = vadd.f32 %v5708_v9, %v5534_v37  ;;  %v5917_v60 = vpop.f32.mrf.mxu3 }
 0x568   :  { %v6088_v59 = vpop.f32.mrf.mxu0 }
 0x569   :  { %6340 = vst.msk [vmem:[#allocation14 + $0xa0] sm:$0xff] %vm416_vm0, %v6308_v50  ;;  %v5912_v0 = vadd.f32 %v5911_v5, %v5709_v32  ;;  %v6241_v40 = vpop.f32.mrf.mxu1 }
 0x56b   :  { %v6089_v46 = vadd.f32 %v6088_v59, %v5912_v0 }
 0x56d   :  { %v6238_v45 = vadd.f32 %v6237_v47, %v6089_v46  ;;  %v9447_v47 = vld [vmem:[#allocation52_spill] sm:$0xff]  ;;  %v9450_v46 = vld [vmem:[#allocation55_spill] sm:$0xff] }
 0x56e   :  { %v5713_v42 = vpop.f32.mrf.mxu2  ;;  %v5554_v38 = vadd.f32 %v9448_v19, %v9447_v47 }
 0x56f   :  { %v6309_v41 = vmul.f32 %v9035_v10, %v6238_v45  ;;  %v5714_v34 = vadd.f32 %v5713_v42, %v5538_v29  ;;  %v5923_v25 = vpop.f32.mrf.mxu3 }
 0x570   :  { %v6092_v28 = vpop.f32.mrf.mxu0 }
 0x571   :  { %6341 = vst.msk [vmem:[#allocation14 + $0xa8] sm:$0xff] %vm416_vm0, %v6309_v41  ;;  %v5918_v58 = vadd.f32 %v5917_v60, %v5714_v34  ;;  %v6245_v4 = vpop.f32.mrf.mxu1 }
 0x573   :  { %v6093_v15 = vadd.f32 %v6092_v28, %v5918_v58  ;;  %v9451_v58 = vld [vmem:[#allocation57_spill] sm:$0xff] }
 0x575   :  { %v6242_v12 = vadd.f32 %v6241_v40, %v6093_v15  ;;  %v9449_v40 = vld [vmem:[#allocation50_spill] sm:$0xff] }
 0x576   :  { %v5718_v2 = vpop.f32.mrf.mxu2  ;;  %v5558_v14 = vadd.f32 %v9450_v46, %v9449_v40 }
 0x577   :  { %v6310_v44 = vmul.f32 %v9029_v11, %v6242_v12  ;;  %v5719_v8 = vadd.f32 %v5718_v2, %v5542_v33  ;;  %v5929_v17 = vpop.f32.mrf.mxu3 }
 0x578   :  { %v6096_v1 = vpop.f32.mrf.mxu0 }
 0x579   :  { %6342 = vst.msk [vmem:[#allocation14 + $0xb0] sm:$0xff] %vm416_vm0, %v6310_v44  ;;  %v5924_v56 = vadd.f32 %v5923_v25, %v5719_v8  ;;  %v6249_v48 = vpop.f32.mrf.mxu1 }
 0x57b   :  { %v6097_v22 = vadd.f32 %v6096_v1, %v5924_v56  ;;  %v9453_v56 = vld [vmem:[#allocation61_spill] sm:$0xff] }
 0x57d   :  { %v6246_v55 = vadd.f32 %v6245_v4, %v6097_v22  ;;  %v9452_v4 = vld [vmem:[#allocation54_spill] sm:$0xff] }
 0x57e   :  { %v5723_v49 = vpop.f32.mrf.mxu2  ;;  %v5562_v15 = vadd.f32 %v9452_v4, %v9451_v58 }
 0x57f   :  { %v6311_v36 = vmul.f32 %v9035_v10, %v6246_v55  ;;  %v5724_v26 = vadd.f32 %v5723_v49, %v5546_v61  ;;  %v5935_v51 = vpop.f32.mrf.mxu3 }
 0x580   :  { %v6100_v13 = vpop.f32.mrf.mxu0 }
 0x581   :  { %6343 = vst.msk [vmem:[#allocation14 + $0xb8] sm:$0xff] %vm416_vm0, %v6311_v36  ;;  %v5930_v11 = vadd.f32 %v5929_v17, %v5724_v26  ;;  %v6253_v63 = vpop.f32.mrf.mxu1 }
 0x583   :  { %v6101_v20 = vadd.f32 %v6100_v13, %v5930_v11 }
 0x585   :  { %v6250_v16 = vadd.f32 %v6249_v48, %v6101_v20  ;;  %v9454_v48 = vld [vmem:[#allocation62_spill] sm:$0xff] }
 0x586   :  { %v5728_v27 = vpop.f32.mrf.mxu2  ;;  %v5566_v22 = vadd.f32 %v9454_v48, %v9453_v56 }
 0x587   :  { %v6312_v18 = vmul.f32 %v9065_v31, %v6250_v16  ;;  %v5729_v54 = vadd.f32 %v5728_v27, %v5550_v6  ;;  %v5941_v62 = vpop.f32.mrf.mxu3 }
 0x588   :  { %v6104_v10 = vpop.f32.mrf.mxu0 }
 0x589   :  { %6344 = vst.msk [vmem:[#allocation14 + $0xc0] sm:$0xff] %vm416_vm0, %v6312_v18  ;;  %v5936_v52 = vadd.f32 %v5935_v51, %v5729_v54  ;;  %v6257_v5 = vpop.f32.mrf.mxu1 }
 0x58b   :  { %v6105_v30 = vadd.f32 %v6104_v10, %v5936_v52  ;;  %v9456_v52 = vld [vmem:[#allocation66_spill] sm:$0xff] }
 0x58d   :  { %v6254_v24 = vadd.f32 %v6253_v63, %v6105_v30 }
 0x58e   :  { %v5733_v37 = vpop.f32.mrf.mxu2 }
 0x58f   :  { %v6313_v35 = vmul.f32 %v9071_v43, %v6254_v24  ;;  %v5734_v9 = vadd.f32 %v5733_v37, %v5554_v38  ;;  %v5947_v50 = vpop.f32.mrf.mxu3 }
 0x590   :  { %v6108_v32 = vpop.f32.mrf.mxu0 }
 0x591   :  { %6345 = vst.msk [vmem:[#allocation14 + $0xc8] sm:$0xff] %vm416_vm0, %v6313_v35  ;;  %v5942_v60 = vadd.f32 %v5941_v62, %v5734_v9  ;;  %v6261_v0 = vpop.f32.mrf.mxu1 }
 0x593   :  { %v6109_v59 = vadd.f32 %v6108_v32, %v5942_v60 }
 0x595   :  { %v6258_v7 = vadd.f32 %v6257_v5, %v6109_v59 }
 0x596   :  { %v5738_v29 = vpop.f32.mrf.mxu2 }
 0x597   :  { %v6314_v45 = vmul.f32 %v9065_v31, %v6258_v7  ;;  %v5739_v42 = vadd.f32 %v5738_v29, %v5558_v14  ;;  %v5953_v25 = vpop.f32.mrf.mxu3 }
 0x598   :  { %v6112_v41 = vpop.f32.mrf.mxu0 }
 0x599   :  { %6346 = vst.msk [vmem:[#allocation14 + $0xd0] sm:$0xff] %vm416_vm0, %v6314_v45  ;;  %v5948_v34 = vadd.f32 %v5947_v50, %v5739_v42  ;;  %v6265_v23 = vpop.f32.mrf.mxu1 }
 0x59b   :  { %v6113_v28 = vadd.f32 %v6112_v41, %v5948_v34 }
 0x59d   :  { %v6262_v3 = vadd.f32 %v6261_v0, %v6113_v28 }
 0x59e   :  { %v5743_v33 = vpop.f32.mrf.mxu2 }
 0x59f   :  { %v6315_v12 = vmul.f32 %v9071_v43, %v6262_v3  ;;  %v5744_v2 = vadd.f32 %v5743_v33, %v5562_v15  ;;  %v5959_v1 = vpop.f32.mrf.mxu3 }
 0x5a0   :  { %v6116_v44 = vpop.f32.mrf.mxu0 }
 0x5a1   :  { %6347 = vst.msk [vmem:[#allocation14 + $0xd8] sm:$0xff] %vm416_vm0, %v6315_v12  ;;  %v5954_v8 = vadd.f32 %v5953_v25, %v5744_v2  ;;  %v6269_v49 = vpop.f32.mrf.mxu1 }
 0x5a3   :  { %v6117_v17 = vadd.f32 %v6116_v44, %v5954_v8 }
 0x5a5   :  { %v6266_v21 = vadd.f32 %v6265_v23, %v6117_v17 }
 0x5a6   :  { %v5748_v39 = vpop.f32.mrf.mxu2 }
 0x5a7   :  { %v6316_v61 = vmul.f32 %v9065_v31, %v6266_v21  ;;  %v5749_v55 = vadd.f32 %v5748_v39, %v5566_v22  ;;  %v5965_v11 = vpop.f32.mrf.mxu3 }
 0x5a8   :  { %v6120_v36 = vpop.f32.mrf.mxu0 }
 0x5a9   :  { %6348 = vst.msk [vmem:[#allocation14 + $0xe0] sm:$0xff] %vm416_vm0, %v6316_v61  ;;  %v5960_v26 = vadd.f32 %v5959_v1, %v5749_v55  ;;  %v6273_v27 = vpop.f32.mrf.mxu1 }
 0x5ab   :  { %v6121_v51 = vadd.f32 %v6120_v36, %v5960_v26 }
 0x5ad   :  { %v6270_v13 = vadd.f32 %v6269_v49, %v6121_v51 }
 0x5ae   :  { %v5753_v63 = vpop.f32.mrf.mxu2 }
 0x5af   :  { %v6317_v20 = vmul.f32 %v9071_v43, %v6270_v13  ;;  %v5754_v53 = vadd.f32 %v5753_v63, %v9455_v57  ;;  %v5971_v30 = vpop.f32.mrf.mxu3 }
 0x5b0   :  { %v6124_v6 = vpop.f32.mrf.mxu0 }
 0x5b1   :  { %6349 = vst.msk [vmem:[#allocation14 + $0xe8] sm:$0xff] %vm416_vm0, %v6317_v20  ;;  %v5966_v16 = vadd.f32 %v5965_v11, %v5754_v53  ;;  %v6277_v24 = vpop.f32.mrf.mxu1 }
 0x5b3   :  { %v6125_v18 = vadd.f32 %v6124_v6, %v5966_v16 }
 0x5b5   :  { %v6274_v54 = vadd.f32 %v6273_v27, %v6125_v18 }
 0x5b6   :  { %v5758_v62 = vpop.f32.mrf.mxu2 }
 0x5b7   :  { %v6318_v10 = vmul.f32 %v9065_v31, %v6274_v54  ;;  %v5759_v5 = vadd.f32 %v5758_v62, %v9456_v52 }
 0x5b8   :  { %v6128_v19 = vpop.f32.mrf.mxu0 }
 0x5b9   :  { %6350 = vst.msk [vmem:[#allocation14 + $0xf0] sm:$0xff] %vm416_vm0, %v6318_v10  ;;  %v5972_v47 = vadd.f32 %v5971_v30, %v5759_v5 }
 0x5bb   :  { %v6129_v38 = vadd.f32 %v6128_v19, %v5972_v47 }
 0x5bd   :  { %v6278_v37 = vadd.f32 %v6277_v24, %v6129_v38 }
 0x5bf   :  { %v6319_v35 = vmul.f32 %v9071_v43, %v6278_v37 }
 0x5c1   :  { %6351 = vst.msk [vmem:[#allocation14 + $0xf8] sm:$0xff] %vm416_vm0, %v6319_v35 }
 0x5c2   :  { %6364 = dma.vmem_to_hbm [thread:$0]  %s6357_s12, 4096, %s6359_s1, [#allocation4], %s6596_s9, %s6596_s9, %s6597_s10  }
 0x5c3   :  { %6593 = dma.done.wait [#allocation4], 4096  }
 0x5c4   :  { %6594 = vsyncadd [#allocation4], 4294963200 }
 0x5c5   :  { %6369 = vsyncpa [#allocation3], 1 }
 0x5c6   :  { %6370 = vsyncpa [#allocation6], 1 }
 0x5c7   :  { %6371 = vsyncpa [#allocation9], 1 }
 0x5c8   :  { %6372 = vsyncpa [#allocation12], 1 }
 0x5c9   :  { %6373 = vsyncpa [#allocation4], 1 }

</bundles_post_ra>
